<compile_context>
chip_gen: v5e
topology: v5e:2x2
jax: 0.10.0
libtpu: 0.0.40
codegen_flags: <defaults>
</compile_context>

<pallas_src>
import functools

import jax
import jax.numpy as jnp
from jax import lax
from jax.experimental import pallas as pl
from jax.experimental.pallas import tpu as pltpu

KSIZE = 11          # Conv1d kernel_size=11, padding='same'
PAD = KSIZE // 2
LN_EPS = 1e-5       # PyTorch LayerNorm default
MASK_VALUE = -1e10  # matches masked_fill(mask == 0, -1e10)

# Matmul-operand / weight-storage dtype.  bf16 doubles MXU throughput on all
# generations and halves weight DMA / VMEM bytes; accumulation is f32 via
# preferred_element_type and all LayerNorm / softmax math is f32.  Set to
# jnp.float32 for bit-closer parity with the PyTorch f32 reference.
MXU_DTYPE = jnp.bfloat16


def _vmem_limit_bytes():
    """Per-generation scoped-VMEM budget: half of physical, capped at 100 MiB.
    v5e/v6e (128 MiB physical) -> 64 MiB; v7x (64 MiB physical) -> 32 MiB."""
    phys = 128 * 1024 * 1024
    try:
        info = pltpu.get_tpu_info()
        phys = int(getattr(info, "vmem_capacity_bytes", phys))
    except Exception:
        pass
    return max(32 * 1024 * 1024, min(phys // 2, 100 * 1024 * 1024))


def _ln(x, g, b):
    """LayerNorm over the last dim, f32 math. g/b broadcast as (1, H)."""
    mu = jnp.mean(x, axis=-1, keepdims=True)
    xc = x - mu
    var = jnp.mean(xc * xc, axis=-1, keepdims=True)
    return xc * lax.rsqrt(var + LN_EPS) * g + b


def _conv_relu(pad_ref, xin, w, b, T):
    """'same' Conv1d (K=11) + ReLU via im2col: stage xin into the zero-padded
    VMEM scratch, build a (T, K*Cin) block, then ONE deep MXU matmul against
    the (K*Cin, Cout) weight (no per-tap K=Cin dots / MXU drains)."""
    pad_ref[pl.ds(PAD, T), :] = xin.astype(pad_ref.dtype)
    xp = pad_ref[...]                                             # (T+K-1, C)
    cols = jnp.concatenate([xp[k:k + T, :] for k in range(KSIZE)], axis=-1)
    acc = jnp.dot(cols, w, preferred_element_type=jnp.float32)    # (T, Cout)
    return jnp.maximum(acc + b, 0.0)


# ----------------------------------------------------------------------------
# Fully fused encoder kernel: SeqEmbedding + LayerNorm + all transformer
# layers for a block of `bblk` batch elements per grid step.
# ----------------------------------------------------------------------------
def _encoder_kernel(x_ref, m_ref,
                    c1w_ref, c1b_ref, c2w_ref, c2b_ref, c3w_ref, c3b_ref,
                    ln0g_ref, ln0b_ref,
                    wqkv_ref, bqkv_ref, wo_ref, bo_ref,
                    ln1g_ref, ln1b_ref, w1_ref, b1_ref, w2_ref, b2_ref,
                    ln2g_ref, ln2b_ref,
                    o_ref, pad1_ref, pad2_ref,
                    *, T, hid, num_head, num_layers, bblk):
    head_dim = hid // num_head

    # Zero only the PAD rows of the conv staging buffers (content rows are
    # overwritten per sample; pad rows must stay zero for 'same' padding).
    for pref in (pad1_ref, pad2_ref):
        z = jnp.zeros((PAD, pref.shape[-1]), pref.dtype)
        pref[pl.ds(0, PAD), :] = z
        pref[pl.ds(PAD + T, PAD), :] = z

    # ---- SeqEmbedding: conv1/2/3 + ReLU per sample, then seq_emb LayerNorm.
    emb = []
    for bb in range(bblk):
        h = _conv_relu(pad1_ref, x_ref[bb], c1w_ref[...], c1b_ref[...], T)
        h = _conv_relu(pad2_ref, h, c2w_ref[...], c2b_ref[...], T)
        h = _conv_relu(pad2_ref, h, c3w_ref[...], c3b_ref[...], T)
        emb.append(h)
    x2d = jnp.concatenate(emb, axis=0) if bblk > 1 else emb[0]    # (bblk*T, H)
    x2d = _ln(x2d, ln0g_ref[...], ln0b_ref[...])

    # Additive attention-mask bias, computed ONCE per grid step and reused by
    # every layer / head (mask: 1.0 = keep, 0.0 = pad).
    mask = m_ref[...][:, 0, :]                                    # (bblk, T)
    mask_bias = jnp.where(mask < 0.5, MASK_VALUE, 0.0)            # (bblk, T)

    # ---- Transformer layers, statically unrolled; weights indexed [l]. ----
    for l in range(num_layers):
        xm = x2d.astype(MXU_DTYPE)
        # Fused Q|K|V projection: single (BT,H)x(H,3H) matmul.  The
        # 1/sqrt(head_dim) attention scale is already folded into Wq / bq.
        qkv = jnp.dot(xm, wqkv_ref[l],
                      preferred_element_type=jnp.float32) + bqkv_ref[l]
        qkv_m = qkv.astype(MXU_DTYPE)                             # single cast

        # Per-head attention; head outputs are concatenated back onto the lane
        # axis so Wo is ONE full-contraction (K = H) matmul.
        # TODO(synk): for long sequences the (T,T) scores exceed VMEM -> switch
        # to a flash-style KV-tiled loop with online softmax (earlier on v7x).
        # TODO(synk): when head_dim % 128 != 0 these lane slices cost XLU
        # relayouts; for production shapes relayout qkv once per layer into a
        # head-major (3*num_head, T, Dpad) scratch instead.
        attn_rows = []
        for bb in range(bblk):
            r0 = bb * T
            mb = mask_bias[bb:bb + 1, :]                          # (1, T)
            heads = []
            for hh in range(num_head):
                lo = hh * head_dim
                q = qkv_m[r0:r0 + T, lo:lo + head_dim]
                k = qkv_m[r0:r0 + T, hid + lo:hid + lo + head_dim]
                v = qkv_m[r0:r0 + T, 2 * hid + lo:2 * hid + lo + head_dim]
                s = jnp.einsum('qd,kd->qk', q, k,
                               preferred_element_type=jnp.float32) + mb
                s = s - jnp.max(s, axis=-1, keepdims=True)
                p = jnp.exp(s)
                p = p * pl.reciprocal(jnp.sum(p, axis=-1, keepdims=True),
                                      approx=True)
                heads.append(jnp.dot(p.astype(MXU_DTYPE), v,
                                     preferred_element_type=jnp.float32))
            attn_rows.append(jnp.concatenate(heads, axis=-1))     # (T, H)
        attn = (jnp.concatenate(attn_rows, axis=0)
                if bblk > 1 else attn_rows[0])                    # (bblk*T, H)

        # Wo epilogue: bias + residual + LayerNorm1 (post-norm).
        proj = jnp.dot(attn.astype(MXU_DTYPE), wo_ref[l],
                       preferred_element_type=jnp.float32) + bo_ref[l]
        x1 = _ln(proj + x2d, ln1g_ref[l], ln1b_ref[l])

        # FFN: W1 + ReLU, then W2 epilogue with bias + residual + LayerNorm2.
        hdn = jnp.maximum(
            jnp.dot(x1.astype(MXU_DTYPE), w1_ref[l],
                    preferred_element_type=jnp.float32) + b1_ref[l], 0.0)
        y2 = jnp.dot(hdn.astype(MXU_DTYPE), w2_ref[l],
                     preferred_element_type=jnp.float32) + b2_ref[l] + x1
        x2d = _ln(y2, ln2g_ref[l], ln2b_ref[l])

    o_ref[...] = x2d.reshape(bblk, T, hid)


# ----------------------------------------------------------------------------
# Wrapper: one pallas_call for the whole encoder.
# ----------------------------------------------------------------------------
def encoder_forward(params, seq, seq_mask, num_head, bblk=None):
    """seq: (B, T, C_in) channels-last (the PyTorch NCL permutes are folded
    into the layout); seq_mask: (B, T), 1.0 = keep."""
    B, T, C_in = seq.shape
    H = params['ln0_g'].shape[-1]
    L = params['wqkv'].shape[0]
    F = params['w1'].shape[-1]
    assert H % num_head == 0

    if bblk is None:  # largest batch block <= 8 that divides B
        bblk = next((d for d in (8, 4, 2, 1) if B % d == 0), 1)
    assert B % bblk == 0

    mask3 = seq_mask.reshape(B, 1, T).astype(jnp.float32)
    kern = functools.partial(_encoder_kernel, T=T, hid=H, num_head=num_head,
                             num_layers=L, bblk=bblk)
    w2 = lambda b: (0, 0)
    w3 = lambda b: (0, 0, 0)

    # TODO(synk): for very deep / wide models whose all-layer weights exceed
    # VMEM, split back into per-layer pallas_calls or add a layer grid axis.
    return pl.pallas_call(
        kern,
        out_shape=jax.ShapeDtypeStruct((B, T, H), jnp.float32),
        grid_spec=pltpu.PrefetchScalarGridSpec(
            num_scalar_prefetch=0,
            grid=(B // bblk,),
            in_specs=[
                pl.BlockSpec((bblk, T, C_in), lambda b: (b, 0, 0)),
                pl.BlockSpec((bblk, 1, T), lambda b: (b, 0, 0)),
                pl.BlockSpec((KSIZE * C_in, H), w2),
                pl.BlockSpec((1, H), w2),
                pl.BlockSpec((KSIZE * H, H), w2),
                pl.BlockSpec((1, H), w2),
                pl.BlockSpec((KSIZE * H, H), w2),
                pl.BlockSpec((1, H), w2),
                pl.BlockSpec((1, H), w2),
                pl.BlockSpec((1, H), w2),
                pl.BlockSpec((L, H, 3 * H), w3),
                pl.BlockSpec((L, 1, 3 * H), w3),
                pl.BlockSpec((L, H, H), w3),
                pl.BlockSpec((L, 1, H), w3),
                pl.BlockSpec((L, 1, H), w3),
                pl.BlockSpec((L, 1, H), w3),
                pl.BlockSpec((L, H, F), w3),
                pl.BlockSpec((L, 1, F), w3),
                pl.BlockSpec((L, F, H), w3),
                pl.BlockSpec((L, 1, H), w3),
                pl.BlockSpec((L, 1, H), w3),
                pl.BlockSpec((L, 1, H), w3),
            ],
            out_specs=pl.BlockSpec((bblk, T, H), lambda b: (b, 0, 0)),
            scratch_shapes=[
                pltpu.VMEM((T + 2 * PAD, C_in), MXU_DTYPE),   # conv1 'same' pad
                pltpu.VMEM((T + 2 * PAD, H), MXU_DTYPE),      # conv2/3 pad
            ],
        ),
        compiler_params=pltpu.CompilerParams(
            dimension_semantics=("parallel",),
            vmem_limit_bytes=_vmem_limit_bytes()),
    )(seq, mask3,
      params['conv1_w'], params['conv1_b'],
      params['conv2_w'], params['conv2_b'],
      params['conv3_w'], params['conv3_b'],
      params['ln0_g'], params['ln0_b'],
      params['wqkv'], params['bqkv'], params['wo'], params['bo'],
      params['ln1_g'], params['ln1_b'], params['w1'], params['b1'],
      params['w2'], params['b2'], params['ln2_g'], params['ln2_b'])


def init_params(key, in_channels, num_hid, num_ff, num_layers, num_head):
    keys = iter(jax.random.split(key, 4 + 4 * num_layers))

    def nrm(shape, scale=0.05):
        return jax.random.normal(next(keys), shape, jnp.float32) * scale

    head_dim = num_hid // num_head
    q_scale = 1.0 / float(head_dim) ** 0.5
    f32 = jnp.float32

    # Conv weights are stored im2col-flattened (K*C_in, C_out); a PyTorch
    # Conv1d weight (C_out, C_in, K) maps via transpose->(K, C_in, C_out)
    # then reshape.  MXU weights live in bf16; biases / LN params stay f32.
    p = {
        'conv1_w': nrm((KSIZE * in_channels, num_hid)).astype(MXU_DTYPE),
        'conv1_b': jnp.zeros((1, num_hid), f32),
        'conv2_w': nrm((KSIZE * num_hid, num_hid)).astype(MXU_DTYPE),
        'conv2_b': jnp.zeros((1, num_hid), f32),
        'conv3_w': nrm((KSIZE * num_hid, num_hid)).astype(MXU_DTYPE),
        'conv3_b': jnp.zeros((1, num_hid), f32),
        'ln0_g': jnp.ones((1, num_hid), f32),
        'ln0_b': jnp.zeros((1, num_hid), f32),
    }

    wqkv, wo, w1, w2 = [], [], [], []
    for _ in range(num_layers):
        w = nrm((num_hid, 3 * num_hid))
        # Fold the 1/sqrt(head_dim) attention scale into Wq (and bq) offline.
        w = w.at[:, :num_hid].multiply(q_scale)
        wqkv.append(w)
        wo.append(nrm((num_hid, num_hid)))
        w1.append(nrm((num_hid, num_ff)))
        w2.append(nrm((num_ff, num_hid)))

    L = num_layers
    p.update({
        'wqkv': jnp.stack(wqkv).astype(MXU_DTYPE),            # (L, H, 3H)
        'bqkv': jnp.zeros((L, 1, 3 * num_hid), f32),           # Q-part pre-scaled
        'wo': jnp.stack(wo).astype(MXU_DTYPE),                 # (L, H, H)
        'bo': jnp.zeros((L, 1, num_hid), f32),
        'w1': jnp.stack(w1).astype(MXU_DTYPE),                 # (L, H, F)
        'b1': jnp.zeros((L, 1, num_ff), f32),
        'w2': jnp.stack(w2).astype(MXU_DTYPE),                 # (L, F, H)
        'b2': jnp.zeros((L, 1, num_hid), f32),
        'ln1_g': jnp.ones((L, 1, num_hid), f32),
        'ln1_b': jnp.zeros((L, 1, num_hid), f32),
        'ln2_g': jnp.ones((L, 1, num_hid), f32),
        'ln2_b': jnp.zeros((L, 1, num_hid), f32),
    })
    return p


if __name__ == "__main__":
    B, T, C_IN = 2, 16, 4
    NUM_HID, NUM_HEAD, NUM_FF, NUM_LAYERS = 32, 4, 64, 2

    key = jax.random.PRNGKey(0)
    k_params, k_seq = jax.random.split(key)
    params = init_params(k_params, C_IN, NUM_HID, NUM_FF, NUM_LAYERS, NUM_HEAD)

    seq = jax.random.normal(k_seq, (B, T, C_IN), jnp.float32)
    seq_mask = jnp.ones((B, T), jnp.float32)

    fwd = jax.jit(functools.partial(encoder_forward, num_head=NUM_HEAD))
    out = jax.block_until_ready(fwd(params, seq, seq_mask))
    assert out.shape == (B, T, NUM_HID)
    assert bool(jnp.all(jnp.isfinite(out)))
    print("KERNEL_OK")
</pallas_src>

<mosaic_0001>
module attributes {stable_mosaic.version = 11 : i64} {
  func.func @_encoder_kernel(%arg0: i32, %arg1: memref<2x16x4xf32, #tpu.memory_space<vmem>>, %arg2: memref<2x1x16xf32, #tpu.memory_space<vmem>>, %arg3: memref<44x32xbf16, #tpu.memory_space<vmem>>, %arg4: memref<1x32xf32, #tpu.memory_space<vmem>>, %arg5: memref<352x32xbf16, #tpu.memory_space<vmem>>, %arg6: memref<1x32xf32, #tpu.memory_space<vmem>>, %arg7: memref<352x32xbf16, #tpu.memory_space<vmem>>, %arg8: memref<1x32xf32, #tpu.memory_space<vmem>>, %arg9: memref<1x32xf32, #tpu.memory_space<vmem>>, %arg10: memref<1x32xf32, #tpu.memory_space<vmem>>, %arg11: memref<2x32x96xbf16, #tpu.memory_space<vmem>>, %arg12: memref<2x1x96xf32, #tpu.memory_space<vmem>>, %arg13: memref<2x32x32xbf16, #tpu.memory_space<vmem>>, %arg14: memref<2x1x32xf32, #tpu.memory_space<vmem>>, %arg15: memref<2x1x32xf32, #tpu.memory_space<vmem>>, %arg16: memref<2x1x32xf32, #tpu.memory_space<vmem>>, %arg17: memref<2x32x64xbf16, #tpu.memory_space<vmem>>, %arg18: memref<2x1x64xf32, #tpu.memory_space<vmem>>, %arg19: memref<2x64x32xbf16, #tpu.memory_space<vmem>>, %arg20: memref<2x1x32xf32, #tpu.memory_space<vmem>>, %arg21: memref<2x1x32xf32, #tpu.memory_space<vmem>>, %arg22: memref<2x1x32xf32, #tpu.memory_space<vmem>>, %arg23: memref<2x16x32xf32, #tpu.memory_space<vmem>>, %arg24: memref<26x4xbf16, #tpu.memory_space<vmem>>, %arg25: memref<26x32xbf16, #tpu.memory_space<vmem>>) attributes {dimension_semantics = [#tpu.dimension_semantics<parallel>], iteration_bounds = array<i64: 1>, scalar_prefetch = 0 : i64, scratch_operands = 2 : i64, tpu.core_type = #tpu.core_type<tc>, window_params = [{transform_indices = @transform_0, window_bounds = array<i64: 2, 16, 4>}, {transform_indices = @transform_1, window_bounds = array<i64: 2, 1, 16>}, {pipeline_mode = #tpu.pipeline_mode<synchronous>, transform_indices = @transform_2, window_bounds = array<i64: 44, 32>}, {pipeline_mode = #tpu.pipeline_mode<synchronous>, transform_indices = @transform_3, window_bounds = array<i64: 1, 32>}, {pipeline_mode = #tpu.pipeline_mode<synchronous>, transform_indices = @transform_4, window_bounds = array<i64: 352, 32>}, {pipeline_mode = #tpu.pipeline_mode<synchronous>, transform_indices = @transform_5, window_bounds = array<i64: 1, 32>}, {pipeline_mode = #tpu.pipeline_mode<synchronous>, transform_indices = @transform_6, window_bounds = array<i64: 352, 32>}, {pipeline_mode = #tpu.pipeline_mode<synchronous>, transform_indices = @transform_7, window_bounds = array<i64: 1, 32>}, {pipeline_mode = #tpu.pipeline_mode<synchronous>, transform_indices = @transform_8, window_bounds = array<i64: 1, 32>}, {pipeline_mode = #tpu.pipeline_mode<synchronous>, transform_indices = @transform_9, window_bounds = array<i64: 1, 32>}, {pipeline_mode = #tpu.pipeline_mode<synchronous>, transform_indices = @transform_10, window_bounds = array<i64: 2, 32, 96>}, {pipeline_mode = #tpu.pipeline_mode<synchronous>, transform_indices = @transform_11, window_bounds = array<i64: 2, 1, 96>}, {pipeline_mode = #tpu.pipeline_mode<synchronous>, transform_indices = @transform_12, window_bounds = array<i64: 2, 32, 32>}, {pipeline_mode = #tpu.pipeline_mode<synchronous>, transform_indices = @transform_13, window_bounds = array<i64: 2, 1, 32>}, {pipeline_mode = #tpu.pipeline_mode<synchronous>, transform_indices = @transform_14, window_bounds = array<i64: 2, 1, 32>}, {pipeline_mode = #tpu.pipeline_mode<synchronous>, transform_indices = @transform_15, window_bounds = array<i64: 2, 1, 32>}, {pipeline_mode = #tpu.pipeline_mode<synchronous>, transform_indices = @transform_16, window_bounds = array<i64: 2, 32, 64>}, {pipeline_mode = #tpu.pipeline_mode<synchronous>, transform_indices = @transform_17, window_bounds = array<i64: 2, 1, 64>}, {pipeline_mode = #tpu.pipeline_mode<synchronous>, transform_indices = @transform_18, window_bounds = array<i64: 2, 64, 32>}, {pipeline_mode = #tpu.pipeline_mode<synchronous>, transform_indices = @transform_19, window_bounds = array<i64: 2, 1, 32>}, {pipeline_mode = #tpu.pipeline_mode<synchronous>, transform_indices = @transform_20, window_bounds = array<i64: 2, 1, 32>}, {pipeline_mode = #tpu.pipeline_mode<synchronous>, transform_indices = @transform_21, window_bounds = array<i64: 2, 1, 32>}, {transform_indices = @transform_22, window_bounds = array<i64: 2, 16, 32>}]} {
    %cst = arith.constant 0.000000e+00 : bf16
    %0 = vector.broadcast %cst : bf16 to vector<5x4xbf16>
    %c0 = arith.constant 0 : index
    %c0_0 = arith.constant 0 : index
    %1 = vector.load %arg24[%c0, %c0_0] : memref<26x4xbf16, #tpu.memory_space<vmem>>, vector<5x4xbf16>
    tpu.vector_store %arg24[%c0, %c0_0], %0 {strides = array<i32>} : memref<26x4xbf16, #tpu.memory_space<vmem>>, vector<5x4xbf16>,
    %c21 = arith.constant 21 : index
    %c0_1 = arith.constant 0 : index
    %2 = vector.load %arg24[%c21, %c0_1] : memref<26x4xbf16, #tpu.memory_space<vmem>>, vector<5x4xbf16>
    tpu.vector_store %arg24[%c21, %c0_1], %0 {strides = array<i32>} : memref<26x4xbf16, #tpu.memory_space<vmem>>, vector<5x4xbf16>,
    %cst_2 = arith.constant 0.000000e+00 : bf16
    %3 = vector.broadcast %cst_2 : bf16 to vector<5x32xbf16>
    %c0_3 = arith.constant 0 : index
    %c0_4 = arith.constant 0 : index
    %4 = vector.load %arg25[%c0_3, %c0_4] : memref<26x32xbf16, #tpu.memory_space<vmem>>, vector<5x32xbf16>
    tpu.vector_store %arg25[%c0_3, %c0_4], %3 {strides = array<i32>} : memref<26x32xbf16, #tpu.memory_space<vmem>>, vector<5x32xbf16>,
    %c21_5 = arith.constant 21 : index
    %c0_6 = arith.constant 0 : index
    %5 = vector.load %arg25[%c21_5, %c0_6] : memref<26x32xbf16, #tpu.memory_space<vmem>>, vector<5x32xbf16>
    tpu.vector_store %arg25[%c21_5, %c0_6], %3 {strides = array<i32>} : memref<26x32xbf16, #tpu.memory_space<vmem>>, vector<5x32xbf16>,
    %c0_7 = arith.constant 0 : index
    %c0_8 = arith.constant 0 : index
    %c0_9 = arith.constant 0 : index
    %6 = vector.load %arg1[%c0_7, %c0_8, %c0_9] : memref<2x16x4xf32, #tpu.memory_space<vmem>>, vector<1x16x4xf32>
    %7 = vector.shape_cast %6 : vector<1x16x4xf32> to vector<16x4xf32>
    %c0_10 = arith.constant 0 : index
    %c0_11 = arith.constant 0 : index
    %8 = vector.load %arg3[%c0_10, %c0_11] : memref<44x32xbf16, #tpu.memory_space<vmem>>, vector<44x32xbf16>
    %c0_12 = arith.constant 0 : index
    %c0_13 = arith.constant 0 : index
    %9 = vector.load %arg4[%c0_12, %c0_13] : memref<1x32xf32, #tpu.memory_space<vmem>>, vector<1x32xf32>
    %10 = arith.truncf %7 : vector<16x4xf32> to vector<16x4xbf16>
    %c5 = arith.constant 5 : index
    %c0_14 = arith.constant 0 : index
    %11 = vector.load %arg24[%c5, %c0_14] : memref<26x4xbf16, #tpu.memory_space<vmem>>, vector<16x4xbf16>
    tpu.vector_store %arg24[%c5, %c0_14], %10 {strides = array<i32>} : memref<26x4xbf16, #tpu.memory_space<vmem>>, vector<16x4xbf16>,
    %c0_15 = arith.constant 0 : index
    %c0_16 = arith.constant 0 : index
    %12 = vector.load %arg24[%c0_15, %c0_16] : memref<26x4xbf16, #tpu.memory_space<vmem>>, vector<26x4xbf16>
    %13 = vector.extract_strided_slice %12 {offsets = [0, 0], sizes = [16, 4], strides = [1, 1]} : vector<26x4xbf16> to vector<16x4xbf16>
    %14 = vector.extract_strided_slice %12 {offsets = [1, 0], sizes = [16, 4], strides = [1, 1]} : vector<26x4xbf16> to vector<16x4xbf16>
    %15 = vector.extract_strided_slice %12 {offsets = [2, 0], sizes = [16, 4], strides = [1, 1]} : vector<26x4xbf16> to vector<16x4xbf16>
    %16 = vector.extract_strided_slice %12 {offsets = [3, 0], sizes = [16, 4], strides = [1, 1]} : vector<26x4xbf16> to vector<16x4xbf16>
    %17 = vector.extract_strided_slice %12 {offsets = [4, 0], sizes = [16, 4], strides = [1, 1]} : vector<26x4xbf16> to vector<16x4xbf16>
    %18 = vector.extract_strided_slice %12 {offsets = [5, 0], sizes = [16, 4], strides = [1, 1]} : vector<26x4xbf16> to vector<16x4xbf16>
    %19 = vector.extract_strided_slice %12 {offsets = [6, 0], sizes = [16, 4], strides = [1, 1]} : vector<26x4xbf16> to vector<16x4xbf16>
    %20 = vector.extract_strided_slice %12 {offsets = [7, 0], sizes = [16, 4], strides = [1, 1]} : vector<26x4xbf16> to vector<16x4xbf16>
    %21 = vector.extract_strided_slice %12 {offsets = [8, 0], sizes = [16, 4], strides = [1, 1]} : vector<26x4xbf16> to vector<16x4xbf16>
    %22 = vector.extract_strided_slice %12 {offsets = [9, 0], sizes = [16, 4], strides = [1, 1]} : vector<26x4xbf16> to vector<16x4xbf16>
    %23 = vector.extract_strided_slice %12 {offsets = [10, 0], sizes = [16, 4], strides = [1, 1]} : vector<26x4xbf16> to vector<16x4xbf16>
    %24 = tpu.concatenate %13, %14, %15, %16, %17, %18, %19, %20, %21, %22, %23 in 1 : vector<16x4xbf16>, vector<16x4xbf16>, vector<16x4xbf16>, vector<16x4xbf16>, vector<16x4xbf16>, vector<16x4xbf16>, vector<16x4xbf16>, vector<16x4xbf16>, vector<16x4xbf16>, vector<16x4xbf16>, vector<16x4xbf16> -> vector<16x44xbf16>
    %cst_17 = arith.constant dense<0.000000e+00> : vector<16x32xf32>
    %25 = tpu.matmul %24, %8, %cst_17 {dimension_numbers = #tpu.dot_dimension_numbers<[1], [0], [0], [1], [0, 0, 1, 1], [], []>} : vector<16x44xbf16>, vector<44x32xbf16>, vector<16x32xf32> -> vector<16x32xf32>
    %26 = vector.broadcast %9 : vector<1x32xf32> to vector<16x32xf32>
    %27 = arith.addf %25, %26 : vector<16x32xf32>
    %cst_18 = arith.constant 0.000000e+00 : f32
    %28 = vector.broadcast %cst_18 : f32 to vector<16x32xf32>
    %29 = arith.maximumf %27, %28 : vector<16x32xf32>
    %c0_19 = arith.constant 0 : index
    %c0_20 = arith.constant 0 : index
    %30 = vector.load %arg5[%c0_19, %c0_20] : memref<352x32xbf16, #tpu.memory_space<vmem>>, vector<352x32xbf16>
    %c0_21 = arith.constant 0 : index
    %c0_22 = arith.constant 0 : index
    %31 = vector.load %arg6[%c0_21, %c0_22] : memref<1x32xf32, #tpu.memory_space<vmem>>, vector<1x32xf32>
    %32 = arith.truncf %29 : vector<16x32xf32> to vector<16x32xbf16>
    %c5_23 = arith.constant 5 : index
    %c0_24 = arith.constant 0 : index
    %33 = vector.load %arg25[%c5_23, %c0_24] : memref<26x32xbf16, #tpu.memory_space<vmem>>, vector<16x32xbf16>
    tpu.vector_store %arg25[%c5_23, %c0_24], %32 {strides = array<i32>} : memref<26x32xbf16, #tpu.memory_space<vmem>>, vector<16x32xbf16>,
    %c0_25 = arith.constant 0 : index
    %c0_26 = arith.constant 0 : index
    %34 = vector.load %arg25[%c0_25, %c0_26] : memref<26x32xbf16, #tpu.memory_space<vmem>>, vector<26x32xbf16>
    %35 = vector.extract_strided_slice %34 {offsets = [0, 0], sizes = [16, 32], strides = [1, 1]} : vector<26x32xbf16> to vector<16x32xbf16>
    %36 = vector.extract_strided_slice %34 {offsets = [1, 0], sizes = [16, 32], strides = [1, 1]} : vector<26x32xbf16> to vector<16x32xbf16>
    %37 = vector.extract_strided_slice %34 {offsets = [2, 0], sizes = [16, 32], strides = [1, 1]} : vector<26x32xbf16> to vector<16x32xbf16>
    %38 = vector.extract_strided_slice %34 {offsets = [3, 0], sizes = [16, 32], strides = [1, 1]} : vector<26x32xbf16> to vector<16x32xbf16>
    %39 = vector.extract_strided_slice %34 {offsets = [4, 0], sizes = [16, 32], strides = [1, 1]} : vector<26x32xbf16> to vector<16x32xbf16>
    %40 = vector.extract_strided_slice %34 {offsets = [5, 0], sizes = [16, 32], strides = [1, 1]} : vector<26x32xbf16> to vector<16x32xbf16>
    %41 = vector.extract_strided_slice %34 {offsets = [6, 0], sizes = [16, 32], strides = [1, 1]} : vector<26x32xbf16> to vector<16x32xbf16>
    %42 = vector.extract_strided_slice %34 {offsets = [7, 0], sizes = [16, 32], strides = [1, 1]} : vector<26x32xbf16> to vector<16x32xbf16>
    %43 = vector.extract_strided_slice %34 {offsets = [8, 0], sizes = [16, 32], strides = [1, 1]} : vector<26x32xbf16> to vector<16x32xbf16>
    %44 = vector.extract_strided_slice %34 {offsets = [9, 0], sizes = [16, 32], strides = [1, 1]} : vector<26x32xbf16> to vector<16x32xbf16>
    %45 = vector.extract_strided_slice %34 {offsets = [10, 0], sizes = [16, 32], strides = [1, 1]} : vector<26x32xbf16> to vector<16x32xbf16>
    %46 = tpu.concatenate %35, %36, %37, %38, %39, %40, %41, %42, %43, %44, %45 in 1 : vector<16x32xbf16>, vector<16x32xbf16>, vector<16x32xbf16>, vector<16x32xbf16>, vector<16x32xbf16>, vector<16x32xbf16>, vector<16x32xbf16>, vector<16x32xbf16>, vector<16x32xbf16>, vector<16x32xbf16>, vector<16x32xbf16> -> vector<16x352xbf16>
    %cst_27 = arith.constant dense<0.000000e+00> : vector<16x32xf32>
    %47 = tpu.matmul %46, %30, %cst_27 {dimension_numbers = #tpu.dot_dimension_numbers<[1], [0], [0], [1], [0, 0, 1, 1], [], []>} : vector<16x352xbf16>, vector<352x32xbf16>, vector<16x32xf32> -> vector<16x32xf32>
    %48 = vector.broadcast %31 : vector<1x32xf32> to vector<16x32xf32>
    %49 = arith.addf %47, %48 : vector<16x32xf32>
    %cst_28 = arith.constant 0.000000e+00 : f32
    %50 = vector.broadcast %cst_28 : f32 to vector<16x32xf32>
    %51 = arith.maximumf %49, %50 : vector<16x32xf32>
    %c0_29 = arith.constant 0 : index
    %c0_30 = arith.constant 0 : index
    %52 = vector.load %arg7[%c0_29, %c0_30] : memref<352x32xbf16, #tpu.memory_space<vmem>>, vector<352x32xbf16>
    %c0_31 = arith.constant 0 : index
    %c0_32 = arith.constant 0 : index
    %53 = vector.load %arg8[%c0_31, %c0_32] : memref<1x32xf32, #tpu.memory_space<vmem>>, vector<1x32xf32>
    %54 = arith.truncf %51 : vector<16x32xf32> to vector<16x32xbf16>
    %c5_33 = arith.constant 5 : index
    %c0_34 = arith.constant 0 : index
    %55 = vector.load %arg25[%c5_33, %c0_34] : memref<26x32xbf16, #tpu.memory_space<vmem>>, vector<16x32xbf16>
    tpu.vector_store %arg25[%c5_33, %c0_34], %54 {strides = array<i32>} : memref<26x32xbf16, #tpu.memory_space<vmem>>, vector<16x32xbf16>,
    %c0_35 = arith.constant 0 : index
    %c0_36 = arith.constant 0 : index
    %56 = vector.load %arg25[%c0_35, %c0_36] : memref<26x32xbf16, #tpu.memory_space<vmem>>, vector<26x32xbf16>
    %57 = vector.extract_strided_slice %56 {offsets = [0, 0], sizes = [16, 32], strides = [1, 1]} : vector<26x32xbf16> to vector<16x32xbf16>
    %58 = vector.extract_strided_slice %56 {offsets = [1, 0], sizes = [16, 32], strides = [1, 1]} : vector<26x32xbf16> to vector<16x32xbf16>
    %59 = vector.extract_strided_slice %56 {offsets = [2, 0], sizes = [16, 32], strides = [1, 1]} : vector<26x32xbf16> to vector<16x32xbf16>
    %60 = vector.extract_strided_slice %56 {offsets = [3, 0], sizes = [16, 32], strides = [1, 1]} : vector<26x32xbf16> to vector<16x32xbf16>
    %61 = vector.extract_strided_slice %56 {offsets = [4, 0], sizes = [16, 32], strides = [1, 1]} : vector<26x32xbf16> to vector<16x32xbf16>
    %62 = vector.extract_strided_slice %56 {offsets = [5, 0], sizes = [16, 32], strides = [1, 1]} : vector<26x32xbf16> to vector<16x32xbf16>
    %63 = vector.extract_strided_slice %56 {offsets = [6, 0], sizes = [16, 32], strides = [1, 1]} : vector<26x32xbf16> to vector<16x32xbf16>
    %64 = vector.extract_strided_slice %56 {offsets = [7, 0], sizes = [16, 32], strides = [1, 1]} : vector<26x32xbf16> to vector<16x32xbf16>
    %65 = vector.extract_strided_slice %56 {offsets = [8, 0], sizes = [16, 32], strides = [1, 1]} : vector<26x32xbf16> to vector<16x32xbf16>
    %66 = vector.extract_strided_slice %56 {offsets = [9, 0], sizes = [16, 32], strides = [1, 1]} : vector<26x32xbf16> to vector<16x32xbf16>
    %67 = vector.extract_strided_slice %56 {offsets = [10, 0], sizes = [16, 32], strides = [1, 1]} : vector<26x32xbf16> to vector<16x32xbf16>
    %68 = tpu.concatenate %57, %58, %59, %60, %61, %62, %63, %64, %65, %66, %67 in 1 : vector<16x32xbf16>, vector<16x32xbf16>, vector<16x32xbf16>, vector<16x32xbf16>, vector<16x32xbf16>, vector<16x32xbf16>, vector<16x32xbf16>, vector<16x32xbf16>, vector<16x32xbf16>, vector<16x32xbf16>, vector<16x32xbf16> -> vector<16x352xbf16>
    %cst_37 = arith.constant dense<0.000000e+00> : vector<16x32xf32>
    %69 = tpu.matmul %68, %52, %cst_37 {dimension_numbers = #tpu.dot_dimension_numbers<[1], [0], [0], [1], [0, 0, 1, 1], [], []>} : vector<16x352xbf16>, vector<352x32xbf16>, vector<16x32xf32> -> vector<16x32xf32>
    %70 = vector.broadcast %53 : vector<1x32xf32> to vector<16x32xf32>
    %71 = arith.addf %69, %70 : vector<16x32xf32>
    %cst_38 = arith.constant 0.000000e+00 : f32
    %72 = vector.broadcast %cst_38 : f32 to vector<16x32xf32>
    %73 = arith.maximumf %71, %72 : vector<16x32xf32>
    %c1 = arith.constant 1 : index
    %c0_39 = arith.constant 0 : index
    %c0_40 = arith.constant 0 : index
    %74 = vector.load %arg1[%c1, %c0_39, %c0_40] : memref<2x16x4xf32, #tpu.memory_space<vmem>>, vector<1x16x4xf32>
    %75 = vector.shape_cast %74 : vector<1x16x4xf32> to vector<16x4xf32>
    %c0_41 = arith.constant 0 : index
    %c0_42 = arith.constant 0 : index
    %76 = vector.load %arg3[%c0_41, %c0_42] : memref<44x32xbf16, #tpu.memory_space<vmem>>, vector<44x32xbf16>
    %c0_43 = arith.constant 0 : index
    %c0_44 = arith.constant 0 : index
    %77 = vector.load %arg4[%c0_43, %c0_44] : memref<1x32xf32, #tpu.memory_space<vmem>>, vector<1x32xf32>
    %78 = arith.truncf %75 : vector<16x4xf32> to vector<16x4xbf16>
    %c5_45 = arith.constant 5 : index
    %c0_46 = arith.constant 0 : index
    %79 = vector.load %arg24[%c5_45, %c0_46] : memref<26x4xbf16, #tpu.memory_space<vmem>>, vector<16x4xbf16>
    tpu.vector_store %arg24[%c5_45, %c0_46], %78 {strides = array<i32>} : memref<26x4xbf16, #tpu.memory_space<vmem>>, vector<16x4xbf16>,
    %c0_47 = arith.constant 0 : index
    %c0_48 = arith.constant 0 : index
    %80 = vector.load %arg24[%c0_47, %c0_48] : memref<26x4xbf16, #tpu.memory_space<vmem>>, vector<26x4xbf16>
    %81 = vector.extract_strided_slice %80 {offsets = [0, 0], sizes = [16, 4], strides = [1, 1]} : vector<26x4xbf16> to vector<16x4xbf16>
    %82 = vector.extract_strided_slice %80 {offsets = [1, 0], sizes = [16, 4], strides = [1, 1]} : vector<26x4xbf16> to vector<16x4xbf16>
    %83 = vector.extract_strided_slice %80 {offsets = [2, 0], sizes = [16, 4], strides = [1, 1]} : vector<26x4xbf16> to vector<16x4xbf16>
    %84 = vector.extract_strided_slice %80 {offsets = [3, 0], sizes = [16, 4], strides = [1, 1]} : vector<26x4xbf16> to vector<16x4xbf16>
    %85 = vector.extract_strided_slice %80 {offsets = [4, 0], sizes = [16, 4], strides = [1, 1]} : vector<26x4xbf16> to vector<16x4xbf16>
    %86 = vector.extract_strided_slice %80 {offsets = [5, 0], sizes = [16, 4], strides = [1, 1]} : vector<26x4xbf16> to vector<16x4xbf16>
    %87 = vector.extract_strided_slice %80 {offsets = [6, 0], sizes = [16, 4], strides = [1, 1]} : vector<26x4xbf16> to vector<16x4xbf16>
    %88 = vector.extract_strided_slice %80 {offsets = [7, 0], sizes = [16, 4], strides = [1, 1]} : vector<26x4xbf16> to vector<16x4xbf16>
    %89 = vector.extract_strided_slice %80 {offsets = [8, 0], sizes = [16, 4], strides = [1, 1]} : vector<26x4xbf16> to vector<16x4xbf16>
    %90 = vector.extract_strided_slice %80 {offsets = [9, 0], sizes = [16, 4], strides = [1, 1]} : vector<26x4xbf16> to vector<16x4xbf16>
    %91 = vector.extract_strided_slice %80 {offsets = [10, 0], sizes = [16, 4], strides = [1, 1]} : vector<26x4xbf16> to vector<16x4xbf16>
    %92 = tpu.concatenate %81, %82, %83, %84, %85, %86, %87, %88, %89, %90, %91 in 1 : vector<16x4xbf16>, vector<16x4xbf16>, vector<16x4xbf16>, vector<16x4xbf16>, vector<16x4xbf16>, vector<16x4xbf16>, vector<16x4xbf16>, vector<16x4xbf16>, vector<16x4xbf16>, vector<16x4xbf16>, vector<16x4xbf16> -> vector<16x44xbf16>
    %cst_49 = arith.constant dense<0.000000e+00> : vector<16x32xf32>
    %93 = tpu.matmul %92, %76, %cst_49 {dimension_numbers = #tpu.dot_dimension_numbers<[1], [0], [0], [1], [0, 0, 1, 1], [], []>} : vector<16x44xbf16>, vector<44x32xbf16>, vector<16x32xf32> -> vector<16x32xf32>
    %94 = vector.broadcast %77 : vector<1x32xf32> to vector<16x32xf32>
    %95 = arith.addf %93, %94 : vector<16x32xf32>
    %cst_50 = arith.constant 0.000000e+00 : f32
    %96 = vector.broadcast %cst_50 : f32 to vector<16x32xf32>
    %97 = arith.maximumf %95, %96 : vector<16x32xf32>
    %c0_51 = arith.constant 0 : index
    %c0_52 = arith.constant 0 : index
    %98 = vector.load %arg5[%c0_51, %c0_52] : memref<352x32xbf16, #tpu.memory_space<vmem>>, vector<352x32xbf16>
    %c0_53 = arith.constant 0 : index
    %c0_54 = arith.constant 0 : index
    %99 = vector.load %arg6[%c0_53, %c0_54] : memref<1x32xf32, #tpu.memory_space<vmem>>, vector<1x32xf32>
    %100 = arith.truncf %97 : vector<16x32xf32> to vector<16x32xbf16>
    %c5_55 = arith.constant 5 : index
    %c0_56 = arith.constant 0 : index
    %101 = vector.load %arg25[%c5_55, %c0_56] : memref<26x32xbf16, #tpu.memory_space<vmem>>, vector<16x32xbf16>
    tpu.vector_store %arg25[%c5_55, %c0_56], %100 {strides = array<i32>} : memref<26x32xbf16, #tpu.memory_space<vmem>>, vector<16x32xbf16>,
    %c0_57 = arith.constant 0 : index
    %c0_58 = arith.constant 0 : index
    %102 = vector.load %arg25[%c0_57, %c0_58] : memref<26x32xbf16, #tpu.memory_space<vmem>>, vector<26x32xbf16>
    %103 = vector.extract_strided_slice %102 {offsets = [0, 0], sizes = [16, 32], strides = [1, 1]} : vector<26x32xbf16> to vector<16x32xbf16>
    %104 = vector.extract_strided_slice %102 {offsets = [1, 0], sizes = [16, 32], strides = [1, 1]} : vector<26x32xbf16> to vector<16x32xbf16>
    %105 = vector.extract_strided_slice %102 {offsets = [2, 0], sizes = [16, 32], strides = [1, 1]} : vector<26x32xbf16> to vector<16x32xbf16>
    %106 = vector.extract_strided_slice %102 {offsets = [3, 0], sizes = [16, 32], strides = [1, 1]} : vector<26x32xbf16> to vector<16x32xbf16>
    %107 = vector.extract_strided_slice %102 {offsets = [4, 0], sizes = [16, 32], strides = [1, 1]} : vector<26x32xbf16> to vector<16x32xbf16>
    %108 = vector.extract_strided_slice %102 {offsets = [5, 0], sizes = [16, 32], strides = [1, 1]} : vector<26x32xbf16> to vector<16x32xbf16>
    %109 = vector.extract_strided_slice %102 {offsets = [6, 0], sizes = [16, 32], strides = [1, 1]} : vector<26x32xbf16> to vector<16x32xbf16>
    %110 = vector.extract_strided_slice %102 {offsets = [7, 0], sizes = [16, 32], strides = [1, 1]} : vector<26x32xbf16> to vector<16x32xbf16>
    %111 = vector.extract_strided_slice %102 {offsets = [8, 0], sizes = [16, 32], strides = [1, 1]} : vector<26x32xbf16> to vector<16x32xbf16>
    %112 = vector.extract_strided_slice %102 {offsets = [9, 0], sizes = [16, 32], strides = [1, 1]} : vector<26x32xbf16> to vector<16x32xbf16>
    %113 = vector.extract_strided_slice %102 {offsets = [10, 0], sizes = [16, 32], strides = [1, 1]} : vector<26x32xbf16> to vector<16x32xbf16>
    %114 = tpu.concatenate %103, %104, %105, %106, %107, %108, %109, %110, %111, %112, %113 in 1 : vector<16x32xbf16>, vector<16x32xbf16>, vector<16x32xbf16>, vector<16x32xbf16>, vector<16x32xbf16>, vector<16x32xbf16>, vector<16x32xbf16>, vector<16x32xbf16>, vector<16x32xbf16>, vector<16x32xbf16>, vector<16x32xbf16> -> vector<16x352xbf16>
    %cst_59 = arith.constant dense<0.000000e+00> : vector<16x32xf32>
    %115 = tpu.matmul %114, %98, %cst_59 {dimension_numbers = #tpu.dot_dimension_numbers<[1], [0], [0], [1], [0, 0, 1, 1], [], []>} : vector<16x352xbf16>, vector<352x32xbf16>, vector<16x32xf32> -> vector<16x32xf32>
    %116 = vector.broadcast %99 : vector<1x32xf32> to vector<16x32xf32>
    %117 = arith.addf %115, %116 : vector<16x32xf32>
    %cst_60 = arith.constant 0.000000e+00 : f32
    %118 = vector.broadcast %cst_60 : f32 to vector<16x32xf32>
    %119 = arith.maximumf %117, %118 : vector<16x32xf32>
    %c0_61 = arith.constant 0 : index
    %c0_62 = arith.constant 0 : index
    %120 = vector.load %arg7[%c0_61, %c0_62] : memref<352x32xbf16, #tpu.memory_space<vmem>>, vector<352x32xbf16>
    %c0_63 = arith.constant 0 : index
    %c0_64 = arith.constant 0 : index
    %121 = vector.load %arg8[%c0_63, %c0_64] : memref<1x32xf32, #tpu.memory_space<vmem>>, vector<1x32xf32>
    %122 = arith.truncf %119 : vector<16x32xf32> to vector<16x32xbf16>
    %c5_65 = arith.constant 5 : index
    %c0_66 = arith.constant 0 : index
    %123 = vector.load %arg25[%c5_65, %c0_66] : memref<26x32xbf16, #tpu.memory_space<vmem>>, vector<16x32xbf16>
    tpu.vector_store %arg25[%c5_65, %c0_66], %122 {strides = array<i32>} : memref<26x32xbf16, #tpu.memory_space<vmem>>, vector<16x32xbf16>,
    %c0_67 = arith.constant 0 : index
    %c0_68 = arith.constant 0 : index
    %124 = vector.load %arg25[%c0_67, %c0_68] : memref<26x32xbf16, #tpu.memory_space<vmem>>, vector<26x32xbf16>
    %125 = vector.extract_strided_slice %124 {offsets = [0, 0], sizes = [16, 32], strides = [1, 1]} : vector<26x32xbf16> to vector<16x32xbf16>
    %126 = vector.extract_strided_slice %124 {offsets = [1, 0], sizes = [16, 32], strides = [1, 1]} : vector<26x32xbf16> to vector<16x32xbf16>
    %127 = vector.extract_strided_slice %124 {offsets = [2, 0], sizes = [16, 32], strides = [1, 1]} : vector<26x32xbf16> to vector<16x32xbf16>
    %128 = vector.extract_strided_slice %124 {offsets = [3, 0], sizes = [16, 32], strides = [1, 1]} : vector<26x32xbf16> to vector<16x32xbf16>
    %129 = vector.extract_strided_slice %124 {offsets = [4, 0], sizes = [16, 32], strides = [1, 1]} : vector<26x32xbf16> to vector<16x32xbf16>
    %130 = vector.extract_strided_slice %124 {offsets = [5, 0], sizes = [16, 32], strides = [1, 1]} : vector<26x32xbf16> to vector<16x32xbf16>
    %131 = vector.extract_strided_slice %124 {offsets = [6, 0], sizes = [16, 32], strides = [1, 1]} : vector<26x32xbf16> to vector<16x32xbf16>
    %132 = vector.extract_strided_slice %124 {offsets = [7, 0], sizes = [16, 32], strides = [1, 1]} : vector<26x32xbf16> to vector<16x32xbf16>
    %133 = vector.extract_strided_slice %124 {offsets = [8, 0], sizes = [16, 32], strides = [1, 1]} : vector<26x32xbf16> to vector<16x32xbf16>
    %134 = vector.extract_strided_slice %124 {offsets = [9, 0], sizes = [16, 32], strides = [1, 1]} : vector<26x32xbf16> to vector<16x32xbf16>
    %135 = vector.extract_strided_slice %124 {offsets = [10, 0], sizes = [16, 32], strides = [1, 1]} : vector<26x32xbf16> to vector<16x32xbf16>
    %136 = tpu.concatenate %125, %126, %127, %128, %129, %130, %131, %132, %133, %134, %135 in 1 : vector<16x32xbf16>, vector<16x32xbf16>, vector<16x32xbf16>, vector<16x32xbf16>, vector<16x32xbf16>, vector<16x32xbf16>, vector<16x32xbf16>, vector<16x32xbf16>, vector<16x32xbf16>, vector<16x32xbf16>, vector<16x32xbf16> -> vector<16x352xbf16>
    %cst_69 = arith.constant dense<0.000000e+00> : vector<16x32xf32>
    %137 = tpu.matmul %136, %120, %cst_69 {dimension_numbers = #tpu.dot_dimension_numbers<[1], [0], [0], [1], [0, 0, 1, 1], [], []>} : vector<16x352xbf16>, vector<352x32xbf16>, vector<16x32xf32> -> vector<16x32xf32>
    %138 = vector.broadcast %121 : vector<1x32xf32> to vector<16x32xf32>
    %139 = arith.addf %137, %138 : vector<16x32xf32>
    %cst_70 = arith.constant 0.000000e+00 : f32
    %140 = vector.broadcast %cst_70 : f32 to vector<16x32xf32>
    %141 = arith.maximumf %139, %140 : vector<16x32xf32>
    %142 = tpu.concatenate %73, %141 in 0 : vector<16x32xf32>, vector<16x32xf32> -> vector<32x32xf32>
    %c0_71 = arith.constant 0 : index
    %c0_72 = arith.constant 0 : index
    %143 = vector.load %arg9[%c0_71, %c0_72] : memref<1x32xf32, #tpu.memory_space<vmem>>, vector<1x32xf32>
    %c0_73 = arith.constant 0 : index
    %c0_74 = arith.constant 0 : index
    %144 = vector.load %arg10[%c0_73, %c0_74] : memref<1x32xf32, #tpu.memory_space<vmem>>, vector<1x32xf32>
    %cst_75 = arith.constant dense<0.000000e+00> : vector<32xf32>
    %145 = vector.multi_reduction <add>, %142, %cst_75 [1] : vector<32x32xf32> to vector<32xf32>
    %146 = vector.shape_cast %145 : vector<32xf32> to vector<32x1xf32>
    %cst_76 = arith.constant 3.200000e+01 : f32
    %147 = vector.broadcast %cst_76 : f32 to vector<32x1xf32>
    %148 = arith.divf %146, %147 : vector<32x1xf32>
    %149 = vector.broadcast %148 : vector<32x1xf32> to vector<32x32xf32>
    %150 = arith.subf %142, %149 : vector<32x32xf32>
    %151 = arith.mulf %150, %150 : vector<32x32xf32>
    %cst_77 = arith.constant dense<0.000000e+00> : vector<32xf32>
    %152 = vector.multi_reduction <add>, %151, %cst_77 [1] : vector<32x32xf32> to vector<32xf32>
    %153 = vector.shape_cast %152 : vector<32xf32> to vector<32x1xf32>
    %cst_78 = arith.constant 3.200000e+01 : f32
    %154 = vector.broadcast %cst_78 : f32 to vector<32x1xf32>
    %155 = arith.divf %153, %154 : vector<32x1xf32>
    %cst_79 = arith.constant 9.99999974E-6 : f32
    %156 = vector.broadcast %cst_79 : f32 to vector<32x1xf32>
    %157 = arith.addf %155, %156 : vector<32x1xf32>
    %158 = math.rsqrt %157 : vector<32x1xf32>
    %159 = vector.broadcast %158 : vector<32x1xf32> to vector<32x32xf32>
    %160 = arith.mulf %150, %159 : vector<32x32xf32>
    %161 = vector.broadcast %143 : vector<1x32xf32> to vector<32x32xf32>
    %162 = arith.mulf %160, %161 : vector<32x32xf32>
    %163 = vector.broadcast %144 : vector<1x32xf32> to vector<32x32xf32>
    %164 = arith.addf %162, %163 : vector<32x32xf32>
    %c0_80 = arith.constant 0 : index
    %c0_81 = arith.constant 0 : index
    %c0_82 = arith.constant 0 : index
    %165 = vector.load %arg2[%c0_80, %c0_81, %c0_82] : memref<2x1x16xf32, #tpu.memory_space<vmem>>, vector<2x1x16xf32>
    %166 = vector.shape_cast %165 : vector<2x1x16xf32> to vector<2x16xf32>
    %cst_83 = arith.constant 5.000000e-01 : f32
    %167 = vector.broadcast %cst_83 : f32 to vector<2x16xf32>
    %168 = arith.cmpf olt, %166, %167 : vector<2x16xf32>
    %cst_84 = arith.constant -1.000000e+10 : f32
    %cst_85 = arith.constant 0.000000e+00 : f32
    %169 = vector.broadcast %cst_84 : f32 to vector<2x16xf32>
    %170 = vector.broadcast %cst_85 : f32 to vector<2x16xf32>
    %171 = arith.select %168, %169, %170 : vector<2x16xi1>, vector<2x16xf32>
    %172 = arith.truncf %164 : vector<32x32xf32> to vector<32x32xbf16>
    %c0_86 = arith.constant 0 : index
    %c0_87 = arith.constant 0 : index
    %c0_88 = arith.constant 0 : index
    %173 = vector.load %arg11[%c0_86, %c0_87, %c0_88] : memref<2x32x96xbf16, #tpu.memory_space<vmem>>, vector<1x32x96xbf16>
    %174 = vector.shape_cast %173 : vector<1x32x96xbf16> to vector<32x96xbf16>
    %cst_89 = arith.constant dense<0.000000e+00> : vector<32x96xf32>
    %175 = tpu.matmul %172, %174, %cst_89 {dimension_numbers = #tpu.dot_dimension_numbers<[1], [0], [0], [1], [0, 0, 1, 1], [], []>} : vector<32x32xbf16>, vector<32x96xbf16>, vector<32x96xf32> -> vector<32x96xf32>
    %c0_90 = arith.constant 0 : index
    %c0_91 = arith.constant 0 : index
    %c0_92 = arith.constant 0 : index
    %176 = vector.load %arg12[%c0_90, %c0_91, %c0_92] : memref<2x1x96xf32, #tpu.memory_space<vmem>>, vector<1x1x96xf32>
    %177 = vector.shape_cast %176 : vector<1x1x96xf32> to vector<1x96xf32>
    %178 = vector.broadcast %177 : vector<1x96xf32> to vector<32x96xf32>
    %179 = arith.addf %175, %178 : vector<32x96xf32>
    %180 = arith.truncf %179 : vector<32x96xf32> to vector<32x96xbf16>
    %181 = vector.extract_strided_slice %171 {offsets = [0, 0], sizes = [1, 16], strides = [1, 1]} : vector<2x16xf32> to vector<1x16xf32>
    %182 = vector.extract_strided_slice %180 {offsets = [0, 0], sizes = [16, 8], strides = [1, 1]} : vector<32x96xbf16> to vector<16x8xbf16>
    %183 = vector.extract_strided_slice %180 {offsets = [0, 32], sizes = [16, 8], strides = [1, 1]} : vector<32x96xbf16> to vector<16x8xbf16>
    %184 = vector.extract_strided_slice %180 {offsets = [0, 64], sizes = [16, 8], strides = [1, 1]} : vector<32x96xbf16> to vector<16x8xbf16>
    "tpu.trace_start"() <{level = 10 : i32, message = "qd,kd->qk"}> : () -> ()
    %cst_93 = arith.constant dense<0.000000e+00> : vector<16x16xf32>
    %185 = tpu.matmul %182, %183, %cst_93 {dimension_numbers = #tpu.dot_dimension_numbers<[1], [1], [0], [0], [0, 0, 1, 0], [], []>} : vector<16x8xbf16>, vector<16x8xbf16>, vector<16x16xf32> -> vector<16x16xf32>
    "tpu.trace_stop"() : () -> ()
    %186 = vector.broadcast %181 : vector<1x16xf32> to vector<16x16xf32>
    %187 = arith.addf %185, %186 : vector<16x16xf32>
    %cst_94 = arith.constant dense<0xFF800000> : vector<16xf32>
    %188 = vector.multi_reduction <maximumf>, %187, %cst_94 [1] : vector<16x16xf32> to vector<16xf32>
    %189 = vector.shape_cast %188 : vector<16xf32> to vector<16x1xf32>
    %190 = vector.broadcast %189 : vector<16x1xf32> to vector<16x16xf32>
    %191 = arith.subf %187, %190 : vector<16x16xf32>
    %192 = math.exp %191 : vector<16x16xf32>
    %cst_95 = arith.constant dense<0.000000e+00> : vector<16xf32>
    %193 = vector.multi_reduction <add>, %192, %cst_95 [1] : vector<16x16xf32> to vector<16xf32>
    %194 = vector.shape_cast %193 : vector<16xf32> to vector<16x1xf32>
    %195 = tpu.reciprocal %194 {approx = true} : vector<16x1xf32> -> vector<16x1xf32>
    %196 = vector.broadcast %195 : vector<16x1xf32> to vector<16x16xf32>
    %197 = arith.mulf %192, %196 : vector<16x16xf32>
    %198 = arith.truncf %197 : vector<16x16xf32> to vector<16x16xbf16>
    %cst_96 = arith.constant dense<0.000000e+00> : vector<16x8xf32>
    %199 = tpu.matmul %198, %184, %cst_96 {dimension_numbers = #tpu.dot_dimension_numbers<[1], [0], [0], [1], [0, 0, 1, 1], [], []>} : vector<16x16xbf16>, vector<16x8xbf16>, vector<16x8xf32> -> vector<16x8xf32>
    %200 = vector.extract_strided_slice %180 {offsets = [0, 8], sizes = [16, 8], strides = [1, 1]} : vector<32x96xbf16> to vector<16x8xbf16>
    %201 = vector.extract_strided_slice %180 {offsets = [0, 40], sizes = [16, 8], strides = [1, 1]} : vector<32x96xbf16> to vector<16x8xbf16>
    %202 = vector.extract_strided_slice %180 {offsets = [0, 72], sizes = [16, 8], strides = [1, 1]} : vector<32x96xbf16> to vector<16x8xbf16>
    "tpu.trace_start"() <{level = 10 : i32, message = "qd,kd->qk"}> : () -> ()
    %cst_97 = arith.constant dense<0.000000e+00> : vector<16x16xf32>
    %203 = tpu.matmul %200, %201, %cst_97 {dimension_numbers = #tpu.dot_dimension_numbers<[1], [1], [0], [0], [0, 0, 1, 0], [], []>} : vector<16x8xbf16>, vector<16x8xbf16>, vector<16x16xf32> -> vector<16x16xf32>
    "tpu.trace_stop"() : () -> ()
    %204 = vector.broadcast %181 : vector<1x16xf32> to vector<16x16xf32>
    %205 = arith.addf %203, %204 : vector<16x16xf32>
    %cst_98 = arith.constant dense<0xFF800000> : vector<16xf32>
    %206 = vector.multi_reduction <maximumf>, %205, %cst_98 [1] : vector<16x16xf32> to vector<16xf32>
    %207 = vector.shape_cast %206 : vector<16xf32> to vector<16x1xf32>
    %208 = vector.broadcast %207 : vector<16x1xf32> to vector<16x16xf32>
    %209 = arith.subf %205, %208 : vector<16x16xf32>
    %210 = math.exp %209 : vector<16x16xf32>
    %cst_99 = arith.constant dense<0.000000e+00> : vector<16xf32>
    %211 = vector.multi_reduction <add>, %210, %cst_99 [1] : vector<16x16xf32> to vector<16xf32>
    %212 = vector.shape_cast %211 : vector<16xf32> to vector<16x1xf32>
    %213 = tpu.reciprocal %212 {approx = true} : vector<16x1xf32> -> vector<16x1xf32>
    %214 = vector.broadcast %213 : vector<16x1xf32> to vector<16x16xf32>
    %215 = arith.mulf %210, %214 : vector<16x16xf32>
    %216 = arith.truncf %215 : vector<16x16xf32> to vector<16x16xbf16>
    %cst_100 = arith.constant dense<0.000000e+00> : vector<16x8xf32>
    %217 = tpu.matmul %216, %202, %cst_100 {dimension_numbers = #tpu.dot_dimension_numbers<[1], [0], [0], [1], [0, 0, 1, 1], [], []>} : vector<16x16xbf16>, vector<16x8xbf16>, vector<16x8xf32> -> vector<16x8xf32>
    %218 = vector.extract_strided_slice %180 {offsets = [0, 16], sizes = [16, 8], strides = [1, 1]} : vector<32x96xbf16> to vector<16x8xbf16>
    %219 = vector.extract_strided_slice %180 {offsets = [0, 48], sizes = [16, 8], strides = [1, 1]} : vector<32x96xbf16> to vector<16x8xbf16>
    %220 = vector.extract_strided_slice %180 {offsets = [0, 80], sizes = [16, 8], strides = [1, 1]} : vector<32x96xbf16> to vector<16x8xbf16>
    "tpu.trace_start"() <{level = 10 : i32, message = "qd,kd->qk"}> : () -> ()
    %cst_101 = arith.constant dense<0.000000e+00> : vector<16x16xf32>
    %221 = tpu.matmul %218, %219, %cst_101 {dimension_numbers = #tpu.dot_dimension_numbers<[1], [1], [0], [0], [0, 0, 1, 0], [], []>} : vector<16x8xbf16>, vector<16x8xbf16>, vector<16x16xf32> -> vector<16x16xf32>
    "tpu.trace_stop"() : () -> ()
    %222 = vector.broadcast %181 : vector<1x16xf32> to vector<16x16xf32>
    %223 = arith.addf %221, %222 : vector<16x16xf32>
    %cst_102 = arith.constant dense<0xFF800000> : vector<16xf32>
    %224 = vector.multi_reduction <maximumf>, %223, %cst_102 [1] : vector<16x16xf32> to vector<16xf32>
    %225 = vector.shape_cast %224 : vector<16xf32> to vector<16x1xf32>
    %226 = vector.broadcast %225 : vector<16x1xf32> to vector<16x16xf32>
    %227 = arith.subf %223, %226 : vector<16x16xf32>
    %228 = math.exp %227 : vector<16x16xf32>
    %cst_103 = arith.constant dense<0.000000e+00> : vector<16xf32>
    %229 = vector.multi_reduction <add>, %228, %cst_103 [1] : vector<16x16xf32> to vector<16xf32>
    %230 = vector.shape_cast %229 : vector<16xf32> to vector<16x1xf32>
    %231 = tpu.reciprocal %230 {approx = true} : vector<16x1xf32> -> vector<16x1xf32>
    %232 = vector.broadcast %231 : vector<16x1xf32> to vector<16x16xf32>
    %233 = arith.mulf %228, %232 : vector<16x16xf32>
    %234 = arith.truncf %233 : vector<16x16xf32> to vector<16x16xbf16>
    %cst_104 = arith.constant dense<0.000000e+00> : vector<16x8xf32>
    %235 = tpu.matmul %234, %220, %cst_104 {dimension_numbers = #tpu.dot_dimension_numbers<[1], [0], [0], [1], [0, 0, 1, 1], [], []>} : vector<16x16xbf16>, vector<16x8xbf16>, vector<16x8xf32> -> vector<16x8xf32>
    %236 = vector.extract_strided_slice %180 {offsets = [0, 24], sizes = [16, 8], strides = [1, 1]} : vector<32x96xbf16> to vector<16x8xbf16>
    %237 = vector.extract_strided_slice %180 {offsets = [0, 56], sizes = [16, 8], strides = [1, 1]} : vector<32x96xbf16> to vector<16x8xbf16>
    %238 = vector.extract_strided_slice %180 {offsets = [0, 88], sizes = [16, 8], strides = [1, 1]} : vector<32x96xbf16> to vector<16x8xbf16>
    "tpu.trace_start"() <{level = 10 : i32, message = "qd,kd->qk"}> : () -> ()
    %cst_105 = arith.constant dense<0.000000e+00> : vector<16x16xf32>
    %239 = tpu.matmul %236, %237, %cst_105 {dimension_numbers = #tpu.dot_dimension_numbers<[1], [1], [0], [0], [0, 0, 1, 0], [], []>} : vector<16x8xbf16>, vector<16x8xbf16>, vector<16x16xf32> -> vector<16x16xf32>
    "tpu.trace_stop"() : () -> ()
    %240 = vector.broadcast %181 : vector<1x16xf32> to vector<16x16xf32>
    %241 = arith.addf %239, %240 : vector<16x16xf32>
    %cst_106 = arith.constant dense<0xFF800000> : vector<16xf32>
    %242 = vector.multi_reduction <maximumf>, %241, %cst_106 [1] : vector<16x16xf32> to vector<16xf32>
    %243 = vector.shape_cast %242 : vector<16xf32> to vector<16x1xf32>
    %244 = vector.broadcast %243 : vector<16x1xf32> to vector<16x16xf32>
    %245 = arith.subf %241, %244 : vector<16x16xf32>
    %246 = math.exp %245 : vector<16x16xf32>
    %cst_107 = arith.constant dense<0.000000e+00> : vector<16xf32>
    %247 = vector.multi_reduction <add>, %246, %cst_107 [1] : vector<16x16xf32> to vector<16xf32>
    %248 = vector.shape_cast %247 : vector<16xf32> to vector<16x1xf32>
    %249 = tpu.reciprocal %248 {approx = true} : vector<16x1xf32> -> vector<16x1xf32>
    %250 = vector.broadcast %249 : vector<16x1xf32> to vector<16x16xf32>
    %251 = arith.mulf %246, %250 : vector<16x16xf32>
    %252 = arith.truncf %251 : vector<16x16xf32> to vector<16x16xbf16>
    %cst_108 = arith.constant dense<0.000000e+00> : vector<16x8xf32>
    %253 = tpu.matmul %252, %238, %cst_108 {dimension_numbers = #tpu.dot_dimension_numbers<[1], [0], [0], [1], [0, 0, 1, 1], [], []>} : vector<16x16xbf16>, vector<16x8xbf16>, vector<16x8xf32> -> vector<16x8xf32>
    %254 = tpu.concatenate %199, %217, %235, %253 in 1 : vector<16x8xf32>, vector<16x8xf32>, vector<16x8xf32>, vector<16x8xf32> -> vector<16x32xf32>
    %255 = vector.extract_strided_slice %171 {offsets = [1, 0], sizes = [1, 16], strides = [1, 1]} : vector<2x16xf32> to vector<1x16xf32>
    %256 = vector.extract_strided_slice %180 {offsets = [16, 0], sizes = [16, 8], strides = [1, 1]} : vector<32x96xbf16> to vector<16x8xbf16>
    %257 = vector.extract_strided_slice %180 {offsets = [16, 32], sizes = [16, 8], strides = [1, 1]} : vector<32x96xbf16> to vector<16x8xbf16>
    %258 = vector.extract_strided_slice %180 {offsets = [16, 64], sizes = [16, 8], strides = [1, 1]} : vector<32x96xbf16> to vector<16x8xbf16>
    "tpu.trace_start"() <{level = 10 : i32, message = "qd,kd->qk"}> : () -> ()
    %cst_109 = arith.constant dense<0.000000e+00> : vector<16x16xf32>
    %259 = tpu.matmul %256, %257, %cst_109 {dimension_numbers = #tpu.dot_dimension_numbers<[1], [1], [0], [0], [0, 0, 1, 0], [], []>} : vector<16x8xbf16>, vector<16x8xbf16>, vector<16x16xf32> -> vector<16x16xf32>
    "tpu.trace_stop"() : () -> ()
    %260 = vector.broadcast %255 : vector<1x16xf32> to vector<16x16xf32>
    %261 = arith.addf %259, %260 : vector<16x16xf32>
    %cst_110 = arith.constant dense<0xFF800000> : vector<16xf32>
    %262 = vector.multi_reduction <maximumf>, %261, %cst_110 [1] : vector<16x16xf32> to vector<16xf32>
    %263 = vector.shape_cast %262 : vector<16xf32> to vector<16x1xf32>
    %264 = vector.broadcast %263 : vector<16x1xf32> to vector<16x16xf32>
    %265 = arith.subf %261, %264 : vector<16x16xf32>
    %266 = math.exp %265 : vector<16x16xf32>
    %cst_111 = arith.constant dense<0.000000e+00> : vector<16xf32>
    %267 = vector.multi_reduction <add>, %266, %cst_111 [1] : vector<16x16xf32> to vector<16xf32>
    %268 = vector.shape_cast %267 : vector<16xf32> to vector<16x1xf32>
    %269 = tpu.reciprocal %268 {approx = true} : vector<16x1xf32> -> vector<16x1xf32>
    %270 = vector.broadcast %269 : vector<16x1xf32> to vector<16x16xf32>
    %271 = arith.mulf %266, %270 : vector<16x16xf32>
    %272 = arith.truncf %271 : vector<16x16xf32> to vector<16x16xbf16>
    %cst_112 = arith.constant dense<0.000000e+00> : vector<16x8xf32>
    %273 = tpu.matmul %272, %258, %cst_112 {dimension_numbers = #tpu.dot_dimension_numbers<[1], [0], [0], [1], [0, 0, 1, 1], [], []>} : vector<16x16xbf16>, vector<16x8xbf16>, vector<16x8xf32> -> vector<16x8xf32>
    %274 = vector.extract_strided_slice %180 {offsets = [16, 8], sizes = [16, 8], strides = [1, 1]} : vector<32x96xbf16> to vector<16x8xbf16>
    %275 = vector.extract_strided_slice %180 {offsets = [16, 40], sizes = [16, 8], strides = [1, 1]} : vector<32x96xbf16> to vector<16x8xbf16>
    %276 = vector.extract_strided_slice %180 {offsets = [16, 72], sizes = [16, 8], strides = [1, 1]} : vector<32x96xbf16> to vector<16x8xbf16>
    "tpu.trace_start"() <{level = 10 : i32, message = "qd,kd->qk"}> : () -> ()
    %cst_113 = arith.constant dense<0.000000e+00> : vector<16x16xf32>
    %277 = tpu.matmul %274, %275, %cst_113 {dimension_numbers = #tpu.dot_dimension_numbers<[1], [1], [0], [0], [0, 0, 1, 0], [], []>} : vector<16x8xbf16>, vector<16x8xbf16>, vector<16x16xf32> -> vector<16x16xf32>
    "tpu.trace_stop"() : () -> ()
    %278 = vector.broadcast %255 : vector<1x16xf32> to vector<16x16xf32>
    %279 = arith.addf %277, %278 : vector<16x16xf32>
    %cst_114 = arith.constant dense<0xFF800000> : vector<16xf32>
    %280 = vector.multi_reduction <maximumf>, %279, %cst_114 [1] : vector<16x16xf32> to vector<16xf32>
    %281 = vector.shape_cast %280 : vector<16xf32> to vector<16x1xf32>
    %282 = vector.broadcast %281 : vector<16x1xf32> to vector<16x16xf32>
    %283 = arith.subf %279, %282 : vector<16x16xf32>
    %284 = math.exp %283 : vector<16x16xf32>
    %cst_115 = arith.constant dense<0.000000e+00> : vector<16xf32>
    %285 = vector.multi_reduction <add>, %284, %cst_115 [1] : vector<16x16xf32> to vector<16xf32>
    %286 = vector.shape_cast %285 : vector<16xf32> to vector<16x1xf32>
    %287 = tpu.reciprocal %286 {approx = true} : vector<16x1xf32> -> vector<16x1xf32>
    %288 = vector.broadcast %287 : vector<16x1xf32> to vector<16x16xf32>
    %289 = arith.mulf %284, %288 : vector<16x16xf32>
    %290 = arith.truncf %289 : vector<16x16xf32> to vector<16x16xbf16>
    %cst_116 = arith.constant dense<0.000000e+00> : vector<16x8xf32>
    %291 = tpu.matmul %290, %276, %cst_116 {dimension_numbers = #tpu.dot_dimension_numbers<[1], [0], [0], [1], [0, 0, 1, 1], [], []>} : vector<16x16xbf16>, vector<16x8xbf16>, vector<16x8xf32> -> vector<16x8xf32>
    %292 = vector.extract_strided_slice %180 {offsets = [16, 16], sizes = [16, 8], strides = [1, 1]} : vector<32x96xbf16> to vector<16x8xbf16>
    %293 = vector.extract_strided_slice %180 {offsets = [16, 48], sizes = [16, 8], strides = [1, 1]} : vector<32x96xbf16> to vector<16x8xbf16>
    %294 = vector.extract_strided_slice %180 {offsets = [16, 80], sizes = [16, 8], strides = [1, 1]} : vector<32x96xbf16> to vector<16x8xbf16>
    "tpu.trace_start"() <{level = 10 : i32, message = "qd,kd->qk"}> : () -> ()
    %cst_117 = arith.constant dense<0.000000e+00> : vector<16x16xf32>
    %295 = tpu.matmul %292, %293, %cst_117 {dimension_numbers = #tpu.dot_dimension_numbers<[1], [1], [0], [0], [0, 0, 1, 0], [], []>} : vector<16x8xbf16>, vector<16x8xbf16>, vector<16x16xf32> -> vector<16x16xf32>
    "tpu.trace_stop"() : () -> ()
    %296 = vector.broadcast %255 : vector<1x16xf32> to vector<16x16xf32>
    %297 = arith.addf %295, %296 : vector<16x16xf32>
    %cst_118 = arith.constant dense<0xFF800000> : vector<16xf32>
    %298 = vector.multi_reduction <maximumf>, %297, %cst_118 [1] : vector<16x16xf32> to vector<16xf32>
    %299 = vector.shape_cast %298 : vector<16xf32> to vector<16x1xf32>
    %300 = vector.broadcast %299 : vector<16x1xf32> to vector<16x16xf32>
    %301 = arith.subf %297, %300 : vector<16x16xf32>
    %302 = math.exp %301 : vector<16x16xf32>
    %cst_119 = arith.constant dense<0.000000e+00> : vector<16xf32>
    %303 = vector.multi_reduction <add>, %302, %cst_119 [1] : vector<16x16xf32> to vector<16xf32>
    %304 = vector.shape_cast %303 : vector<16xf32> to vector<16x1xf32>
    %305 = tpu.reciprocal %304 {approx = true} : vector<16x1xf32> -> vector<16x1xf32>
    %306 = vector.broadcast %305 : vector<16x1xf32> to vector<16x16xf32>
    %307 = arith.mulf %302, %306 : vector<16x16xf32>
    %308 = arith.truncf %307 : vector<16x16xf32> to vector<16x16xbf16>
    %cst_120 = arith.constant dense<0.000000e+00> : vector<16x8xf32>
    %309 = tpu.matmul %308, %294, %cst_120 {dimension_numbers = #tpu.dot_dimension_numbers<[1], [0], [0], [1], [0, 0, 1, 1], [], []>} : vector<16x16xbf16>, vector<16x8xbf16>, vector<16x8xf32> -> vector<16x8xf32>
    %310 = vector.extract_strided_slice %180 {offsets = [16, 24], sizes = [16, 8], strides = [1, 1]} : vector<32x96xbf16> to vector<16x8xbf16>
    %311 = vector.extract_strided_slice %180 {offsets = [16, 56], sizes = [16, 8], strides = [1, 1]} : vector<32x96xbf16> to vector<16x8xbf16>
    %312 = vector.extract_strided_slice %180 {offsets = [16, 88], sizes = [16, 8], strides = [1, 1]} : vector<32x96xbf16> to vector<16x8xbf16>
    "tpu.trace_start"() <{level = 10 : i32, message = "qd,kd->qk"}> : () -> ()
    %cst_121 = arith.constant dense<0.000000e+00> : vector<16x16xf32>
    %313 = tpu.matmul %310, %311, %cst_121 {dimension_numbers = #tpu.dot_dimension_numbers<[1], [1], [0], [0], [0, 0, 1, 0], [], []>} : vector<16x8xbf16>, vector<16x8xbf16>, vector<16x16xf32> -> vector<16x16xf32>
    "tpu.trace_stop"() : () -> ()
    %314 = vector.broadcast %255 : vector<1x16xf32> to vector<16x16xf32>
    %315 = arith.addf %313, %314 : vector<16x16xf32>
    %cst_122 = arith.constant dense<0xFF800000> : vector<16xf32>
    %316 = vector.multi_reduction <maximumf>, %315, %cst_122 [1] : vector<16x16xf32> to vector<16xf32>
    %317 = vector.shape_cast %316 : vector<16xf32> to vector<16x1xf32>
    %318 = vector.broadcast %317 : vector<16x1xf32> to vector<16x16xf32>
    %319 = arith.subf %315, %318 : vector<16x16xf32>
    %320 = math.exp %319 : vector<16x16xf32>
    %cst_123 = arith.constant dense<0.000000e+00> : vector<16xf32>
    %321 = vector.multi_reduction <add>, %320, %cst_123 [1] : vector<16x16xf32> to vector<16xf32>
    %322 = vector.shape_cast %321 : vector<16xf32> to vector<16x1xf32>
    %323 = tpu.reciprocal %322 {approx = true} : vector<16x1xf32> -> vector<16x1xf32>
    %324 = vector.broadcast %323 : vector<16x1xf32> to vector<16x16xf32>
    %325 = arith.mulf %320, %324 : vector<16x16xf32>
    %326 = arith.truncf %325 : vector<16x16xf32> to vector<16x16xbf16>
    %cst_124 = arith.constant dense<0.000000e+00> : vector<16x8xf32>
    %327 = tpu.matmul %326, %312, %cst_124 {dimension_numbers = #tpu.dot_dimension_numbers<[1], [0], [0], [1], [0, 0, 1, 1], [], []>} : vector<16x16xbf16>, vector<16x8xbf16>, vector<16x8xf32> -> vector<16x8xf32>
    %328 = tpu.concatenate %273, %291, %309, %327 in 1 : vector<16x8xf32>, vector<16x8xf32>, vector<16x8xf32>, vector<16x8xf32> -> vector<16x32xf32>
    %329 = tpu.concatenate %254, %328 in 0 : vector<16x32xf32>, vector<16x32xf32> -> vector<32x32xf32>
    %330 = arith.truncf %329 : vector<32x32xf32> to vector<32x32xbf16>
    %c0_125 = arith.constant 0 : index
    %c0_126 = arith.constant 0 : index
    %c0_127 = arith.constant 0 : index
    %331 = vector.load %arg13[%c0_125, %c0_126, %c0_127] : memref<2x32x32xbf16, #tpu.memory_space<vmem>>, vector<1x32x32xbf16>
    %332 = vector.shape_cast %331 : vector<1x32x32xbf16> to vector<32x32xbf16>
    %cst_128 = arith.constant dense<0.000000e+00> : vector<32x32xf32>
    %333 = tpu.matmul %330, %332, %cst_128 {dimension_numbers = #tpu.dot_dimension_numbers<[1], [0], [0], [1], [0, 0, 1, 1], [], []>} : vector<32x32xbf16>, vector<32x32xbf16>, vector<32x32xf32> -> vector<32x32xf32>
    %c0_129 = arith.constant 0 : index
    %c0_130 = arith.constant 0 : index
    %c0_131 = arith.constant 0 : index
    %334 = vector.load %arg14[%c0_129, %c0_130, %c0_131] : memref<2x1x32xf32, #tpu.memory_space<vmem>>, vector<1x1x32xf32>
    %335 = vector.shape_cast %334 : vector<1x1x32xf32> to vector<1x32xf32>
    %336 = vector.broadcast %335 : vector<1x32xf32> to vector<32x32xf32>
    %337 = arith.addf %333, %336 : vector<32x32xf32>
    %338 = arith.addf %337, %164 : vector<32x32xf32>
    %c0_132 = arith.constant 0 : index
    %c0_133 = arith.constant 0 : index
    %c0_134 = arith.constant 0 : index
    %339 = vector.load %arg15[%c0_132, %c0_133, %c0_134] : memref<2x1x32xf32, #tpu.memory_space<vmem>>, vector<1x1x32xf32>
    %340 = vector.shape_cast %339 : vector<1x1x32xf32> to vector<1x32xf32>
    %c0_135 = arith.constant 0 : index
    %c0_136 = arith.constant 0 : index
    %c0_137 = arith.constant 0 : index
    %341 = vector.load %arg16[%c0_135, %c0_136, %c0_137] : memref<2x1x32xf32, #tpu.memory_space<vmem>>, vector<1x1x32xf32>
    %342 = vector.shape_cast %341 : vector<1x1x32xf32> to vector<1x32xf32>
    %cst_138 = arith.constant dense<0.000000e+00> : vector<32xf32>
    %343 = vector.multi_reduction <add>, %338, %cst_138 [1] : vector<32x32xf32> to vector<32xf32>
    %344 = vector.shape_cast %343 : vector<32xf32> to vector<32x1xf32>
    %cst_139 = arith.constant 3.200000e+01 : f32
    %345 = vector.broadcast %cst_139 : f32 to vector<32x1xf32>
    %346 = arith.divf %344, %345 : vector<32x1xf32>
    %347 = vector.broadcast %346 : vector<32x1xf32> to vector<32x32xf32>
    %348 = arith.subf %338, %347 : vector<32x32xf32>
    %349 = arith.mulf %348, %348 : vector<32x32xf32>
    %cst_140 = arith.constant dense<0.000000e+00> : vector<32xf32>
    %350 = vector.multi_reduction <add>, %349, %cst_140 [1] : vector<32x32xf32> to vector<32xf32>
    %351 = vector.shape_cast %350 : vector<32xf32> to vector<32x1xf32>
    %cst_141 = arith.constant 3.200000e+01 : f32
    %352 = vector.broadcast %cst_141 : f32 to vector<32x1xf32>
    %353 = arith.divf %351, %352 : vector<32x1xf32>
    %cst_142 = arith.constant 9.99999974E-6 : f32
    %354 = vector.broadcast %cst_142 : f32 to vector<32x1xf32>
    %355 = arith.addf %353, %354 : vector<32x1xf32>
    %356 = math.rsqrt %355 : vector<32x1xf32>
    %357 = vector.broadcast %356 : vector<32x1xf32> to vector<32x32xf32>
    %358 = arith.mulf %348, %357 : vector<32x32xf32>
    %359 = vector.broadcast %340 : vector<1x32xf32> to vector<32x32xf32>
    %360 = arith.mulf %358, %359 : vector<32x32xf32>
    %361 = vector.broadcast %342 : vector<1x32xf32> to vector<32x32xf32>
    %362 = arith.addf %360, %361 : vector<32x32xf32>
    %363 = arith.truncf %362 : vector<32x32xf32> to vector<32x32xbf16>
    %c0_143 = arith.constant 0 : index
    %c0_144 = arith.constant 0 : index
    %c0_145 = arith.constant 0 : index
    %364 = vector.load %arg17[%c0_143, %c0_144, %c0_145] : memref<2x32x64xbf16, #tpu.memory_space<vmem>>, vector<1x32x64xbf16>
    %365 = vector.shape_cast %364 : vector<1x32x64xbf16> to vector<32x64xbf16>
    %cst_146 = arith.constant dense<0.000000e+00> : vector<32x64xf32>
    %366 = tpu.matmul %363, %365, %cst_146 {dimension_numbers = #tpu.dot_dimension_numbers<[1], [0], [0], [1], [0, 0, 1, 1], [], []>} : vector<32x32xbf16>, vector<32x64xbf16>, vector<32x64xf32> -> vector<32x64xf32>
    %c0_147 = arith.constant 0 : index
    %c0_148 = arith.constant 0 : index
    %c0_149 = arith.constant 0 : index
    %367 = vector.load %arg18[%c0_147, %c0_148, %c0_149] : memref<2x1x64xf32, #tpu.memory_space<vmem>>, vector<1x1x64xf32>
    %368 = vector.shape_cast %367 : vector<1x1x64xf32> to vector<1x64xf32>
    %369 = vector.broadcast %368 : vector<1x64xf32> to vector<32x64xf32>
    %370 = arith.addf %366, %369 : vector<32x64xf32>
    %cst_150 = arith.constant 0.000000e+00 : f32
    %371 = vector.broadcast %cst_150 : f32 to vector<32x64xf32>
    %372 = arith.maximumf %370, %371 : vector<32x64xf32>
    %373 = arith.truncf %372 : vector<32x64xf32> to vector<32x64xbf16>
    %c0_151 = arith.constant 0 : index
    %c0_152 = arith.constant 0 : index
    %c0_153 = arith.constant 0 : index
    %374 = vector.load %arg19[%c0_151, %c0_152, %c0_153] : memref<2x64x32xbf16, #tpu.memory_space<vmem>>, vector<1x64x32xbf16>
    %375 = vector.shape_cast %374 : vector<1x64x32xbf16> to vector<64x32xbf16>
    %cst_154 = arith.constant dense<0.000000e+00> : vector<32x32xf32>
    %376 = tpu.matmul %373, %375, %cst_154 {dimension_numbers = #tpu.dot_dimension_numbers<[1], [0], [0], [1], [0, 0, 1, 1], [], []>} : vector<32x64xbf16>, vector<64x32xbf16>, vector<32x32xf32> -> vector<32x32xf32>
    %c0_155 = arith.constant 0 : index
    %c0_156 = arith.constant 0 : index
    %c0_157 = arith.constant 0 : index
    %377 = vector.load %arg20[%c0_155, %c0_156, %c0_157] : memref<2x1x32xf32, #tpu.memory_space<vmem>>, vector<1x1x32xf32>
    %378 = vector.shape_cast %377 : vector<1x1x32xf32> to vector<1x32xf32>
    %379 = vector.broadcast %378 : vector<1x32xf32> to vector<32x32xf32>
    %380 = arith.addf %376, %379 : vector<32x32xf32>
    %381 = arith.addf %380, %362 : vector<32x32xf32>
    %c0_158 = arith.constant 0 : index
    %c0_159 = arith.constant 0 : index
    %c0_160 = arith.constant 0 : index
    %382 = vector.load %arg21[%c0_158, %c0_159, %c0_160] : memref<2x1x32xf32, #tpu.memory_space<vmem>>, vector<1x1x32xf32>
    %383 = vector.shape_cast %382 : vector<1x1x32xf32> to vector<1x32xf32>
    %c0_161 = arith.constant 0 : index
    %c0_162 = arith.constant 0 : index
    %c0_163 = arith.constant 0 : index
    %384 = vector.load %arg22[%c0_161, %c0_162, %c0_163] : memref<2x1x32xf32, #tpu.memory_space<vmem>>, vector<1x1x32xf32>
    %385 = vector.shape_cast %384 : vector<1x1x32xf32> to vector<1x32xf32>
    %cst_164 = arith.constant dense<0.000000e+00> : vector<32xf32>
    %386 = vector.multi_reduction <add>, %381, %cst_164 [1] : vector<32x32xf32> to vector<32xf32>
    %387 = vector.shape_cast %386 : vector<32xf32> to vector<32x1xf32>
    %cst_165 = arith.constant 3.200000e+01 : f32
    %388 = vector.broadcast %cst_165 : f32 to vector<32x1xf32>
    %389 = arith.divf %387, %388 : vector<32x1xf32>
    %390 = vector.broadcast %389 : vector<32x1xf32> to vector<32x32xf32>
    %391 = arith.subf %381, %390 : vector<32x32xf32>
    %392 = arith.mulf %391, %391 : vector<32x32xf32>
    %cst_166 = arith.constant dense<0.000000e+00> : vector<32xf32>
    %393 = vector.multi_reduction <add>, %392, %cst_166 [1] : vector<32x32xf32> to vector<32xf32>
    %394 = vector.shape_cast %393 : vector<32xf32> to vector<32x1xf32>
    %cst_167 = arith.constant 3.200000e+01 : f32
    %395 = vector.broadcast %cst_167 : f32 to vector<32x1xf32>
    %396 = arith.divf %394, %395 : vector<32x1xf32>
    %cst_168 = arith.constant 9.99999974E-6 : f32
    %397 = vector.broadcast %cst_168 : f32 to vector<32x1xf32>
    %398 = arith.addf %396, %397 : vector<32x1xf32>
    %399 = math.rsqrt %398 : vector<32x1xf32>
    %400 = vector.broadcast %399 : vector<32x1xf32> to vector<32x32xf32>
    %401 = arith.mulf %391, %400 : vector<32x32xf32>
    %402 = vector.broadcast %383 : vector<1x32xf32> to vector<32x32xf32>
    %403 = arith.mulf %401, %402 : vector<32x32xf32>
    %404 = vector.broadcast %385 : vector<1x32xf32> to vector<32x32xf32>
    %405 = arith.addf %403, %404 : vector<32x32xf32>
    %406 = arith.truncf %405 : vector<32x32xf32> to vector<32x32xbf16>
    %c1_169 = arith.constant 1 : index
    %c0_170 = arith.constant 0 : index
    %c0_171 = arith.constant 0 : index
    %407 = vector.load %arg11[%c1_169, %c0_170, %c0_171] : memref<2x32x96xbf16, #tpu.memory_space<vmem>>, vector<1x32x96xbf16>
    %408 = vector.shape_cast %407 : vector<1x32x96xbf16> to vector<32x96xbf16>
    %cst_172 = arith.constant dense<0.000000e+00> : vector<32x96xf32>
    %409 = tpu.matmul %406, %408, %cst_172 {dimension_numbers = #tpu.dot_dimension_numbers<[1], [0], [0], [1], [0, 0, 1, 1], [], []>} : vector<32x32xbf16>, vector<32x96xbf16>, vector<32x96xf32> -> vector<32x96xf32>
    %c1_173 = arith.constant 1 : index
    %c0_174 = arith.constant 0 : index
    %c0_175 = arith.constant 0 : index
    %410 = vector.load %arg12[%c1_173, %c0_174, %c0_175] : memref<2x1x96xf32, #tpu.memory_space<vmem>>, vector<1x1x96xf32>
    %411 = vector.shape_cast %410 : vector<1x1x96xf32> to vector<1x96xf32>
    %412 = vector.broadcast %411 : vector<1x96xf32> to vector<32x96xf32>
    %413 = arith.addf %409, %412 : vector<32x96xf32>
    %414 = arith.truncf %413 : vector<32x96xf32> to vector<32x96xbf16>
    %415 = vector.extract_strided_slice %171 {offsets = [0, 0], sizes = [1, 16], strides = [1, 1]} : vector<2x16xf32> to vector<1x16xf32>
    %416 = vector.extract_strided_slice %414 {offsets = [0, 0], sizes = [16, 8], strides = [1, 1]} : vector<32x96xbf16> to vector<16x8xbf16>
    %417 = vector.extract_strided_slice %414 {offsets = [0, 32], sizes = [16, 8], strides = [1, 1]} : vector<32x96xbf16> to vector<16x8xbf16>
    %418 = vector.extract_strided_slice %414 {offsets = [0, 64], sizes = [16, 8], strides = [1, 1]} : vector<32x96xbf16> to vector<16x8xbf16>
    "tpu.trace_start"() <{level = 10 : i32, message = "qd,kd->qk"}> : () -> ()
    %cst_176 = arith.constant dense<0.000000e+00> : vector<16x16xf32>
    %419 = tpu.matmul %416, %417, %cst_176 {dimension_numbers = #tpu.dot_dimension_numbers<[1], [1], [0], [0], [0, 0, 1, 0], [], []>} : vector<16x8xbf16>, vector<16x8xbf16>, vector<16x16xf32> -> vector<16x16xf32>
    "tpu.trace_stop"() : () -> ()
    %420 = vector.broadcast %415 : vector<1x16xf32> to vector<16x16xf32>
    %421 = arith.addf %419, %420 : vector<16x16xf32>
    %cst_177 = arith.constant dense<0xFF800000> : vector<16xf32>
    %422 = vector.multi_reduction <maximumf>, %421, %cst_177 [1] : vector<16x16xf32> to vector<16xf32>
    %423 = vector.shape_cast %422 : vector<16xf32> to vector<16x1xf32>
    %424 = vector.broadcast %423 : vector<16x1xf32> to vector<16x16xf32>
    %425 = arith.subf %421, %424 : vector<16x16xf32>
    %426 = math.exp %425 : vector<16x16xf32>
    %cst_178 = arith.constant dense<0.000000e+00> : vector<16xf32>
    %427 = vector.multi_reduction <add>, %426, %cst_178 [1] : vector<16x16xf32> to vector<16xf32>
    %428 = vector.shape_cast %427 : vector<16xf32> to vector<16x1xf32>
    %429 = tpu.reciprocal %428 {approx = true} : vector<16x1xf32> -> vector<16x1xf32>
    %430 = vector.broadcast %429 : vector<16x1xf32> to vector<16x16xf32>
    %431 = arith.mulf %426, %430 : vector<16x16xf32>
    %432 = arith.truncf %431 : vector<16x16xf32> to vector<16x16xbf16>
    %cst_179 = arith.constant dense<0.000000e+00> : vector<16x8xf32>
    %433 = tpu.matmul %432, %418, %cst_179 {dimension_numbers = #tpu.dot_dimension_numbers<[1], [0], [0], [1], [0, 0, 1, 1], [], []>} : vector<16x16xbf16>, vector<16x8xbf16>, vector<16x8xf32> -> vector<16x8xf32>
    %434 = vector.extract_strided_slice %414 {offsets = [0, 8], sizes = [16, 8], strides = [1, 1]} : vector<32x96xbf16> to vector<16x8xbf16>
    %435 = vector.extract_strided_slice %414 {offsets = [0, 40], sizes = [16, 8], strides = [1, 1]} : vector<32x96xbf16> to vector<16x8xbf16>
    %436 = vector.extract_strided_slice %414 {offsets = [0, 72], sizes = [16, 8], strides = [1, 1]} : vector<32x96xbf16> to vector<16x8xbf16>
    "tpu.trace_start"() <{level = 10 : i32, message = "qd,kd->qk"}> : () -> ()
    %cst_180 = arith.constant dense<0.000000e+00> : vector<16x16xf32>
    %437 = tpu.matmul %434, %435, %cst_180 {dimension_numbers = #tpu.dot_dimension_numbers<[1], [1], [0], [0], [0, 0, 1, 0], [], []>} : vector<16x8xbf16>, vector<16x8xbf16>, vector<16x16xf32> -> vector<16x16xf32>
    "tpu.trace_stop"() : () -> ()
    %438 = vector.broadcast %415 : vector<1x16xf32> to vector<16x16xf32>
    %439 = arith.addf %437, %438 : vector<16x16xf32>
    %cst_181 = arith.constant dense<0xFF800000> : vector<16xf32>
    %440 = vector.multi_reduction <maximumf>, %439, %cst_181 [1] : vector<16x16xf32> to vector<16xf32>
    %441 = vector.shape_cast %440 : vector<16xf32> to vector<16x1xf32>
    %442 = vector.broadcast %441 : vector<16x1xf32> to vector<16x16xf32>
    %443 = arith.subf %439, %442 : vector<16x16xf32>
    %444 = math.exp %443 : vector<16x16xf32>
    %cst_182 = arith.constant dense<0.000000e+00> : vector<16xf32>
    %445 = vector.multi_reduction <add>, %444, %cst_182 [1] : vector<16x16xf32> to vector<16xf32>
    %446 = vector.shape_cast %445 : vector<16xf32> to vector<16x1xf32>
    %447 = tpu.reciprocal %446 {approx = true} : vector<16x1xf32> -> vector<16x1xf32>
    %448 = vector.broadcast %447 : vector<16x1xf32> to vector<16x16xf32>
    %449 = arith.mulf %444, %448 : vector<16x16xf32>
    %450 = arith.truncf %449 : vector<16x16xf32> to vector<16x16xbf16>
    %cst_183 = arith.constant dense<0.000000e+00> : vector<16x8xf32>
    %451 = tpu.matmul %450, %436, %cst_183 {dimension_numbers = #tpu.dot_dimension_numbers<[1], [0], [0], [1], [0, 0, 1, 1], [], []>} : vector<16x16xbf16>, vector<16x8xbf16>, vector<16x8xf32> -> vector<16x8xf32>
    %452 = vector.extract_strided_slice %414 {offsets = [0, 16], sizes = [16, 8], strides = [1, 1]} : vector<32x96xbf16> to vector<16x8xbf16>
    %453 = vector.extract_strided_slice %414 {offsets = [0, 48], sizes = [16, 8], strides = [1, 1]} : vector<32x96xbf16> to vector<16x8xbf16>
    %454 = vector.extract_strided_slice %414 {offsets = [0, 80], sizes = [16, 8], strides = [1, 1]} : vector<32x96xbf16> to vector<16x8xbf16>
    "tpu.trace_start"() <{level = 10 : i32, message = "qd,kd->qk"}> : () -> ()
    %cst_184 = arith.constant dense<0.000000e+00> : vector<16x16xf32>
    %455 = tpu.matmul %452, %453, %cst_184 {dimension_numbers = #tpu.dot_dimension_numbers<[1], [1], [0], [0], [0, 0, 1, 0], [], []>} : vector<16x8xbf16>, vector<16x8xbf16>, vector<16x16xf32> -> vector<16x16xf32>
    "tpu.trace_stop"() : () -> ()
    %456 = vector.broadcast %415 : vector<1x16xf32> to vector<16x16xf32>
    %457 = arith.addf %455, %456 : vector<16x16xf32>
    %cst_185 = arith.constant dense<0xFF800000> : vector<16xf32>
    %458 = vector.multi_reduction <maximumf>, %457, %cst_185 [1] : vector<16x16xf32> to vector<16xf32>
    %459 = vector.shape_cast %458 : vector<16xf32> to vector<16x1xf32>
    %460 = vector.broadcast %459 : vector<16x1xf32> to vector<16x16xf32>
    %461 = arith.subf %457, %460 : vector<16x16xf32>
    %462 = math.exp %461 : vector<16x16xf32>
    %cst_186 = arith.constant dense<0.000000e+00> : vector<16xf32>
    %463 = vector.multi_reduction <add>, %462, %cst_186 [1] : vector<16x16xf32> to vector<16xf32>
    %464 = vector.shape_cast %463 : vector<16xf32> to vector<16x1xf32>
    %465 = tpu.reciprocal %464 {approx = true} : vector<16x1xf32> -> vector<16x1xf32>
    %466 = vector.broadcast %465 : vector<16x1xf32> to vector<16x16xf32>
    %467 = arith.mulf %462, %466 : vector<16x16xf32>
    %468 = arith.truncf %467 : vector<16x16xf32> to vector<16x16xbf16>
    %cst_187 = arith.constant dense<0.000000e+00> : vector<16x8xf32>
    %469 = tpu.matmul %468, %454, %cst_187 {dimension_numbers = #tpu.dot_dimension_numbers<[1], [0], [0], [1], [0, 0, 1, 1], [], []>} : vector<16x16xbf16>, vector<16x8xbf16>, vector<16x8xf32> -> vector<16x8xf32>
    %470 = vector.extract_strided_slice %414 {offsets = [0, 24], sizes = [16, 8], strides = [1, 1]} : vector<32x96xbf16> to vector<16x8xbf16>
    %471 = vector.extract_strided_slice %414 {offsets = [0, 56], sizes = [16, 8], strides = [1, 1]} : vector<32x96xbf16> to vector<16x8xbf16>
    %472 = vector.extract_strided_slice %414 {offsets = [0, 88], sizes = [16, 8], strides = [1, 1]} : vector<32x96xbf16> to vector<16x8xbf16>
    "tpu.trace_start"() <{level = 10 : i32, message = "qd,kd->qk"}> : () -> ()
    %cst_188 = arith.constant dense<0.000000e+00> : vector<16x16xf32>
    %473 = tpu.matmul %470, %471, %cst_188 {dimension_numbers = #tpu.dot_dimension_numbers<[1], [1], [0], [0], [0, 0, 1, 0], [], []>} : vector<16x8xbf16>, vector<16x8xbf16>, vector<16x16xf32> -> vector<16x16xf32>
    "tpu.trace_stop"() : () -> ()
    %474 = vector.broadcast %415 : vector<1x16xf32> to vector<16x16xf32>
    %475 = arith.addf %473, %474 : vector<16x16xf32>
    %cst_189 = arith.constant dense<0xFF800000> : vector<16xf32>
    %476 = vector.multi_reduction <maximumf>, %475, %cst_189 [1] : vector<16x16xf32> to vector<16xf32>
    %477 = vector.shape_cast %476 : vector<16xf32> to vector<16x1xf32>
    %478 = vector.broadcast %477 : vector<16x1xf32> to vector<16x16xf32>
    %479 = arith.subf %475, %478 : vector<16x16xf32>
    %480 = math.exp %479 : vector<16x16xf32>
    %cst_190 = arith.constant dense<0.000000e+00> : vector<16xf32>
    %481 = vector.multi_reduction <add>, %480, %cst_190 [1] : vector<16x16xf32> to vector<16xf32>
    %482 = vector.shape_cast %481 : vector<16xf32> to vector<16x1xf32>
    %483 = tpu.reciprocal %482 {approx = true} : vector<16x1xf32> -> vector<16x1xf32>
    %484 = vector.broadcast %483 : vector<16x1xf32> to vector<16x16xf32>
    %485 = arith.mulf %480, %484 : vector<16x16xf32>
    %486 = arith.truncf %485 : vector<16x16xf32> to vector<16x16xbf16>
    %cst_191 = arith.constant dense<0.000000e+00> : vector<16x8xf32>
    %487 = tpu.matmul %486, %472, %cst_191 {dimension_numbers = #tpu.dot_dimension_numbers<[1], [0], [0], [1], [0, 0, 1, 1], [], []>} : vector<16x16xbf16>, vector<16x8xbf16>, vector<16x8xf32> -> vector<16x8xf32>
    %488 = tpu.concatenate %433, %451, %469, %487 in 1 : vector<16x8xf32>, vector<16x8xf32>, vector<16x8xf32>, vector<16x8xf32> -> vector<16x32xf32>
    %489 = vector.extract_strided_slice %171 {offsets = [1, 0], sizes = [1, 16], strides = [1, 1]} : vector<2x16xf32> to vector<1x16xf32>
    %490 = vector.extract_strided_slice %414 {offsets = [16, 0], sizes = [16, 8], strides = [1, 1]} : vector<32x96xbf16> to vector<16x8xbf16>
    %491 = vector.extract_strided_slice %414 {offsets = [16, 32], sizes = [16, 8], strides = [1, 1]} : vector<32x96xbf16> to vector<16x8xbf16>
    %492 = vector.extract_strided_slice %414 {offsets = [16, 64], sizes = [16, 8], strides = [1, 1]} : vector<32x96xbf16> to vector<16x8xbf16>
    "tpu.trace_start"() <{level = 10 : i32, message = "qd,kd->qk"}> : () -> ()
    %cst_192 = arith.constant dense<0.000000e+00> : vector<16x16xf32>
    %493 = tpu.matmul %490, %491, %cst_192 {dimension_numbers = #tpu.dot_dimension_numbers<[1], [1], [0], [0], [0, 0, 1, 0], [], []>} : vector<16x8xbf16>, vector<16x8xbf16>, vector<16x16xf32> -> vector<16x16xf32>
    "tpu.trace_stop"() : () -> ()
    %494 = vector.broadcast %489 : vector<1x16xf32> to vector<16x16xf32>
    %495 = arith.addf %493, %494 : vector<16x16xf32>
    %cst_193 = arith.constant dense<0xFF800000> : vector<16xf32>
    %496 = vector.multi_reduction <maximumf>, %495, %cst_193 [1] : vector<16x16xf32> to vector<16xf32>
    %497 = vector.shape_cast %496 : vector<16xf32> to vector<16x1xf32>
    %498 = vector.broadcast %497 : vector<16x1xf32> to vector<16x16xf32>
    %499 = arith.subf %495, %498 : vector<16x16xf32>
    %500 = math.exp %499 : vector<16x16xf32>
    %cst_194 = arith.constant dense<0.000000e+00> : vector<16xf32>
    %501 = vector.multi_reduction <add>, %500, %cst_194 [1] : vector<16x16xf32> to vector<16xf32>
    %502 = vector.shape_cast %501 : vector<16xf32> to vector<16x1xf32>
    %503 = tpu.reciprocal %502 {approx = true} : vector<16x1xf32> -> vector<16x1xf32>
    %504 = vector.broadcast %503 : vector<16x1xf32> to vector<16x16xf32>
    %505 = arith.mulf %500, %504 : vector<16x16xf32>
    %506 = arith.truncf %505 : vector<16x16xf32> to vector<16x16xbf16>
    %cst_195 = arith.constant dense<0.000000e+00> : vector<16x8xf32>
    %507 = tpu.matmul %506, %492, %cst_195 {dimension_numbers = #tpu.dot_dimension_numbers<[1], [0], [0], [1], [0, 0, 1, 1], [], []>} : vector<16x16xbf16>, vector<16x8xbf16>, vector<16x8xf32> -> vector<16x8xf32>
    %508 = vector.extract_strided_slice %414 {offsets = [16, 8], sizes = [16, 8], strides = [1, 1]} : vector<32x96xbf16> to vector<16x8xbf16>
    %509 = vector.extract_strided_slice %414 {offsets = [16, 40], sizes = [16, 8], strides = [1, 1]} : vector<32x96xbf16> to vector<16x8xbf16>
    %510 = vector.extract_strided_slice %414 {offsets = [16, 72], sizes = [16, 8], strides = [1, 1]} : vector<32x96xbf16> to vector<16x8xbf16>
    "tpu.trace_start"() <{level = 10 : i32, message = "qd,kd->qk"}> : () -> ()
    %cst_196 = arith.constant dense<0.000000e+00> : vector<16x16xf32>
    %511 = tpu.matmul %508, %509, %cst_196 {dimension_numbers = #tpu.dot_dimension_numbers<[1], [1], [0], [0], [0, 0, 1, 0], [], []>} : vector<16x8xbf16>, vector<16x8xbf16>, vector<16x16xf32> -> vector<16x16xf32>
    "tpu.trace_stop"() : () -> ()
    %512 = vector.broadcast %489 : vector<1x16xf32> to vector<16x16xf32>
    %513 = arith.addf %511, %512 : vector<16x16xf32>
    %cst_197 = arith.constant dense<0xFF800000> : vector<16xf32>
    %514 = vector.multi_reduction <maximumf>, %513, %cst_197 [1] : vector<16x16xf32> to vector<16xf32>
    %515 = vector.shape_cast %514 : vector<16xf32> to vector<16x1xf32>
    %516 = vector.broadcast %515 : vector<16x1xf32> to vector<16x16xf32>
    %517 = arith.subf %513, %516 : vector<16x16xf32>
    %518 = math.exp %517 : vector<16x16xf32>
    %cst_198 = arith.constant dense<0.000000e+00> : vector<16xf32>
    %519 = vector.multi_reduction <add>, %518, %cst_198 [1] : vector<16x16xf32> to vector<16xf32>
    %520 = vector.shape_cast %519 : vector<16xf32> to vector<16x1xf32>
    %521 = tpu.reciprocal %520 {approx = true} : vector<16x1xf32> -> vector<16x1xf32>
    %522 = vector.broadcast %521 : vector<16x1xf32> to vector<16x16xf32>
    %523 = arith.mulf %518, %522 : vector<16x16xf32>
    %524 = arith.truncf %523 : vector<16x16xf32> to vector<16x16xbf16>
    %cst_199 = arith.constant dense<0.000000e+00> : vector<16x8xf32>
    %525 = tpu.matmul %524, %510, %cst_199 {dimension_numbers = #tpu.dot_dimension_numbers<[1], [0], [0], [1], [0, 0, 1, 1], [], []>} : vector<16x16xbf16>, vector<16x8xbf16>, vector<16x8xf32> -> vector<16x8xf32>
    %526 = vector.extract_strided_slice %414 {offsets = [16, 16], sizes = [16, 8], strides = [1, 1]} : vector<32x96xbf16> to vector<16x8xbf16>
    %527 = vector.extract_strided_slice %414 {offsets = [16, 48], sizes = [16, 8], strides = [1, 1]} : vector<32x96xbf16> to vector<16x8xbf16>
    %528 = vector.extract_strided_slice %414 {offsets = [16, 80], sizes = [16, 8], strides = [1, 1]} : vector<32x96xbf16> to vector<16x8xbf16>
    "tpu.trace_start"() <{level = 10 : i32, message = "qd,kd->qk"}> : () -> ()
    %cst_200 = arith.constant dense<0.000000e+00> : vector<16x16xf32>
    %529 = tpu.matmul %526, %527, %cst_200 {dimension_numbers = #tpu.dot_dimension_numbers<[1], [1], [0], [0], [0, 0, 1, 0], [], []>} : vector<16x8xbf16>, vector<16x8xbf16>, vector<16x16xf32> -> vector<16x16xf32>
    "tpu.trace_stop"() : () -> ()
    %530 = vector.broadcast %489 : vector<1x16xf32> to vector<16x16xf32>
    %531 = arith.addf %529, %530 : vector<16x16xf32>
    %cst_201 = arith.constant dense<0xFF800000> : vector<16xf32>
    %532 = vector.multi_reduction <maximumf>, %531, %cst_201 [1] : vector<16x16xf32> to vector<16xf32>
    %533 = vector.shape_cast %532 : vector<16xf32> to vector<16x1xf32>
    %534 = vector.broadcast %533 : vector<16x1xf32> to vector<16x16xf32>
    %535 = arith.subf %531, %534 : vector<16x16xf32>
    %536 = math.exp %535 : vector<16x16xf32>
    %cst_202 = arith.constant dense<0.000000e+00> : vector<16xf32>
    %537 = vector.multi_reduction <add>, %536, %cst_202 [1] : vector<16x16xf32> to vector<16xf32>
    %538 = vector.shape_cast %537 : vector<16xf32> to vector<16x1xf32>
    %539 = tpu.reciprocal %538 {approx = true} : vector<16x1xf32> -> vector<16x1xf32>
    %540 = vector.broadcast %539 : vector<16x1xf32> to vector<16x16xf32>
    %541 = arith.mulf %536, %540 : vector<16x16xf32>
    %542 = arith.truncf %541 : vector<16x16xf32> to vector<16x16xbf16>
    %cst_203 = arith.constant dense<0.000000e+00> : vector<16x8xf32>
    %543 = tpu.matmul %542, %528, %cst_203 {dimension_numbers = #tpu.dot_dimension_numbers<[1], [0], [0], [1], [0, 0, 1, 1], [], []>} : vector<16x16xbf16>, vector<16x8xbf16>, vector<16x8xf32> -> vector<16x8xf32>
    %544 = vector.extract_strided_slice %414 {offsets = [16, 24], sizes = [16, 8], strides = [1, 1]} : vector<32x96xbf16> to vector<16x8xbf16>
    %545 = vector.extract_strided_slice %414 {offsets = [16, 56], sizes = [16, 8], strides = [1, 1]} : vector<32x96xbf16> to vector<16x8xbf16>
    %546 = vector.extract_strided_slice %414 {offsets = [16, 88], sizes = [16, 8], strides = [1, 1]} : vector<32x96xbf16> to vector<16x8xbf16>
    "tpu.trace_start"() <{level = 10 : i32, message = "qd,kd->qk"}> : () -> ()
    %cst_204 = arith.constant dense<0.000000e+00> : vector<16x16xf32>
    %547 = tpu.matmul %544, %545, %cst_204 {dimension_numbers = #tpu.dot_dimension_numbers<[1], [1], [0], [0], [0, 0, 1, 0], [], []>} : vector<16x8xbf16>, vector<16x8xbf16>, vector<16x16xf32> -> vector<16x16xf32>
    "tpu.trace_stop"() : () -> ()
    %548 = vector.broadcast %489 : vector<1x16xf32> to vector<16x16xf32>
    %549 = arith.addf %547, %548 : vector<16x16xf32>
    %cst_205 = arith.constant dense<0xFF800000> : vector<16xf32>
    %550 = vector.multi_reduction <maximumf>, %549, %cst_205 [1] : vector<16x16xf32> to vector<16xf32>
    %551 = vector.shape_cast %550 : vector<16xf32> to vector<16x1xf32>
    %552 = vector.broadcast %551 : vector<16x1xf32> to vector<16x16xf32>
    %553 = arith.subf %549, %552 : vector<16x16xf32>
    %554 = math.exp %553 : vector<16x16xf32>
    %cst_206 = arith.constant dense<0.000000e+00> : vector<16xf32>
    %555 = vector.multi_reduction <add>, %554, %cst_206 [1] : vector<16x16xf32> to vector<16xf32>
    %556 = vector.shape_cast %555 : vector<16xf32> to vector<16x1xf32>
    %557 = tpu.reciprocal %556 {approx = true} : vector<16x1xf32> -> vector<16x1xf32>
    %558 = vector.broadcast %557 : vector<16x1xf32> to vector<16x16xf32>
    %559 = arith.mulf %554, %558 : vector<16x16xf32>
    %560 = arith.truncf %559 : vector<16x16xf32> to vector<16x16xbf16>
    %cst_207 = arith.constant dense<0.000000e+00> : vector<16x8xf32>
    %561 = tpu.matmul %560, %546, %cst_207 {dimension_numbers = #tpu.dot_dimension_numbers<[1], [0], [0], [1], [0, 0, 1, 1], [], []>} : vector<16x16xbf16>, vector<16x8xbf16>, vector<16x8xf32> -> vector<16x8xf32>
    %562 = tpu.concatenate %507, %525, %543, %561 in 1 : vector<16x8xf32>, vector<16x8xf32>, vector<16x8xf32>, vector<16x8xf32> -> vector<16x32xf32>
    %563 = tpu.concatenate %488, %562 in 0 : vector<16x32xf32>, vector<16x32xf32> -> vector<32x32xf32>
    %564 = arith.truncf %563 : vector<32x32xf32> to vector<32x32xbf16>
    %c1_208 = arith.constant 1 : index
    %c0_209 = arith.constant 0 : index
    %c0_210 = arith.constant 0 : index
    %565 = vector.load %arg13[%c1_208, %c0_209, %c0_210] : memref<2x32x32xbf16, #tpu.memory_space<vmem>>, vector<1x32x32xbf16>
    %566 = vector.shape_cast %565 : vector<1x32x32xbf16> to vector<32x32xbf16>
    %cst_211 = arith.constant dense<0.000000e+00> : vector<32x32xf32>
    %567 = tpu.matmul %564, %566, %cst_211 {dimension_numbers = #tpu.dot_dimension_numbers<[1], [0], [0], [1], [0, 0, 1, 1], [], []>} : vector<32x32xbf16>, vector<32x32xbf16>, vector<32x32xf32> -> vector<32x32xf32>
    %c1_212 = arith.constant 1 : index
    %c0_213 = arith.constant 0 : index
    %c0_214 = arith.constant 0 : index
    %568 = vector.load %arg14[%c1_212, %c0_213, %c0_214] : memref<2x1x32xf32, #tpu.memory_space<vmem>>, vector<1x1x32xf32>
    %569 = vector.shape_cast %568 : vector<1x1x32xf32> to vector<1x32xf32>
    %570 = vector.broadcast %569 : vector<1x32xf32> to vector<32x32xf32>
    %571 = arith.addf %567, %570 : vector<32x32xf32>
    %572 = arith.addf %571, %405 : vector<32x32xf32>
    %c1_215 = arith.constant 1 : index
    %c0_216 = arith.constant 0 : index
    %c0_217 = arith.constant 0 : index
    %573 = vector.load %arg15[%c1_215, %c0_216, %c0_217] : memref<2x1x32xf32, #tpu.memory_space<vmem>>, vector<1x1x32xf32>
    %574 = vector.shape_cast %573 : vector<1x1x32xf32> to vector<1x32xf32>
    %c1_218 = arith.constant 1 : index
    %c0_219 = arith.constant 0 : index
    %c0_220 = arith.constant 0 : index
    %575 = vector.load %arg16[%c1_218, %c0_219, %c0_220] : memref<2x1x32xf32, #tpu.memory_space<vmem>>, vector<1x1x32xf32>
    %576 = vector.shape_cast %575 : vector<1x1x32xf32> to vector<1x32xf32>
    %cst_221 = arith.constant dense<0.000000e+00> : vector<32xf32>
    %577 = vector.multi_reduction <add>, %572, %cst_221 [1] : vector<32x32xf32> to vector<32xf32>
    %578 = vector.shape_cast %577 : vector<32xf32> to vector<32x1xf32>
    %cst_222 = arith.constant 3.200000e+01 : f32
    %579 = vector.broadcast %cst_222 : f32 to vector<32x1xf32>
    %580 = arith.divf %578, %579 : vector<32x1xf32>
    %581 = vector.broadcast %580 : vector<32x1xf32> to vector<32x32xf32>
    %582 = arith.subf %572, %581 : vector<32x32xf32>
    %583 = arith.mulf %582, %582 : vector<32x32xf32>
    %cst_223 = arith.constant dense<0.000000e+00> : vector<32xf32>
    %584 = vector.multi_reduction <add>, %583, %cst_223 [1] : vector<32x32xf32> to vector<32xf32>
    %585 = vector.shape_cast %584 : vector<32xf32> to vector<32x1xf32>
    %cst_224 = arith.constant 3.200000e+01 : f32
    %586 = vector.broadcast %cst_224 : f32 to vector<32x1xf32>
    %587 = arith.divf %585, %586 : vector<32x1xf32>
    %cst_225 = arith.constant 9.99999974E-6 : f32
    %588 = vector.broadcast %cst_225 : f32 to vector<32x1xf32>
    %589 = arith.addf %587, %588 : vector<32x1xf32>
    %590 = math.rsqrt %589 : vector<32x1xf32>
    %591 = vector.broadcast %590 : vector<32x1xf32> to vector<32x32xf32>
    %592 = arith.mulf %582, %591 : vector<32x32xf32>
    %593 = vector.broadcast %574 : vector<1x32xf32> to vector<32x32xf32>
    %594 = arith.mulf %592, %593 : vector<32x32xf32>
    %595 = vector.broadcast %576 : vector<1x32xf32> to vector<32x32xf32>
    %596 = arith.addf %594, %595 : vector<32x32xf32>
    %597 = arith.truncf %596 : vector<32x32xf32> to vector<32x32xbf16>
    %c1_226 = arith.constant 1 : index
    %c0_227 = arith.constant 0 : index
    %c0_228 = arith.constant 0 : index
    %598 = vector.load %arg17[%c1_226, %c0_227, %c0_228] : memref<2x32x64xbf16, #tpu.memory_space<vmem>>, vector<1x32x64xbf16>
    %599 = vector.shape_cast %598 : vector<1x32x64xbf16> to vector<32x64xbf16>
    %cst_229 = arith.constant dense<0.000000e+00> : vector<32x64xf32>
    %600 = tpu.matmul %597, %599, %cst_229 {dimension_numbers = #tpu.dot_dimension_numbers<[1], [0], [0], [1], [0, 0, 1, 1], [], []>} : vector<32x32xbf16>, vector<32x64xbf16>, vector<32x64xf32> -> vector<32x64xf32>
    %c1_230 = arith.constant 1 : index
    %c0_231 = arith.constant 0 : index
    %c0_232 = arith.constant 0 : index
    %601 = vector.load %arg18[%c1_230, %c0_231, %c0_232] : memref<2x1x64xf32, #tpu.memory_space<vmem>>, vector<1x1x64xf32>
    %602 = vector.shape_cast %601 : vector<1x1x64xf32> to vector<1x64xf32>
    %603 = vector.broadcast %602 : vector<1x64xf32> to vector<32x64xf32>
    %604 = arith.addf %600, %603 : vector<32x64xf32>
    %cst_233 = arith.constant 0.000000e+00 : f32
    %605 = vector.broadcast %cst_233 : f32 to vector<32x64xf32>
    %606 = arith.maximumf %604, %605 : vector<32x64xf32>
    %607 = arith.truncf %606 : vector<32x64xf32> to vector<32x64xbf16>
    %c1_234 = arith.constant 1 : index
    %c0_235 = arith.constant 0 : index
    %c0_236 = arith.constant 0 : index
    %608 = vector.load %arg19[%c1_234, %c0_235, %c0_236] : memref<2x64x32xbf16, #tpu.memory_space<vmem>>, vector<1x64x32xbf16>
    %609 = vector.shape_cast %608 : vector<1x64x32xbf16> to vector<64x32xbf16>
    %cst_237 = arith.constant dense<0.000000e+00> : vector<32x32xf32>
    %610 = tpu.matmul %607, %609, %cst_237 {dimension_numbers = #tpu.dot_dimension_numbers<[1], [0], [0], [1], [0, 0, 1, 1], [], []>} : vector<32x64xbf16>, vector<64x32xbf16>, vector<32x32xf32> -> vector<32x32xf32>
    %c1_238 = arith.constant 1 : index
    %c0_239 = arith.constant 0 : index
    %c0_240 = arith.constant 0 : index
    %611 = vector.load %arg20[%c1_238, %c0_239, %c0_240] : memref<2x1x32xf32, #tpu.memory_space<vmem>>, vector<1x1x32xf32>
    %612 = vector.shape_cast %611 : vector<1x1x32xf32> to vector<1x32xf32>
    %613 = vector.broadcast %612 : vector<1x32xf32> to vector<32x32xf32>
    %614 = arith.addf %610, %613 : vector<32x32xf32>
    %615 = arith.addf %614, %596 : vector<32x32xf32>
    %c1_241 = arith.constant 1 : index
    %c0_242 = arith.constant 0 : index
    %c0_243 = arith.constant 0 : index
    %616 = vector.load %arg21[%c1_241, %c0_242, %c0_243] : memref<2x1x32xf32, #tpu.memory_space<vmem>>, vector<1x1x32xf32>
    %617 = vector.shape_cast %616 : vector<1x1x32xf32> to vector<1x32xf32>
    %c1_244 = arith.constant 1 : index
    %c0_245 = arith.constant 0 : index
    %c0_246 = arith.constant 0 : index
    %618 = vector.load %arg22[%c1_244, %c0_245, %c0_246] : memref<2x1x32xf32, #tpu.memory_space<vmem>>, vector<1x1x32xf32>
    %619 = vector.shape_cast %618 : vector<1x1x32xf32> to vector<1x32xf32>
    %cst_247 = arith.constant dense<0.000000e+00> : vector<32xf32>
    %620 = vector.multi_reduction <add>, %615, %cst_247 [1] : vector<32x32xf32> to vector<32xf32>
    %621 = vector.shape_cast %620 : vector<32xf32> to vector<32x1xf32>
    %cst_248 = arith.constant 3.200000e+01 : f32
    %622 = vector.broadcast %cst_248 : f32 to vector<32x1xf32>
    %623 = arith.divf %621, %622 : vector<32x1xf32>
    %624 = vector.broadcast %623 : vector<32x1xf32> to vector<32x32xf32>
    %625 = arith.subf %615, %624 : vector<32x32xf32>
    %626 = arith.mulf %625, %625 : vector<32x32xf32>
    %cst_249 = arith.constant dense<0.000000e+00> : vector<32xf32>
    %627 = vector.multi_reduction <add>, %626, %cst_249 [1] : vector<32x32xf32> to vector<32xf32>
    %628 = vector.shape_cast %627 : vector<32xf32> to vector<32x1xf32>
    %cst_250 = arith.constant 3.200000e+01 : f32
    %629 = vector.broadcast %cst_250 : f32 to vector<32x1xf32>
    %630 = arith.divf %628, %629 : vector<32x1xf32>
    %cst_251 = arith.constant 9.99999974E-6 : f32
    %631 = vector.broadcast %cst_251 : f32 to vector<32x1xf32>
    %632 = arith.addf %630, %631 : vector<32x1xf32>
    %633 = math.rsqrt %632 : vector<32x1xf32>
    %634 = vector.broadcast %633 : vector<32x1xf32> to vector<32x32xf32>
    %635 = arith.mulf %625, %634 : vector<32x32xf32>
    %636 = vector.broadcast %617 : vector<1x32xf32> to vector<32x32xf32>
    %637 = arith.mulf %635, %636 : vector<32x32xf32>
    %638 = vector.broadcast %619 : vector<1x32xf32> to vector<32x32xf32>
    %639 = arith.addf %637, %638 : vector<32x32xf32>
    %640 = vector.shape_cast %639 : vector<32x32xf32> to vector<2x16x32xf32>
    %c0_252 = arith.constant 0 : index
    %c0_253 = arith.constant 0 : index
    %c0_254 = arith.constant 0 : index
    %641 = vector.load %arg23[%c0_252, %c0_253, %c0_254] : memref<2x16x32xf32, #tpu.memory_space<vmem>>, vector<2x16x32xf32>
    tpu.vector_store %arg23[%c0_252, %c0_253, %c0_254], %640 {strides = array<i32>} : memref<2x16x32xf32, #tpu.memory_space<vmem>>, vector<2x16x32xf32>,
    return
  }
  func.func @transform_0(%arg0: i32) -> (i32, i32, i32) {
    %c0_i32 = arith.constant 0 : i32
    %c0_i32_0 = arith.constant 0 : i32
    %c0_i32_1 = arith.constant 0 : i32
    return %arg0, %c0_i32, %c0_i32_0 : i32, i32, i32
  }
  func.func @transform_1(%arg0: i32) -> (i32, i32, i32) {
    %c0_i32 = arith.constant 0 : i32
    %c0_i32_0 = arith.constant 0 : i32
    %c0_i32_1 = arith.constant 0 : i32
    return %arg0, %c0_i32, %c0_i32_0 : i32, i32, i32
  }
  func.func @transform_2(%arg0: i32) -> (i32, i32) {
    %c0_i32 = arith.constant 0 : i32
    %c0_i32_0 = arith.constant 0 : i32
    %c0_i32_1 = arith.constant 0 : i32
    return %c0_i32, %c0_i32_0 : i32, i32
  }
  func.func @transform_3(%arg0: i32) -> (i32, i32) {
    %c0_i32 = arith.constant 0 : i32
    %c0_i32_0 = arith.constant 0 : i32
    %c0_i32_1 = arith.constant 0 : i32
    return %c0_i32, %c0_i32_0 : i32, i32
  }
  func.func @transform_4(%arg0: i32) -> (i32, i32) {
    %c0_i32 = arith.constant 0 : i32
    %c0_i32_0 = arith.constant 0 : i32
    %c0_i32_1 = arith.constant 0 : i32
    return %c0_i32, %c0_i32_0 : i32, i32
  }
  func.func @transform_5(%arg0: i32) -> (i32, i32) {
    %c0_i32 = arith.constant 0 : i32
    %c0_i32_0 = arith.constant 0 : i32
    %c0_i32_1 = arith.constant 0 : i32
    return %c0_i32, %c0_i32_0 : i32, i32
  }
  func.func @transform_6(%arg0: i32) -> (i32, i32) {
    %c0_i32 = arith.constant 0 : i32
    %c0_i32_0 = arith.constant 0 : i32
    %c0_i32_1 = arith.constant 0 : i32
    return %c0_i32, %c0_i32_0 : i32, i32
  }
  func.func @transform_7(%arg0: i32) -> (i32, i32) {
    %c0_i32 = arith.constant 0 : i32
    %c0_i32_0 = arith.constant 0 : i32
    %c0_i32_1 = arith.constant 0 : i32
    return %c0_i32, %c0_i32_0 : i32, i32
  }
  func.func @transform_8(%arg0: i32) -> (i32, i32) {
    %c0_i32 = arith.constant 0 : i32
    %c0_i32_0 = arith.constant 0 : i32
    %c0_i32_1 = arith.constant 0 : i32
    return %c0_i32, %c0_i32_0 : i32, i32
  }
  func.func @transform_9(%arg0: i32) -> (i32, i32) {
    %c0_i32 = arith.constant 0 : i32
    %c0_i32_0 = arith.constant 0 : i32
    %c0_i32_1 = arith.constant 0 : i32
    return %c0_i32, %c0_i32_0 : i32, i32
  }
  func.func @transform_10(%arg0: i32) -> (i32, i32, i32) {
    %c0_i32 = arith.constant 0 : i32
    %c0_i32_0 = arith.constant 0 : i32
    %c0_i32_1 = arith.constant 0 : i32
    %c0_i32_2 = arith.constant 0 : i32
    return %c0_i32, %c0_i32_0, %c0_i32_1 : i32, i32, i32
  }
  func.func @transform_11(%arg0: i32) -> (i32, i32, i32) {
    %c0_i32 = arith.constant 0 : i32
    %c0_i32_0 = arith.constant 0 : i32
    %c0_i32_1 = arith.constant 0 : i32
    %c0_i32_2 = arith.constant 0 : i32
    return %c0_i32, %c0_i32_0, %c0_i32_1 : i32, i32, i32
  }
  func.func @transform_12(%arg0: i32) -> (i32, i32, i32) {
    %c0_i32 = arith.constant 0 : i32
    %c0_i32_0 = arith.constant 0 : i32
    %c0_i32_1 = arith.constant 0 : i32
    %c0_i32_2 = arith.constant 0 : i32
    return %c0_i32, %c0_i32_0, %c0_i32_1 : i32, i32, i32
  }
  func.func @transform_13(%arg0: i32) -> (i32, i32, i32) {
    %c0_i32 = arith.constant 0 : i32
    %c0_i32_0 = arith.constant 0 : i32
    %c0_i32_1 = arith.constant 0 : i32
    %c0_i32_2 = arith.constant 0 : i32
    return %c0_i32, %c0_i32_0, %c0_i32_1 : i32, i32, i32
  }
  func.func @transform_14(%arg0: i32) -> (i32, i32, i32) {
    %c0_i32 = arith.constant 0 : i32
    %c0_i32_0 = arith.constant 0 : i32
    %c0_i32_1 = arith.constant 0 : i32
    %c0_i32_2 = arith.constant 0 : i32
    return %c0_i32, %c0_i32_0, %c0_i32_1 : i32, i32, i32
  }
  func.func @transform_15(%arg0: i32) -> (i32, i32, i32) {
    %c0_i32 = arith.constant 0 : i32
    %c0_i32_0 = arith.constant 0 : i32
    %c0_i32_1 = arith.constant 0 : i32
    %c0_i32_2 = arith.constant 0 : i32
    return %c0_i32, %c0_i32_0, %c0_i32_1 : i32, i32, i32
  }
  func.func @transform_16(%arg0: i32) -> (i32, i32, i32) {
    %c0_i32 = arith.constant 0 : i32
    %c0_i32_0 = arith.constant 0 : i32
    %c0_i32_1 = arith.constant 0 : i32
    %c0_i32_2 = arith.constant 0 : i32
    return %c0_i32, %c0_i32_0, %c0_i32_1 : i32, i32, i32
  }
  func.func @transform_17(%arg0: i32) -> (i32, i32, i32) {
    %c0_i32 = arith.constant 0 : i32
    %c0_i32_0 = arith.constant 0 : i32
    %c0_i32_1 = arith.constant 0 : i32
    %c0_i32_2 = arith.constant 0 : i32
    return %c0_i32, %c0_i32_0, %c0_i32_1 : i32, i32, i32
  }
  func.func @transform_18(%arg0: i32) -> (i32, i32, i32) {
    %c0_i32 = arith.constant 0 : i32
    %c0_i32_0 = arith.constant 0 : i32
    %c0_i32_1 = arith.constant 0 : i32
    %c0_i32_2 = arith.constant 0 : i32
    return %c0_i32, %c0_i32_0, %c0_i32_1 : i32, i32, i32
  }
  func.func @transform_19(%arg0: i32) -> (i32, i32, i32) {
    %c0_i32 = arith.constant 0 : i32
    %c0_i32_0 = arith.constant 0 : i32
    %c0_i32_1 = arith.constant 0 : i32
    %c0_i32_2 = arith.constant 0 : i32
    return %c0_i32, %c0_i32_0, %c0_i32_1 : i32, i32, i32
  }
  func.func @transform_20(%arg0: i32) -> (i32, i32, i32) {
    %c0_i32 = arith.constant 0 : i32
    %c0_i32_0 = arith.constant 0 : i32
    %c0_i32_1 = arith.constant 0 : i32
    %c0_i32_2 = arith.constant 0 : i32
    return %c0_i32, %c0_i32_0, %c0_i32_1 : i32, i32, i32
  }
  func.func @transform_21(%arg0: i32) -> (i32, i32, i32) {
    %c0_i32 = arith.constant 0 : i32
    %c0_i32_0 = arith.constant 0 : i32
    %c0_i32_1 = arith.constant 0 : i32
    %c0_i32_2 = arith.constant 0 : i32
    return %c0_i32, %c0_i32_0, %c0_i32_1 : i32, i32, i32
  }
  func.func @transform_22(%arg0: i32) -> (i32, i32, i32) {
    %c0_i32 = arith.constant 0 : i32
    %c0_i32_0 = arith.constant 0 : i32
    %c0_i32_1 = arith.constant 0 : i32
    return %arg0, %c0_i32, %c0_i32_0 : i32, i32, i32
  }
}

</mosaic_0001>

<bundles_post_ra>
// kernel: encoder_forward.1
= control target key start
LH: loop header
LB: loop body
LE: loop exit
PB: predicated region body
PF: predicated region fallthrough
CT: control target
= control target key end

     0   :  { %s6908_s0 = inlined_call_operand.vmem [shape: f32[2,16,4], index: 0, kind: input, shape index: {}]   ;;  %s6909_s1 = inlined_call_operand.vmem [shape: f32[2,1,16], index: 1, kind: input, shape index: {}]   ;;  %s6910_s2 = inlined_call_operand.vmem [shape: bf16[44,32], index: 2, kind: input, shape index: {}]   ;;  %s6911_s3 = inlined_call_operand.vmem [shape: f32[1,32], index: 3, kind: input, shape index: {}]   ;;  %s6912_s4 = inlined_call_operand.vmem [shape: bf16[352,32], index: 4, kind: input, shape index: {}]   ;;  %s6913_s5 = inlined_call_operand.vmem [shape: f32[1,32], index: 5, kind: input, shape index: {}]   ;;  %s6914_s6 = inlined_call_operand.vmem [shape: bf16[352,32], index: 6, kind: input, shape index: {}]   ;;  %s6915_s7 = inlined_call_operand.vmem [shape: f32[1,32], index: 7, kind: input, shape index: {}]   ;;  %s6916_s8 = inlined_call_operand.vmem [shape: f32[1,32], index: 8, kind: input, shape index: {}]   ;;  %s6917_s9 = inlined_call_operand.vmem [shape: f32[1,32], index: 9, kind: input, shape index: {}]   ;;  %s6918_s10 = inlined_call_operand.vmem [shape: bf16[2,32,96], index: 10, kind: input, shape index: {}]   ;;  %s6919_s11 = inlined_call_operand.vmem [shape: f32[2,1,96], index: 11, kind: input, shape index: {}]   ;;  %s6920_s12 = inlined_call_operand.vmem [shape: bf16[2,32,32], index: 12, kind: input, shape index: {}]   ;;  %s6921_s13 = inlined_call_operand.vmem [shape: f32[2,1,32], index: 13, kind: input, shape index: {}]   ;;  %s6922_s14 = inlined_call_operand.vmem [shape: f32[2,1,32], index: 14, kind: input, shape index: {}]   ;;  %s6923_s15 = inlined_call_operand.vmem [shape: f32[2,1,32], index: 15, kind: input, shape index: {}]   ;;  %s6924_s16 = inlined_call_operand.vmem [shape: bf16[2,32,64], index: 16, kind: input, shape index: {}]   ;;  %s6925_s17 = inlined_call_operand.vmem [shape: f32[2,1,64], index: 17, kind: input, shape index: {}]   ;;  %s6926_s18 = inlined_call_operand.vmem [shape: bf16[2,64,32], index: 18, kind: input, shape index: {}]   ;;  %s6927_s19 = inlined_call_operand.vmem [shape: f32[2,1,32], index: 19, kind: input, shape index: {}]   ;;  %s6928_s20 = inlined_call_operand.vmem [shape: f32[2,1,32], index: 20, kind: input, shape index: {}]   ;;  %s6929_s21 = inlined_call_operand.vmem [shape: f32[2,1,32], index: 21, kind: input, shape index: {}]   ;;  %s6930_s22 = inlined_call_operand.hbm [shape: f32[2,16,32], index: 22, kind: output, shape index: {}]  }
   0x1   :  { %6968 = sst [smem:[#allocation7_spill]] %s6908_s0 }
   0x2   :  { %6969 = sst [smem:[#allocation8_spill]] %s6909_s1 }
   0x3   :  { %6970 = sst [smem:[#allocation9_spill]] %s6910_s2 }
   0x4   :  { %6971 = sst [smem:[#allocation10_spill]] %s6911_s3 }
   0x5   :  { %6972 = sst [smem:[#allocation11_spill]] %s6912_s4 }
   0x6   :  { %6973 = sst [smem:[#allocation12_spill]] %s6913_s5 }
   0x7   :  { %6974 = sst [smem:[#allocation13_spill]] %s6914_s6 }
   0x8   :  { %6975 = sst [smem:[#allocation14_spill]] %s6930_s22 }
   0x9   :  { %vm73_vm0 = vcmask 26624   ;;  %vm74_vm1 = vsmask.f32 2304  ;;  %v76_v0 = vld [vmem:[#allocation2] sm:$0x7]  ;;  %vm79_vm2 = vcmask 27650  }
   0xa   :  { %vm5326_vm3 = vmand %vm73_vm0, %vm74_vm1  ;;  %vm80_vm4 = vsmask.f32 7946  ;;  %v82_v2 = vld [vmem:[#allocation2 + $0x8] sm:$0xc]  ;;  %s6978_s29 = sld [smem:[#allocation7_spill]]  ;;  %vm137_vm7 = vcmask 27648  }
   0xb   :  { %v77_v4 = vsel %vm5326_vm3, 0, %v76_v0  ;;  %vm5336_vm5 = vmand %vm79_vm2, %vm80_vm4  ;;  %vm110_vm6 = vsmask.f32 6416  ;;  %vm85_vm9 = vcmask 24576   ;;  %v5185_v39 = vmov 0  }
   0xc   :  { %78 = vst [vmem:[#allocation2] sm:$0x7] %v77_v4  ;;  %v83_v8 = vsel %vm5336_vm5, 0, %v82_v2  ;;  %vm5353_vm8 = vmor %vm74_vm1, %vm110_vm6  ;;  %vm169_vm10 = vcmask 1046528   ;;  %vm6962_vm11 = vcmask 1045504  }
   0xd   :  { %84 = vst [vmem:[#allocation2 + $0x8] sm:$0xc] %v83_v8  ;;  %vm6963_vm12 = vsmask.f32 7424 }
   0xe   :  { %86 = vst.msk [vmem:[#allocation2 + $0xc] sm:$0x1] %vm85_vm9, %v5185_v39 }
  0x10   :  { %v99_v3 = vld [vmem:[%s6978_s29] sm:$0xff]  ;;  %v100_v6 = vld [vmem:[%s6978_s29 + $0x8] sm:$0xff]  ;;  %v4393_v10 = vld [vmem:[%s6978_s29 + $0x10] sm:$0xff] }
  0x11   :  { %v108_v7 = vpack.c.bf16 %v99_v3, %v99_v3  ;;  %v109_v9 = vpack.c.bf16 %v100_v6, %v100_v6  ;;  %v4394_v11 = vld [vmem:[%s6978_s29 + $0x18] sm:$0xff]  ;;  %v1064_v14 = vpack.c.bf16 %v4393_v10, %v4393_v10 }
  0x12   :  { %v1065_v15 = vpack.c.bf16 %v4394_v11, %v4394_v11 }
  0x13   :  { %v113_v12 = vshrl.u32 %v108_v7, 16  ;;  %v116_v13 = vshll.u32 %v108_v7, 16  ;;  %v122_v16 = vshrl.u32 %v109_v9, 16  ;;  %v125_v17 = vshll.u32 %v109_v9, 16  ;;  %v134_v34 = vld [vmem:[#allocation2] sm:$0xc] }
  0x14   :  { %v1067_v20 = vshrl.u32 %v1064_v14, 16  ;;  %v1070_v21 = vshll.u32 %v1064_v14, 16  ;;  %v1076_v24 = vshrl.u32 %v1065_v15, 16  ;;  %v1079_v25 = vshll.u32 %v1065_v15, 16  ;;  %v139_v38 = vld [vmem:[#allocation2 + $0x8] sm:$0x7] }
  0x15   :  { %v115_v18 = vrot.slane %v113_v12, 5  ;;  %v118_v19 = vrot.slane %v116_v13, 6  ;;  %v124_v22 = vrot.slane %v122_v16, 5  ;;  %v127_v23 = vrot.slane %v125_v17, 6 }
  0x16   :  { %v1069_v27 = vrot.slane %v1067_v20, 5  ;;  %v1072_v28 = vrot.slane %v1070_v21, 6  ;;  %v1078_v31 = vrot.slane %v1076_v24, 5  ;;  %v1081_v32 = vrot.slane %v1079_v25, 6 }
  0x17   :  { %v119_v26 = vor.u32 %v118_v19, %v115_v18  ;;  %v128_v30 = vor.u32 %v127_v23, %v124_v22 }
  0x18   :  { %v1073_v35 = vor.u32 %v1072_v28, %v1069_v27  ;;  %v1082_v43 = vor.u32 %v1081_v32, %v1078_v31 }
  0x19   :  { %v120_v33 = vrot.slane %v119_v26, 4  ;;  %v130_v36 = vrot.slane %v128_v30, 4  ;;  %v135_v37 = vsel %vm5336_vm5, %v119_v26, %v134_v34 }
  0x1a   :  { %136 = vst [vmem:[#allocation2] sm:$0xc] %v135_v37  ;;  %v1074_v42 = vrot.slane %v1073_v35, 4  ;;  %v1084_v44 = vrot.slane %v1082_v43, 4 }
  0x1b   :  { %v129_v40 = vsel %vm5353_vm8, %v120_v33, %v128_v30  ;;  %v140_v41 = vsel %vm5326_vm3, %v130_v36, %v139_v38 }
  0x1c   :  { %138 = vst.msk [vmem:[#allocation2 + $0x4] sm:$0xf] %vm137_vm7, %v129_v40  ;;  %v1083_v45 = vsel %vm5353_vm8, %v1074_v42, %v1082_v43 }
  0x1d   :  { %141 = vst [vmem:[#allocation2 + $0x8] sm:$0x7] %v140_v41 }
  0x21   :  { %v1088_v46 = vld [vmem:[#allocation2] sm:$0xc] }
  0x22   :  { %v1089_v48 = vsel %vm5336_vm5, %v1073_v35, %v1088_v46 }
  0x23   :  { %v5367_v47 = vld [vmem:[#allocation2] sm:$0xff]  }
  0x24   :  { %v144_v49 = vld [vmem:[#allocation2 + $0x8] sm:$0xf]  ;;  %1090 = vst [vmem:[#allocation2] sm:$0xc] %v1089_v48  ;;  %v156_v52 = vshrl.u32 %v5367_v47, 16  ;;  %v158_v53 = vshll.u32 %v5367_v47, 16  ;;  %v4859_v2 = vunpack.c.h.b16 %v5367_v47 }
  0x25   :  { %v152_v50 = vunpack.c.l.b16 %v144_v49  ;;  %1091 = vst.msk [vmem:[#allocation2 + $0x4] sm:$0xf] %vm137_vm7, %v1083_v45  ;;  %v1092_v51 = vld [vmem:[#allocation2 + $0x8] sm:$0x7]  ;;  %v170_v56 = vrot.slane %v5367_v47, 1  ;;  %v188_v57 = vrot.slane %v5367_v47, 2 }
  0x26   :  { %v1093_v54 = vsel %vm5326_vm3, %v1084_v44, %v1092_v51  ;;  %v160_v58 = vrot.slane %v158_v53, 1  ;;  %v176_v59 = vrot.slane %v156_v52, 1  ;;  %v177_v63 = vrot.slane %v158_v53, 2 }
  0x27   :  { %v153_v55 = vpack.c.b16 %v152_v50, %v152_v50  ;;  %1094 = vst [vmem:[#allocation2 + $0x8] sm:$0x7] %v1093_v54 }
  0x29   :  { %v171_v60 = vrot.slane %v153_v55, 1  ;;  %v189_v61 = vrot.slane %v153_v55, 2  ;;  %v163_v62 = vshll.u32 %v153_v55, 16  ;;  %v179_v0 = vshrl.u32 %v153_v55, 16 }
  0x2a   :  { %27 = vsyncpa [#allocation5], 0  ;;  %v204_v5 = vrot.slane %v5367_v47, 3  ;;  %s6952_s24 = smov 8   ;;  %s6950_s6 = smov 16   ;;  %v161_v6 = vor.u32 %v160_v58, %v156_v52  ;;  %vm6943_vm13 = vcmask 1044480   ;;  %v178_v10 = vor.u32 %v177_v63, %v176_v59 }
  0x2b   :  { %v172_v1 = vsel %vm169_vm10, %v170_v56, %v171_v60  ;;  %v190_v3 = vsel %vm6962_vm11, %v188_v57, %v189_v61  ;;  %v182_v4 = vrot.slane %v163_v62, 2  ;;  %v165_v7 = vrot.slane %v163_v62, 1  ;;  %v145_v9 = vld [vmem:[#allocation2 + $0xc] sm:$0x1]  ;;  %s6941_s25 = smov 24   ;;  %s5189_s26 = smov 4  }
  0x2c   :  { %173 = vrot.lane.b32.xlu0 %v172_v1, %s6952_s24  ;;  %191 = vrot.lane.b32.xlu1 %v190_v3, %s6950_s6  ;;  %v181_v8 = vrot.slane %v179_v0, 1  ;;  %v205_v11 = vrot.slane %v153_v55, 3  ;;  %v194_v12 = vrot.slane %v156_v52, 2  ;;  %v195_v13 = vrot.slane %v158_v53, 3  ;;  %s5190_s2 = smov 12   ;;  %s6938_s27 = smov 20  }
  0x2d   :  { %vm6961_vm14 = vsmask.f32 6400  ;;  %v197_v15 = vrot.slane %v179_v0, 2  ;;  %v198_v16 = vrot.slane %v163_v62, 3  ;;  %v210_v17 = vrot.slane %v156_v52, 3  ;;  %s6939_s3 = smov 28  }
  0x2e   :  { %v183_v14 = vor.u32 %v182_v4, %v181_v8  ;;  %v219_v18 = vpack.c.b16 %v152_v50, %v4859_v2  ;;  %v223_v19 = vunpack.c.l.b16 %v145_v9  ;;  %v206_v20 = vsel %vm6943_vm13, %v204_v5, %v205_v11  ;;  %s6956_s28 = smov 32   ;;  %s6940_s29 = smov 36   ;;  %v89_v52 = vld [vmem:[#allocation3] sm:$0x7] }
  0x2f   :  { %v166_v21 = vsel %vm6963_vm12, %v161_v6, %v165_v7  ;;  %v211_v22 = vrot.slane %v158_v53, 4  ;;  %v213_v23 = vrot.slane %v179_v0, 3  ;;  %v214_v24 = vrot.slane %v163_v62, 4  ;;  %207 = vrot.lane.b32.xlu2 %v206_v20, %s6941_s25  ;;  %s6958_s30 = smov 40   ;;  %s6983_s23 = sld [smem:[#allocation9_spill]] }
  0x30   :  { %v184_v25 = vsel %vm6961_vm14, %v178_v10, %v183_v14  ;;  %v196_v26 = vor.u32 %v195_v13, %v194_v12  ;;  %v199_v27 = vor.u32 %v198_v16, %v197_v15  ;;  %v228_v28 = vshll.u32 %v219_v18, 16  ;;  %v94_v53 = vld [vmem:[#allocation3 + $0x8] sm:$0xc]  ;;  %v1097_v13 = vld [vmem:[#allocation2 + $0x8] sm:$0xf]  ;;  %v5440_v15 = vld [vmem:[#allocation2] sm:$0xff]  }
  0x31   :  { %vm6944_vm15 = vsmask.f32 5376  ;;  %v224_v30 = vpack.c.b16 %v223_v19, %v223_v19  ;;  %v212_v31 = vor.u32 %v211_v22, %v210_v17  ;;  %v215_v32 = vor.u32 %v214_v24, %v213_v23  ;;  %s6994_s4 = smov 28   ;;  %s6995_s0 = smov 20  }
  0x32   :  { %v200_v33 = vsel %vm6944_vm15, %v196_v26, %v199_v27  ;;  %v226_v34 = vshrl.u32 %v219_v18, 16  ;;  %v230_v35 = vrot.slane %v228_v28, 1  ;;  %vm6960_vm0 = vsmask.f32 4352  ;;  %s6996_s1 = smov 36   ;;  %s6966_s5 = smov 56  }
  0x33   :  { %v233_v36 = vshll.u32 %v224_v30, 16  ;;  %v216_v37 = vsel %vm6960_vm0, %v212_v31, %v215_v32  ;;  %v239_v41 = vrot.slane %v219_v18, 1  ;;  %v240_v42 = vrot.slane %v224_v30, 1  ;;  %s7047_s25 = smov 40   ;;  %s5207_s22 = smov 48  }
  0x34   :  { %167 = vrot.lane.b32.xlu0 %v166_v21, %s5189_s26  ;;  %185 = vrot.lane.b32.xlu1 %v184_v25, %s5190_s2  ;;  %v231_v38 = vor.u32 %v230_v35, %v226_v34  ;;  %vm87_vm2 = vcmask 256000   ;;  %vm92_vm3 = vcmask 257026   ;;  %vm6945_vm7 = vcmask 64512  }
  0x35   :  { %v235_v40 = vrot.slane %v233_v36, 1  ;;  %v241_v44 = vsel %vm169_vm10, %v239_v41, %v240_v42  ;;  %v4212_v45 = vld [vmem:[%s6983_s23 + $0x10] sm:$0xf]  ;;  %v4744_v46 = vld [vmem:[%s6983_s23 + $0x10] sm:$0x30]  ;;  %v4743_v50 = vld [vmem:[%s6983_s23 + $0x8] sm:$0xff]  ;;  %v5438_v14 = vunpack.c.l.b16 %v1097_v13 }
  0x36   :  { %v4213_v48 = vor.u32 %v4744_v46, %v4212_v45  ;;  %v4742_v51 = vld [vmem:[%s6983_s23] sm:$0xff]  ;;  %vm5413_vm5 = vmand %vm87_vm2, %vm74_vm1  ;;  %vm6947_vm1 = vcmask 31744   ;;  %vm6946_vm9 = vcmask 97280   ;;  %vm256_vm2 = vcmask 162816  }
  0x37   :  { %201 = vrot.lane.b32.xlu2 %v200_v33, %s6938_s27  ;;  %v236_v43 = vsel %vm6963_vm12, %v231_v38, %v235_v40  ;;  %v90_v55 = vsel %vm5413_vm5, 0, %v89_v52  ;;  %vm5420_vm6 = vmand %vm92_vm3, %vm80_vm4  ;;  %vm253_vm4 = vcmask 130048   ;;  %vm259_vm3 = vcmask 195584   ;;  %s6988_s27 = sld [smem:[#allocation10_spill]] }
  0x38   :  { %v299_v49 = vsel %vm6962_vm11, %v4213_v48, 0  ;;  %91 = vst [vmem:[#allocation3] sm:$0x7] %v90_v55  ;;  %v95_v57 = vsel %vm5420_vm6, 0, %v94_v53  ;;  %vm262_vm13 = vcmask 228352   ;;  %vm265_vm15 = vcmask 261120  }
  0x39   :  { %306 = vmatpush.bf16.msra.mxu0 %v299_v49  ;;  %96 = vst [vmem:[#allocation3 + $0x8] sm:$0xc] %v95_v57  ;;  %v5444_v16 = vpack.c.b16 %v5438_v14, %v5438_v14  ;;  %v5447_v17 = vshll.u32 %v5440_v15, 16  ;;  %v1121_v25 = vrot.slane %v5440_v15, 1  ;;  %v1137_v33 = vrot.slane %v5440_v15, 2 }
  0x3b   :  { %v1112_v19 = vrot.slane %v5447_v17, 1  ;;  %v5454_v20 = vshll.u32 %v5444_v16, 16  ;;  %v5461_v24 = vshrl.u32 %v5444_v16, 16  ;;  %v1122_v26 = vrot.slane %v5444_v16, 1 }
  0x3c   :  { %217 = vrot.lane.b32.xlu0 %v216_v37, %s6939_s3  ;;  %220 = vrot.lane.b32.xlu1 %v219_v18, %s6956_s28  ;;  %v5450_v18 = vshrl.u32 %v5440_v15, 16  ;;  %v1127_v28 = vrot.slane %v5447_v17, 2  ;;  %v1138_v34 = vrot.slane %v5444_v16, 2  ;;  %v1143_v13 = vrot.slane %v5447_v17, 3  ;;  %s6954_s3 = smov 96  }
  0x3d   :  { %307 = vmatpush.bf16.msra.mxu0 %v4743_v50  ;;  %v1117_v22 = vrot.slane %v5454_v20, 1  ;;  %v1131_v30 = vrot.slane %v5461_v24, 1  ;;  %v1132_v31 = vrot.slane %v5454_v20, 2  ;;  %v1123_v32 = vsel %vm169_vm10, %v1121_v25, %v1122_v26 }
  0x3e   :  { %v1113_v21 = vor.u32 %v1112_v19, %v5450_v18  ;;  %v1126_v27 = vrot.slane %v5450_v18, 1  ;;  %v1139_v37 = vsel %vm6962_vm11, %v1137_v33, %v1138_v34  ;;  %v1145_v19 = vrot.slane %v5461_v24, 2 }
  0x3f   :  { %237 = vrot.lane.b32.xlu2 %v236_v43, %s6940_s29  ;;  %v1133_v36 = vor.u32 %v1132_v31, %v1131_v30  ;;  %s6993_s29 = smov 24  }
  0x40   :  { %v1118_v23 = vsel %vm6963_vm12, %v1113_v21, %v1117_v22  ;;  %v1128_v35 = vor.u32 %v1127_v28, %v1126_v27  ;;  %v1146_v21 = vrot.slane %v5454_v20, 3 }
  0x41   :  { %308 = vmatpush.bf16.msra.mxu0 %v4742_v51  ;;  %v386_v51 = vld [vmem:[#allocation3] sm:$0xc] }
  0x42   :  { %v1134_v38 = vsel %vm6961_vm14, %v1128_v35, %v1133_v36  ;;  %v1147_v27 = vor.u32 %v1146_v21, %v1145_v19 }
  0x44   :  { %242 = vrot.lane.b32.xlu0 %v241_v44, %s6958_s30  ;;  %1124 = vrot.lane.b32.xlu1 %v1123_v32, %s6952_s24  ;;  %s7008_s24 = smov 96  }
  0x47   :  { %1119 = vrot.lane.b32.xlu2 %v1118_v23, %s5189_s26  ;;  %s6997_s26 = sld [smem:[#allocation11_spill]] }
  0x4c   :  { %1140 = vrot.lane.b32.xlu0 %v1139_v37, %s6950_s6  ;;  %s5200_s6 = smov 88  }
  0x4f   :  { %1135 = vrot.lane.b32.xlu2 %v1134_v38, %s5190_s2  ;;  %s6964_s2 = smov 64  }
  0x89   :  { %v208_v60 = vpop.permute.xlu2 %207 }
  0x91   :  { %v202_v1 = vpop.permute.xlu2 %201 }
  0x99   :  { %v238_v9 = vpop.permute.xlu2 %237 }
  0x9e   :  { %v174_v58 = vpop.permute.xlu0 %173  ;;  %v192_v59 = vpop.permute.xlu1 %191 }
  0xa6   :  { %v168_v61 = vpop.permute.xlu0 %167  ;;  %v186_v62 = vpop.permute.xlu1 %185 }
  0xa7   :  { %v246_v63 = vsel %vm6947_vm1, %v5367_v47, %v168_v61  ;;  %vm6948_vm1 = vcmask 359424   ;;  %v1157_v61 = vrot.slane %v5447_v17, 4 }
  0xa8   :  { %v249_v0 = vsel %vm6945_vm7, %v246_v63, %v174_v58  ;;  %vm268_vm7 = vcmask 293888   ;;  %v1160_v63 = vrot.slane %v5454_v20, 4 }
  0xa9   :  { %v252_v2 = vsel %vm6946_vm9, %v249_v0, %v186_v62  ;;  %vm271_vm9 = vcmask 326656   ;;  %v1159_v62 = vrot.slane %v5461_v24, 3 }
  0xaa   :  { %v255_v3 = vsel %vm253_vm4, %v252_v2, %v192_v59 }
  0xab   :  { %v258_v4 = vsel %vm256_vm2, %v255_v3, %v202_v1  ;;  %v1161_v3 = vor.u32 %v1160_v63, %v1159_v62 }
  0xac   :  { %v261_v6 = vsel %vm259_vm3, %v258_v4, %v208_v60  ;;  %v1156_v60 = vrot.slane %v5450_v18, 3 }
  0xae   :  { %v218_v5 = vpop.permute.xlu0 %217  ;;  %v221_v47 = vpop.permute.xlu1 %220  ;;  %v1158_v1 = vor.u32 %v1157_v61, %v1156_v60  ;;  %v1098_v60 = vld [vmem:[#allocation2 + $0xc] sm:$0x1] }
  0xaf   :  { %v264_v7 = vsel %vm262_vm13, %v261_v6, %v218_v5  ;;  %v391_v6 = vld [vmem:[#allocation3 + $0x8] sm:$0x7] }
  0xb0   :  { %v267_v8 = vsel %vm265_vm15, %v264_v7, %v221_v47  ;;  %v5488_v7 = vsel %vm6960_vm0, %v1158_v1, %v1161_v3 }
  0xb1   :  { %v270_v10 = vsel %vm268_vm7, %v267_v8, %v238_v9 }
  0xb6   :  { %v243_v11 = vpop.permute.xlu0 %242 }
  0xb7   :  { %v273_v12 = vsel %vm271_vm9, %v270_v10, %v243_v11 }
  0xb8   :  { %4214 = vmatmul.msk.bf16.vlgmr.msra.gmra.mxu0 %vm6948_vm1, %v273_v12  ;;  %vm97_vm1 = vcmask 253952   ;;  %v1142_v12 = vrot.slane %v5450_v18, 2 }
  0xb9   :  { %98 = vst.msk [vmem:[#allocation3 + $0xc] sm:$0x1] %vm97_vm1, %v5185_v39  ;;  %v4965_v39 = vld [vmem:[%s6988_s27] ss:$0 sm:$0xff]  ;;  %vm6949_vm1 = vcmask 257024  }
  0xba   :  { %v1144_v26 = vor.u32 %v1143_v13, %v1142_v12 }
  0xc0   :  { %v397_v10 = vld [vmem:[#allocation3 + $0xc] sm:$0x1] }
  0xc1   :  { %v464_v11 = vunpack.c.l.b16 %v397_v10 }
  0xc3   :  { %v465_v23 = vpack.c.b16 %v464_v11, %v464_v11 }
  0xc5   :  { %v481_v18 = vrot.slane %v465_v23, 1 }
 0x135   :  { %v310_v40 = vpop.f32.mrf.mxu0 }
 0x136   :  { %v311_v41 = vadd.f32 %v4965_v39, %v310_v40 }
 0x138   :  { %v315_v42 = vmax.f32 %v311_v41, 0.0 }
 0x13a   :  { %v362_v43 = vpack.c.bf16 %v315_v42, %v315_v42 }
 0x13c   :  { %v365_v44 = vshrl.u32 %v362_v43, 16  ;;  %v368_v45 = vshll.u32 %v362_v43, 16 }
 0x13d   :  { %v312_v46 = vpop.f32.mrf.mxu0 }
 0x13e   :  { %v367_v48 = vrot.slane %v365_v44, 5  ;;  %v370_v49 = vrot.slane %v368_v45, 6  ;;  %v313_v50 = vadd.f32 %v4965_v39, %v312_v46 }
 0x140   :  { %v371_v52 = vor.u32 %v370_v49, %v367_v48  ;;  %v316_v53 = vmax.f32 %v313_v50, 0.0 }
 0x142   :  { %v387_v55 = vsel %vm5420_vm6, %v371_v52, %v386_v51  ;;  %v363_v57 = vpack.c.bf16 %v316_v53, %v316_v53  ;;  %v372_v4 = vrot.slane %v371_v52, 4  ;;  %v4871_v53 = vunpack.c.h.b16 %v5440_v15 }
 0x143   :  { %388 = vst [vmem:[#allocation3] sm:$0xc] %v387_v55 }
 0x144   :  { %v374_v58 = vshrl.u32 %v363_v57, 16  ;;  %v377_v59 = vshll.u32 %v363_v57, 16 }
 0x146   :  { %v376_v0 = vrot.slane %v374_v58, 5  ;;  %v379_v2 = vrot.slane %v377_v59, 6 }
 0x148   :  { %v380_v5 = vor.u32 %v379_v2, %v376_v0  ;;  %v474_v0 = vshll.u32 %v465_v23, 16  ;;  %v1165_v2 = vpack.c.b16 %v5438_v14, %v4871_v53  ;;  %v1152_v14 = vrot.slane %v5444_v16, 3  ;;  %v4748_v53 = vld [vmem:[%s6997_s26 + $0x18] sm:$0xff] }
 0x14a   :  { %v381_v47 = vsel %vm5353_vm8, %v372_v4, %v380_v5  ;;  %v382_v8 = vrot.slane %v380_v5, 4  ;;  %v1169_v5 = vunpack.c.l.b16 %v1098_v60  ;;  %v476_v11 = vrot.slane %v474_v0, 1  ;;  %v4746_v60 = vld [vmem:[%s6997_s26 + $0x8] sm:$0xff] }
 0x14b   :  { %390 = vst.msk [vmem:[#allocation3 + $0x4] sm:$0xf] %vm6949_vm1, %v381_v47  ;;  %vm6989_vm1 = vsmask.f32 5376  ;;  %v1172_v19 = vshrl.u32 %v1165_v2, 16 }
 0x14c   :  { %v392_v9 = vsel %vm5413_vm5, %v382_v8, %v391_v6  ;;  %v5507_v17 = vsel %vm6989_vm1, %v1144_v26, %v1147_v27  ;;  %vm6990_vm1 = vcmask 1044480   ;;  %v1151_v8 = vrot.slane %v5440_v15, 3 }
 0x14d   :  { %393 = vst [vmem:[#allocation3 + $0x8] sm:$0x7] %v392_v9  ;;  %v1174_v9 = vshll.u32 %v1165_v2, 16  ;;  %v1170_v12 = vpack.c.b16 %v1169_v5, %v1169_v5  ;;  %v4790_v5 = vld [vmem:[%s6983_s23 + $0x8] sm:$0xff] }
 0x14f   :  { %v1176_v21 = vrot.slane %v1174_v9, 1  ;;  %v1179_v23 = vshll.u32 %v1170_v12, 16 }
 0x151   :  { %v1177_v16 = vor.u32 %v1176_v21, %v1172_v19 }
 0x152   :  { %v5499_v22 = vld [vmem:[#allocation3] sm:$0xff]  }
 0x153   :  { %v4863_v30 = vunpack.c.h.b16 %v5499_v22  ;;  %v448_v24 = vrot.slane %v5499_v22, 3  ;;  %v420_v20 = vrot.slane %v5499_v22, 1  ;;  %v5512_v33 = vshrl.u32 %v5499_v22, 16 }
 0x154   :  { %v396_v25 = vld [vmem:[#allocation3 + $0x8] sm:$0xf]  ;;  %v5515_v34 = vshll.u32 %v5499_v22, 16 }
 0x155   :  { %v404_v28 = vunpack.c.l.b16 %v396_v25  ;;  %v439_v48 = vrot.slane %v5512_v33, 2  ;;  %v453_v51 = vrot.slane %v5512_v33, 3 }
 0x156   :  { %v440_v49 = vrot.slane %v5515_v34, 3  ;;  %v411_v50 = vrot.slane %v5515_v34, 1  ;;  %v454_v52 = vrot.slane %v5515_v34, 4 }
 0x157   :  { %v5502_v31 = vpack.c.b16 %v404_v28, %v404_v28  ;;  %v5504_v32 = vpack.c.b16 %v404_v28, %v4863_v30  ;;  %v1181_v28 = vrot.slane %v1179_v23, 1  ;;  %v425_v30 = vrot.slane %v5512_v33, 1 }
 0x158   :  { %v441_v61 = vor.u32 %v440_v49, %v439_v48  ;;  %v412_v62 = vor.u32 %v411_v50, %v5512_v33  ;;  %v455_v63 = vor.u32 %v454_v52, %v453_v51  ;;  %v4760_v33 = vld [vmem:[%s6997_s26 + $0x78] sm:$0xff]  ;;  %v4754_v49 = vld [vmem:[%s6997_s26 + $0x48] sm:$0xff]  ;;  %v4749_v50 = vld [vmem:[%s6997_s26 + $0x20] sm:$0xff] }
 0x159   :  { %v449_v35 = vrot.slane %v5502_v31, 3  ;;  %v421_v39 = vrot.slane %v5502_v31, 1  ;;  %v480_v36 = vrot.slane %v5504_v32, 1  ;;  %v414_v37 = vshll.u32 %v5502_v31, 16  ;;  %657 = vmatpush.bf16.msra.mxu2 %v4760_v33  ;;  %v4764_v48 = vld [vmem:[%s6997_s26 + $0x98] sm:$0xff]  ;;  %v4763_v51 = vld [vmem:[%s6997_s26 + $0x90] sm:$0xff] }
 0x15a   :  { %v428_v38 = vshrl.u32 %v5502_v31, 16  ;;  %v469_v58 = vshll.u32 %v5504_v32, 16  ;;  %v467_v47 = vshrl.u32 %v5504_v32, 16  ;;  %v4753_v52 = vld [vmem:[%s6997_s26 + $0x40] sm:$0xff]  ;;  %v437_v9 = vrot.slane %v5502_v31, 2 }
 0x15b   :  { %v450_v40 = vsel %vm6990_vm1, %v448_v24, %v449_v35  ;;  %v422_v41 = vsel %vm169_vm10, %v420_v20, %v421_v39  ;;  %v482_v42 = vsel %vm169_vm10, %v480_v36, %v481_v18  ;;  %v443_v43 = vrot.slane %v414_v37, 3 }
 0x15c   :  { %451 = vrot.lane.b32.xlu2 %v450_v40, %s6964_s2  ;;  %423 = vrot.lane.b32.xlu1 %v422_v41, %s6964_s2  ;;  %v442_v44 = vrot.slane %v428_v38, 2  ;;  %v456_v45 = vrot.slane %v428_v38, 3  ;;  %v457_v46 = vrot.slane %v414_v37, 4  ;;  %v416_v57 = vrot.slane %v414_v37, 1  ;;  %v4758_v40 = vld [vmem:[%s6997_s26 + $0x68] sm:$0xff]  ;;  %v4751_v41 = vld [vmem:[%s6997_s26 + $0x30] sm:$0xff] }
 0x15d   :  { %483 = vrot.lane.b32.xlu0 %v482_v42, %s6964_s2  ;;  %vm6991_vm1 = vsmask.f32 5376  ;;  %v471_v4 = vrot.slane %v469_v58, 1  ;;  %v430_v26 = vrot.slane %v428_v38, 1  ;;  %v431_v27 = vrot.slane %v414_v37, 2  ;;  %v4766_v38 = vld [vmem:[%s6997_s26 + $0xa8] sm:$0xff] }
 0x15e   :  { %v444_v55 = vor.u32 %v443_v43, %v442_v44  ;;  %v458_v59 = vor.u32 %v457_v46, %v456_v45  ;;  %v417_v3 = vsel %vm6963_vm12, %v412_v62, %v416_v57  ;;  %v426_v18 = vrot.slane %v5515_v34, 2  ;;  %v4752_v34 = vld [vmem:[%s6997_s26 + $0x38] sm:$0xff]  ;;  %673 = vmatpush.bf16.msra.mxu3 %v4766_v38  ;;  %v4765_v42 = vld [vmem:[%s6997_s26 + $0xa0] sm:$0xff]  ;;  %v4755_v45 = vld [vmem:[%s6997_s26 + $0x50] sm:$0xff]  ;;  %v1141_v62 = vpop.permute.xlu0 %1140 }
 0x15f   :  { %v472_v10 = vor.u32 %v471_v4, %v467_v47  ;;  %v432_v24 = vor.u32 %v431_v27, %v430_v26  ;;  %v1182_v20 = vsel %vm6963_vm12, %v1177_v16, %v1181_v28  ;;  %v1186_v36 = vrot.slane %v1170_v12, 1  ;;  %643 = vmatpush.bf16.msra.mxu1 %v4752_v34  ;;  %v4757_v43 = vld [vmem:[%s6997_s26 + $0x60] sm:$0xff]  ;;  %v4756_v44 = vld [vmem:[%s6997_s26 + $0x58] sm:$0xff]  ;;  %v4750_v46 = vld [vmem:[%s6997_s26 + $0x28] sm:$0xff] }
 0x160   :  { %v445_v1 = vsel %vm6991_vm1, %v441_v61, %v444_v55  ;;  %v459_v6 = vsel %vm6960_vm0, %v455_v63, %v458_v59  ;;  %vm6992_vm1 = vcmask 1044480   ;;  %v427_v35 = vor.u32 %v426_v18, %v425_v30  ;;  %v4762_v55 = vld [vmem:[%s6997_s26 + $0x88] sm:$0xff]  ;;  %v4747_v57 = vld [vmem:[%s6997_s26 + $0x10] sm:$0xff]  ;;  %v4761_v58 = vld [vmem:[%s6997_s26 + $0x80] sm:$0xff]  ;;  %v1120_v59 = vpop.permute.xlu2 %1119  ;;  %v1125_v63 = vpop.permute.xlu1 %1124 }
 0x161   :  { %v1153_v13 = vsel %vm6992_vm1, %v1151_v8, %v1152_v14  ;;  %v477_v25 = vsel %vm6963_vm12, %v472_v10, %v476_v11  ;;  %v4745_v61 = vld [vmem:[%s6997_s26] sm:$0xff]  ;;  %v436_v10 = vrot.slane %v5499_v22, 2  ;;  %vm490_vm1 = vcmask 785408  }
 0x162   :  { %v433_v39 = vsel %vm6961_vm14, %v427_v35, %v432_v24  ;;  %674 = vmatpush.bf16.msra.mxu3 %v4765_v42  ;;  %v4789_v8 = vld [vmem:[%s6983_s23] sm:$0xff]  ;;  %vm487_vm0 = vcmask 523264   ;;  %vm6998_vm14 = vcmask 31744   ;;  %vm7000_vm12 = vcmask 97280  }
 0x163   :  { %644 = vmatpush.bf16.msra.mxu1 %v4751_v41  ;;  %v438_v11 = vsel %vm6962_vm11, %v436_v10, %v437_v9  ;;  %v1191_v31 = vsel %vm6998_vm14, %v5440_v15, %v1120_v59  ;;  %vm7005_vm14 = vsmask.f32 7424 }
 0x164   :  { %446 = vrot.lane.b32.xlu1 %v445_v1, %s6956_s28  ;;  %418 = vrot.lane.b32.xlu2 %v417_v3, %s6956_s28  ;;  %v4791_v1 = vld [vmem:[%s6983_s23 + $0x10] sm:$0x30] }
 0x165   :  { %460 = vrot.lane.b32.xlu0 %v459_v6, %s6954_s3 }
 0x166   :  { %675 = vmatpush.bf16.msra.mxu3 %v4764_v48 }
 0x167   :  { %645 = vmatpush.bf16.msra.mxu1 %v4750_v46 }
 0x168   :  { %v1136_v0 = vpop.permute.xlu2 %1135 }
 0x16a   :  { %676 = vmatpush.bf16.msra.mxu3 %v4763_v51 }
 0x16b   :  { %646 = vmatpush.bf16.msra.mxu1 %v4749_v50 }
 0x16c   :  { %478 = vrot.lane.b32.xlu1 %v477_v25, %s6956_s28  ;;  %1154 = vrot.lane.b32.xlu2 %v1153_v13, %s6993_s29 }
 0x16d   :  { %1163 = vrot.lane.b32.xlu0 %v5488_v7, %s6994_s4  ;;  %v1185_v7 = vrot.slane %v1165_v2, 1  ;;  %s7002_s4 = sld [smem:[#allocation12_spill]] }
 0x16e   :  { %677 = vmatpush.bf16.msra.mxu3 %v4762_v55 }
 0x16f   :  { %v1187_v37 = vsel %vm169_vm10, %v1185_v7, %v1186_v36  ;;  %647 = vmatpush.bf16.msra.mxu1 %v4748_v53 }
 0x172   :  { %678 = vmatpush.bf16.msra.mxu3 %v4761_v58 }
 0x173   :  { %648 = vmatpush.bf16.msra.mxu1 %v4747_v57 }
 0x174   :  { %1149 = vrot.lane.b32.xlu1 %v5507_v17, %s6995_s0  ;;  %1183 = vrot.lane.b32.xlu2 %v1182_v20, %s6996_s1  ;;  %v4759_v17 = vld [vmem:[%s6997_s26 + $0x70] sm:$0xff]  ;;  %s5201_s0 = smov 112   ;;  %s5204_s1 = smov 104  }
 0x175   :  { %434 = vrot.lane.b32.xlu0 %v433_v39, %s6954_s3  ;;  %658 = vmatpush.bf16.msra.mxu2 %v4759_v17  ;;  %s7010_s3 = sld [smem:[#allocation13_spill]] }
 0x177   :  { %649 = vmatpush.bf16.msra.mxu1 %v4746_v60 }
 0x179   :  { %659 = vmatpush.bf16.msra.mxu2 %v4758_v40 }
 0x17b   :  { %650 = vmatpush.bf16.msra.mxu1 %v4745_v61  ;;  %v4967_v61 = vld [vmem:[%s6988_s27] ss:$0 sm:$0xff]  ;;  %s7006_s27 = smov 32  }
 0x17c   :  { %1166 = vrot.lane.b32.xlu1 %v1165_v2, %s6956_s28  ;;  %v4405_v2 = vld [vmem:[%s6983_s23 + $0x10] sm:$0xf]  ;;  %s5199_s23 = smov 120  }
 0x17d   :  { %1188 = vrot.lane.b32.xlu0 %v1187_v37, %s6958_s30  ;;  %660 = vmatpush.bf16.msra.mxu2 %v4757_v43  ;;  %v4406_v3 = vor.u32 %v4791_v1, %v4405_v2  ;;  %v4966_v43 = vld [vmem:[%s7002_s4] ss:$0 sm:$0xff]  ;;  %s7042_s30 = sld [smem:[#allocation8_spill]] }
 0x17f   :  { %v1233_v4 = vsel %vm6962_vm11, %v4406_v3, 0  ;;  %vm6999_vm11 = vcmask 64512  }
 0x180   :  { %v1193_v30 = vsel %vm6999_vm11, %v1191_v31, %v1125_v63  ;;  %vm7001_vm11 = vcmask 359424  }
 0x181   :  { %661 = vmatpush.bf16.msra.mxu2 %v4756_v44  ;;  %v1195_v24 = vsel %vm7000_vm12, %v1193_v30, %v1136_v0  ;;  %vm7003_vm12 = vcmask 257024   ;;  %v760_v30 = vld [vmem:[#allocation3 + $0x8] sm:$0x7] }
 0x182   :  { %v1197_v15 = vsel %vm253_vm4, %v1195_v24, %v1141_v62 }
 0x185   :  { %662 = vmatpush.bf16.msra.mxu2 %v4755_v45 }
 0x189   :  { %663 = vmatpush.bf16.msra.mxu2 %v4754_v49 }
 0x18d   :  { %664 = vmatpush.bf16.msra.mxu2 %v4753_v52 }
 0x191   :  { %1240 = vmatpush.bf16.msrb.mxu2 %v1233_v4  ;;  %v756_v4 = vld [vmem:[#allocation3] sm:$0xc] }
 0x195   :  { %1241 = vmatpush.bf16.msrb.mxu2 %v4790_v5 }
 0x199   :  { %1242 = vmatpush.bf16.msrb.mxu2 %v4789_v8 }
 0x1b6   :  { %v452_v14 = vpop.permute.xlu2 %451 }
 0x1be   :  { %v419_v25 = vpop.permute.xlu2 %418 }
 0x1bf   :  { %v486_v20 = vsel %vm265_vm15, %v5499_v22, %v419_v25 }
 0x1c6   :  { %v1155_v18 = vpop.permute.xlu2 %1154 }
 0x1ce   :  { %v424_v6 = vpop.permute.xlu1 %423  ;;  %v1184_v33 = vpop.permute.xlu2 %1183 }
 0x1cf   :  { %v484_v47 = vpop.permute.xlu0 %483  ;;  %v489_v39 = vsel %vm487_vm0, %v486_v20, %v424_v6 }
 0x1d6   :  { %v447_v12 = vpop.permute.xlu1 %446 }
 0x1d7   :  { %v496_v13 = vsel %vm265_vm15, %v438_v11, %v447_v12  ;;  %v461_v19 = vpop.permute.xlu0 %460 }
 0x1d8   :  { %v498_v21 = vsel %vm487_vm0, %v496_v13, %v452_v14 }
 0x1d9   :  { %v500_v23 = vsel %vm490_vm1, %v498_v21, %v461_v19 }
 0x1da   :  { %665 = vmatmul.bf16.vlgmr.msra.gmra.mxu2 %v500_v23 }
 0x1de   :  { %v479_v26 = vpop.permute.xlu1 %478 }
 0x1df   :  { %v1164_v27 = vpop.permute.xlu0 %1163  ;;  %v503_v16 = vsel %vm265_vm15, %v5504_v32, %v479_v26 }
 0x1e0   :  { %v505_v28 = vsel %vm487_vm0, %v503_v16, %v484_v47 }
 0x1e1   :  { %4303 = vmatmul.msk.bf16.vlgmr.msra.gmra.mxu3 %vm490_vm1, %v505_v28 }
 0x1e6   :  { %v1150_v35 = vpop.permute.xlu1 %1149 }
 0x1e7   :  { %v435_v7 = vpop.permute.xlu0 %434  ;;  %v1199_v32 = vsel %vm256_vm2, %v1197_v15, %v1150_v35  ;;  %vm7011_vm2 = vsmask.f32 4352 }
 0x1e8   :  { %v492_v36 = vsel %vm490_vm1, %v489_v39, %v435_v7  ;;  %v1201_v37 = vsel %vm259_vm3, %v1199_v32, %v1155_v18 }
 0x1e9   :  { %651 = vmatmul.bf16.vlgmr.msra.gmra.mxu1 %v492_v36  ;;  %v1203_v34 = vsel %vm262_vm13, %v1201_v37, %v1164_v27  ;;  %vm7004_vm13 = vmmov %vm7003_vm12 }
 0x1ee   :  { %v1167_v17 = vpop.permute.xlu1 %1166 }
 0x1ef   :  { %v1205_v38 = vsel %vm265_vm15, %v1203_v34, %v1167_v17  ;;  %v1189_v22 = vpop.permute.xlu0 %1188 }
 0x1f0   :  { %v1207_v40 = vsel %vm268_vm7, %v1205_v38, %v1184_v33  ;;  %vm7007_vm7 = vsmask.f32 6400 }
 0x1f1   :  { %v1209_v41 = vsel %vm271_vm9, %v1207_v40, %v1189_v22  ;;  %v766_v22 = vld [vmem:[#allocation3 + $0xc] sm:$0x1]  ;;  %vm7009_vm9 = vmmov %vm7005_vm14 }
 0x1f2   :  { %4407 = vmatmul.msk.bf16.vlgmr.msrb.gmra.mxu2 %vm7001_vm11, %v1209_v41  ;;  %vm7012_vm11 = vsmask.f32 5376 }
 0x25d   :  { %v666_v42 = vpop.f32.mrf.mxu2 }
 0x264   :  { %v680_v46 = vpop.f32.mrf.mxu3 }
 0x265   :  { %v668_v51 = vpop.f32.mrf.mxu2 }
 0x266   :  { %v652_v44 = vpop.f32.mrf.mxu1 }
 0x267   :  { %v653_v45 = vadd.f32 %v4966_v43, %v652_v44 }
 0x269   :  { %v667_v48 = vadd.f32 %v666_v42, %v653_v45 }
 0x26b   :  { %v681_v49 = vadd.f32 %v680_v46, %v667_v48 }
 0x26c   :  { %v682_v60 = vpop.f32.mrf.mxu3 }
 0x26d   :  { %v685_v50 = vmax.f32 %v681_v49, 0.0  ;;  %v833_v49 = vunpack.c.l.b16 %v766_v22 }
 0x26e   :  { %v654_v52 = vpop.f32.mrf.mxu1 }
 0x26f   :  { %v732_v53 = vpack.c.bf16 %v685_v50, %v685_v50  ;;  %v655_v55 = vadd.f32 %v4966_v43, %v654_v52 }
 0x271   :  { %v735_v57 = vshrl.u32 %v732_v53, 16  ;;  %v738_v58 = vshll.u32 %v732_v53, 16  ;;  %v669_v59 = vadd.f32 %v668_v51, %v655_v55 }
 0x273   :  { %v737_v62 = vrot.slane %v735_v57, 5  ;;  %v740_v63 = vrot.slane %v738_v58, 6  ;;  %v683_v0 = vadd.f32 %v682_v60, %v669_v59 }
 0x275   :  { %v741_v2 = vor.u32 %v740_v63, %v737_v62  ;;  %v686_v1 = vmax.f32 %v683_v0, 0.0  ;;  %v1244_v3 = vpop.f32.mrf.mxu2  ;;  %v834_v62 = vpack.c.b16 %v833_v49, %v833_v49 }
 0x276   :  { %v1245_v5 = vadd.f32 %v4967_v61, %v1244_v3 }
 0x277   :  { %v757_v6 = vsel %vm5420_vm6, %v741_v2, %v756_v4  ;;  %v733_v47 = vpack.c.bf16 %v686_v1, %v686_v1  ;;  %v742_v21 = vrot.slane %v741_v2, 4  ;;  %v843_v4 = vshll.u32 %v834_v62, 16 }
 0x278   :  { %758 = vst [vmem:[#allocation3] sm:$0xc] %v757_v6  ;;  %v1249_v8 = vmax.f32 %v1245_v5, 0.0 }
 0x279   :  { %v744_v14 = vshrl.u32 %v733_v47, 16  ;;  %v747_v9 = vshll.u32 %v733_v47, 16 }
 0x27a   :  { %v1296_v10 = vpack.c.bf16 %v1249_v8, %v1249_v8 }
 0x27b   :  { %v746_v11 = vrot.slane %v744_v14, 5  ;;  %v749_v12 = vrot.slane %v747_v9, 6 }
 0x27c   :  { %v1299_v13 = vshrl.u32 %v1296_v10, 16  ;;  %v1302_v19 = vshll.u32 %v1296_v10, 16  ;;  %v850_v10 = vrot.slane %v834_v62, 1 }
 0x27d   :  { %v750_v23 = vor.u32 %v749_v12, %v746_v11  ;;  %v1246_v25 = vpop.f32.mrf.mxu2 }
 0x27e   :  { %v1247_v31 = vadd.f32 %v4967_v61, %v1246_v25  ;;  %v1301_v16 = vrot.slane %v1299_v13, 5  ;;  %v1304_v28 = vrot.slane %v1302_v19, 6 }
 0x27f   :  { %v751_v26 = vsel %vm5353_vm8, %v742_v21, %v750_v23  ;;  %v752_v27 = vrot.slane %v750_v23, 4  ;;  %v1320_v7 = vld [vmem:[#allocation3] sm:$0xc] }
 0x280   :  { %759 = vst.msk [vmem:[#allocation3 + $0x4] sm:$0xf] %vm7003_vm12, %v751_v26  ;;  %v1250_v18 = vmax.f32 %v1247_v31, 0.0  ;;  %v1305_v35 = vor.u32 %v1304_v28, %v1301_v16  ;;  %v845_v31 = vrot.slane %v843_v4, 1  ;;  %vm7013_vm12 = vcmask 1044480  }
 0x281   :  { %v761_v24 = vsel %vm5413_vm5, %v752_v27, %v760_v30 }
 0x282   :  { %762 = vst [vmem:[#allocation3 + $0x8] sm:$0x7] %v761_v24  ;;  %v1297_v20 = vpack.c.bf16 %v1250_v18, %v1250_v18  ;;  %v1321_v33 = vsel %vm5420_vm6, %v1305_v35, %v1320_v7  ;;  %v1306_v17 = vrot.slane %v1305_v35, 4 }
 0x284   :  { %v1308_v15 = vshrl.u32 %v1297_v20, 16  ;;  %v1311_v39 = vshll.u32 %v1297_v20, 16 }
 0x286   :  { %v1310_v32 = vrot.slane %v1308_v15, 5  ;;  %v1313_v36 = vrot.slane %v1311_v39, 6 }
 0x287   :  { %v5681_v37 = vld [vmem:[#allocation3] sm:$0xff]  }
 0x288   :  { %1322 = vst [vmem:[#allocation3] sm:$0xc] %v1321_v33  ;;  %v1314_v34 = vor.u32 %v1313_v36, %v1310_v32  ;;  %v5686_v38 = vshll.u32 %v5681_v37, 16  ;;  %v5689_v41 = vshrl.u32 %v5681_v37, 16  ;;  %v4867_v45 = vunpack.c.h.b16 %v5681_v37  ;;  %v4774_v36 = vld [vmem:[%s7010_s3 + $0x38] sm:$0xff] }
 0x289   :  { %v765_v40 = vld [vmem:[#allocation3 + $0x8] sm:$0xf]  ;;  %v789_v53 = vrot.slane %v5681_v37, 1  ;;  %1010 = vmatpush.bf16.msrb.mxu0 %v4774_v36  ;;  %v817_v36 = vrot.slane %v5681_v37, 3 }
 0x28a   :  { %v1315_v42 = vsel %vm5353_vm8, %v1306_v17, %v1314_v34  ;;  %v1316_v43 = vrot.slane %v1314_v34, 4  ;;  %v773_v44 = vunpack.c.l.b16 %v765_v40  ;;  %v1324_v46 = vld [vmem:[#allocation3 + $0x8] sm:$0x7]  ;;  %v780_v48 = vrot.slane %v5686_v38, 1 }
 0x28b   :  { %1323 = vst.msk [vmem:[#allocation3 + $0x4] sm:$0xf] %vm7004_vm13, %v1315_v42  ;;  %v794_v55 = vrot.slane %v5689_v41, 1  ;;  %v795_v59 = vrot.slane %v5686_v38, 2  ;;  %v4773_v42 = vld [vmem:[%s7010_s3 + $0x30] sm:$0xff]  ;;  %vm7014_vm13 = vmmov %vm7009_vm9 }
 0x28c   :  { %v1325_v50 = vsel %vm5413_vm5, %v1316_v43, %v1324_v46  ;;  %v5698_v51 = vpack.c.b16 %v773_v44, %v773_v44  ;;  %v5700_v52 = vpack.c.b16 %v773_v44, %v4867_v45  ;;  %v781_v61 = vor.u32 %v780_v48, %v5689_v41  ;;  %v1330_v44 = vld [vmem:[#allocation3 + $0xc] sm:$0x1] }
 0x28d   :  { %1326 = vst [vmem:[#allocation3 + $0x8] sm:$0x7] %v1325_v50  ;;  %v796_v6 = vor.u32 %v795_v59, %v794_v55  ;;  %1011 = vmatpush.bf16.msrb.mxu0 %v4773_v42  ;;  %v4769_v42 = vld [vmem:[%s7010_s3 + $0x10] sm:$0xff] }
 0x28e   :  { %v790_v57 = vrot.slane %v5698_v51, 1  ;;  %v5706_v58 = vshll.u32 %v5698_v51, 16  ;;  %v5710_v60 = vshrl.u32 %v5698_v51, 16  ;;  %v838_v63 = vshll.u32 %v5700_v52, 16 }
 0x28f   :  { %v849_v9 = vrot.slane %v5700_v52, 1  ;;  %v836_v12 = vshrl.u32 %v5700_v52, 16 }
 0x290   :  { %v791_v0 = vsel %vm169_vm10, %v789_v53, %v790_v57  ;;  %v785_v2 = vrot.slane %v5706_v58, 1  ;;  %v799_v1 = vrot.slane %v5710_v60, 1  ;;  %v800_v3 = vrot.slane %v5706_v58, 2 }
 0x291   :  { %792 = vrot.lane.b32.xlu2 %v791_v0, %s6964_s2  ;;  %v840_v8 = vrot.slane %v838_v63, 1  ;;  %v851_v27 = vsel %vm169_vm10, %v849_v9, %v850_v10  ;;  %v1397_v57 = vunpack.c.l.b16 %v1330_v44  ;;  %v4787_v44 = vld [vmem:[%s7010_s3 + $0xa0] sm:$0xff] }
 0x292   :  { %v786_v5 = vsel %vm7005_vm14, %v781_v61, %v785_v2  ;;  %v801_v47 = vor.u32 %v800_v3, %v799_v1  ;;  %v5720_v14 = vld [vmem:[#allocation3] sm:$0xff]   ;;  %vm7015_vm14 = vmmov %vm7007_vm7 }
 0x293   :  { %787 = vrot.lane.b32.xlu1 %v786_v5, %s7006_s27  ;;  %v1340_v19 = vshrl.u32 %v5720_v14, 16  ;;  %v1342_v21 = vshll.u32 %v5720_v14, 16  ;;  %v841_v25 = vor.u32 %v840_v8, %v836_v12  ;;  %v4875_v33 = vunpack.c.h.b16 %v5720_v14 }
 0x294   :  { %v802_v11 = vsel %vm7007_vm7, %v796_v6, %v801_v47  ;;  %v1329_v13 = vld [vmem:[#allocation3 + $0x8] sm:$0xf]  ;;  %v1381_v49 = vrot.slane %v5720_v14, 3  ;;  %v1398_v3 = vpack.c.b16 %v1397_v57, %v1397_v57  ;;  %v1353_v10 = vrot.slane %v5720_v14, 1  ;;  %vm7016_vm7 = vmmov %vm7009_vm9  ;;  %v4798_v57 = vld [vmem:[%s6997_s26 + $0x30] sm:$0xff] }
 0x295   :  { %803 = vrot.lane.b32.xlu0 %v802_v11, %s7008_s24  ;;  %v1337_v23 = vunpack.c.l.b16 %v1329_v13  ;;  %v1386_v16 = vrot.slane %v1340_v19, 3  ;;  %v1387_v28 = vrot.slane %v1342_v21, 4  ;;  %v1372_v24 = vrot.slane %v1340_v19, 2  ;;  %v1691_v56 = vld [vmem:[#allocation3 + $0x8] sm:$0x7] }
 0x296   :  { %v1373_v20 = vrot.slane %v1342_v21, 3  ;;  %v846_v35 = vsel %vm7009_vm9, %v841_v25, %v845_v31  ;;  %v1344_v55 = vrot.slane %v1342_v21, 1  ;;  %v1358_v61 = vrot.slane %v1340_v19, 1  ;;  %vm7017_vm9 = vmmov %vm7012_vm11 }
 0x297   :  { %v5729_v26 = vpack.c.b16 %v1337_v23, %v1337_v23  ;;  %v1388_v17 = vor.u32 %v1387_v28, %v1386_v16  ;;  %v5747_v48 = vpack.c.b16 %v1337_v23, %v4875_v33  ;;  %v1359_v62 = vrot.slane %v1342_v21, 2 }
 0x298   :  { %v1374_v22 = vor.u32 %v1373_v20, %v1372_v24  ;;  %v1345_v1 = vor.u32 %v1344_v55, %v1340_v19  ;;  %v1407_v8 = vshll.u32 %v1398_v3, 16  ;;  %v811_v11 = vrot.slane %v5710_v60, 2  ;;  %v4785_v55 = vld [vmem:[%s7010_s3 + $0x90] sm:$0xff] }
 0x299   :  { %852 = vrot.lane.b32.xlu2 %v851_v27, %s6964_s2  ;;  %v1347_v30 = vshll.u32 %v5729_v26, 16  ;;  %v1361_v18 = vshrl.u32 %v5729_v26, 16  ;;  %v1382_v43 = vrot.slane %v5729_v26, 3  ;;  %v1402_v0 = vshll.u32 %v5747_v48, 16 }
 0x29a   :  { %v1360_v4 = vor.u32 %v1359_v62, %v1358_v61  ;;  %v1354_v5 = vrot.slane %v5729_v26, 1  ;;  %v812_v12 = vrot.slane %v5706_v58, 3  ;;  %v1400_v13 = vshrl.u32 %v5747_v48, 16  ;;  %v4784_v61 = vld [vmem:[%s7010_s3 + $0x88] sm:$0xff] }
 0x29b   :  { %847 = vrot.lane.b32.xlu1 %v846_v35, %s7006_s27  ;;  %v1389_v15 = vrot.slane %v1361_v18, 3  ;;  %v1390_v39 = vrot.slane %v1347_v30, 4  ;;  %v1375_v7 = vrot.slane %v1361_v18, 2  ;;  %v1376_v32 = vrot.slane %v1347_v30, 3  ;;  %v4797_v62 = vld [vmem:[%s6997_s26 + $0x28] sm:$0xff] }
 0x29c   :  { %v1363_v50 = vrot.slane %v1361_v18, 1  ;;  %v1364_v53 = vrot.slane %v1347_v30, 2  ;;  %v1383_v59 = vsel %vm7013_vm12, %v1381_v49, %v1382_v43  ;;  %v1349_v63 = vrot.slane %v1347_v30, 1  ;;  %v4768_v43 = vld [vmem:[%s7010_s3 + $0x8] sm:$0xff]  ;;  %v4786_v49 = vld [vmem:[%s7010_s3 + $0x98] sm:$0xff] }
 0x29d   :  { %v1391_v34 = vor.u32 %v1390_v39, %v1389_v15  ;;  %v1377_v40 = vor.u32 %v1376_v32, %v1375_v7  ;;  %v1404_v47 = vrot.slane %v1402_v0, 1  ;;  %v1355_v19 = vsel %vm169_vm10, %v1353_v10, %v1354_v5  ;;  %v4783_v0 = vld [vmem:[%s7010_s3 + $0x80] sm:$0xff]  ;;  %v4795_v5 = vld [vmem:[%s6997_s26 + $0x18] sm:$0xff] }
 0x29e   :  { %v1365_v2 = vor.u32 %v1364_v53, %v1363_v50  ;;  %v1350_v6 = vsel %vm7014_vm13, %v1345_v1, %v1349_v63  ;;  %v808_v21 = vrot.slane %v5689_v41, 2  ;;  %v809_v23 = vrot.slane %v5686_v38, 3  ;;  %v4799_v50 = vld [vmem:[%s6997_s26 + $0x38] sm:$0xff]  ;;  %v4805_v53 = vld [vmem:[%s6997_s26 + $0x68] sm:$0xff]  ;;  %v4802_v1 = vld [vmem:[%s6997_s26 + $0x50] sm:$0xff] }
 0x29f   :  { %v1392_v45 = vsel %vm7011_vm2, %v1388_v17, %v1391_v34  ;;  %v1378_v46 = vsel %vm7012_vm11, %v1374_v22, %v1377_v40  ;;  %v1405_v25 = vor.u32 %v1404_v47, %v1400_v13  ;;  %v1409_v31 = vrot.slane %v1407_v8, 1  ;;  %vm7018_vm2 = vmmov %vm7013_vm12  ;;  %v4788_v22 = vld [vmem:[%s7010_s3 + $0xa8] sm:$0xff]  ;;  %v4807_v40 = vld [vmem:[%s6997_s26 + $0x78] sm:$0xff] }
 0x2a0   :  { %1379 = vrot.lane.b32.xlu0 %v1378_v46, %s7006_s27  ;;  %v1366_v9 = vsel %vm7015_vm14, %v1360_v4, %v1365_v2  ;;  %v813_v27 = vor.u32 %v812_v12, %v811_v11  ;;  %v810_v16 = vor.u32 %v809_v23, %v808_v21  ;;  %v1413_v28 = vrot.slane %v5747_v48, 1  ;;  %1040 = vmatpush.bf16.msrb.mxu1 %v4788_v22  ;;  %v4767_v46 = vld [vmem:[%s7010_s3] sm:$0xff]  ;;  %v4803_v63 = vld [vmem:[%s6997_s26 + $0x58] sm:$0xff]  ;;  %v4813_v4 = vld [vmem:[%s6997_s26 + $0xa8] sm:$0xff] }
 0x2a1   :  { %1393 = vrot.lane.b32.xlu2 %v1392_v45, %s7008_s24  ;;  %v1414_v30 = vrot.slane %v1398_v3, 1  ;;  %v1410_v18 = vsel %vm7016_vm7, %v1405_v25, %v1409_v31  ;;  %v825_v35 = vrot.slane %v5710_v60, 3  ;;  %v826_v15 = vrot.slane %v5706_v58, 4  ;;  %v4772_v58 = vld [vmem:[%s7010_s3 + $0x28] sm:$0xff]  ;;  %1588 = vmatpush.bf16.msra.mxu2 %v4807_v40  ;;  %v4806_v45 = vld [vmem:[%s6997_s26 + $0x70] sm:$0xff]  ;;  %v4796_v2 = vld [vmem:[%s6997_s26 + $0x20] sm:$0xff] }
 0x2a2   :  { %v814_v24 = vsel %vm7017_vm9, %v810_v16, %v813_v27  ;;  %v818_v39 = vrot.slane %v5698_v51, 3  ;;  %v822_v7 = vrot.slane %v5689_v41, 3  ;;  %v823_v32 = vrot.slane %v5686_v38, 4  ;;  %1012 = vmatpush.bf16.msrb.mxu0 %v4772_v58  ;;  %v4771_v38 = vld [vmem:[%s7010_s3 + $0x20] sm:$0xff]  ;;  %v4770_v41 = vld [vmem:[%s7010_s3 + $0x18] sm:$0xff]  ;;  %v4781_v47 = vld [vmem:[%s7010_s3 + $0x70] sm:$0xff] }
 0x2a3   :  { %1384 = vrot.lane.b32.xlu1 %v1383_v59, %s6964_s2  ;;  %v1415_v20 = vsel %vm169_vm10, %v1413_v28, %v1414_v30  ;;  %v827_v33 = vor.u32 %v826_v15, %v825_v35  ;;  %vm7019_vm11 = vsmask.f32 4352  ;;  %v4804_v59 = vld [vmem:[%s6997_s26 + $0x60] sm:$0xff]  ;;  %v4782_v3 = vld [vmem:[%s7010_s3 + $0x78] sm:$0xff]  ;;  %v4780_v11 = vld [vmem:[%s7010_s3 + $0x68] sm:$0xff]  ;;  %vm7020_vm12 = vcmask 1045504  }
 0x2a4   :  { %v819_v17 = vsel %vm7018_vm2, %v817_v36, %v818_v39  ;;  %v824_v34 = vor.u32 %v823_v32, %v822_v7  ;;  %1041 = vmatpush.bf16.msrb.mxu1 %v4787_v44  ;;  %1024 = vmatpush.bf16.msrb.mxu3 %v4782_v3  ;;  %v4812_v8 = vld [vmem:[%s6997_s26 + $0xa0] sm:$0xff]  ;;  %v4811_v12 = vld [vmem:[%s6997_s26 + $0x98] sm:$0xff]  ;;  %v4793_v13 = vld [vmem:[%s6997_s26 + $0x8] sm:$0xff]  ;;  %vm7022_vm14 = vcmask 257024  }
 0x2a5   :  { %1589 = vmatpush.bf16.msra.mxu2 %v4806_v45  ;;  %v4800_v10 = vld [vmem:[%s6997_s26 + $0x40] sm:$0xff]  ;;  %v4810_v21 = vld [vmem:[%s6997_s26 + $0x90] sm:$0xff]  ;;  %v4778_v25 = vld [vmem:[%s7010_s3 + $0x58] sm:$0xff] }
 0x2a6   :  { %v828_v60 = vsel %vm7019_vm11, %v824_v34, %v827_v33  ;;  %1013 = vmatpush.bf16.msrb.mxu0 %v4771_v38  ;;  %v4792_v23 = vld [vmem:[%s6997_s26] sm:$0xff]  ;;  %v4809_v27 = vld [vmem:[%s6997_s26 + $0x88] sm:$0xff]  ;;  %v4777_v16 = vld [vmem:[%s7010_s3 + $0x50] sm:$0xff]  ;;  %v1370_v33 = vrot.slane %v5729_v26, 2  ;;  %v1369_v34 = vrot.slane %v5720_v14, 2 }
 0x2a7   :  { %v4808_v28 = vld [vmem:[%s6997_s26 + $0x80] sm:$0xff]  ;;  %v4776_v35 = vld [vmem:[%s7010_s3 + $0x48] sm:$0xff]  ;;  %vm7021_vm13 = vmmov %vm7020_vm12 }
 0x2a8   :  { %1351 = vrot.lane.b32.xlu0 %v1350_v6, %s7006_s27  ;;  %1042 = vmatpush.bf16.msrb.mxu1 %v4786_v49  ;;  %v4801_v6 = vld [vmem:[%s6997_s26 + $0x48] sm:$0xff]  ;;  %v4775_v7 = vld [vmem:[%s7010_s3 + $0x40] sm:$0xff] }
 0x2a9   :  { %1367 = vrot.lane.b32.xlu2 %v1366_v9, %s7008_s24  ;;  %1590 = vmatpush.bf16.msra.mxu2 %v4805_v53  ;;  %v4794_v9 = vld [vmem:[%s6997_s26 + $0x10] sm:$0xff]  ;;  %v806_v53 = vrot.slane %v5698_v51, 2  ;;  %s5202_s26 = smov 80  }
 0x2aa   :  { %1014 = vmatpush.bf16.msrb.mxu0 %v4770_v41  ;;  %1025 = vmatpush.bf16.msrb.mxu3 %v4781_v47 }
 0x2ab   :  { %1356 = vrot.lane.b32.xlu1 %v1355_v19, %s6964_s2  ;;  %v4779_v19 = vld [vmem:[%s7010_s3 + $0x60] sm:$0xff] }
 0x2ac   :  { %1043 = vmatpush.bf16.msrb.mxu1 %v4785_v55 }
 0x2ad   :  { %1591 = vmatpush.bf16.msra.mxu2 %v4804_v59  ;;  %v805_v59 = vrot.slane %v5681_v37, 2 }
 0x2ae   :  { %1015 = vmatpush.bf16.msrb.mxu0 %v4769_v42  ;;  %1026 = vmatpush.bf16.msrb.mxu3 %v4780_v11 }
 0x2b0   :  { %1411 = vrot.lane.b32.xlu0 %v1410_v18, %s7006_s27  ;;  %1044 = vmatpush.bf16.msrb.mxu1 %v4784_v61 }
 0x2b1   :  { %815 = vrot.lane.b32.xlu2 %v814_v24, %s7006_s27  ;;  %1592 = vmatpush.bf16.msra.mxu2 %v4803_v63 }
 0x2b2   :  { %1016 = vmatpush.bf16.msrb.mxu0 %v4768_v43  ;;  %1027 = vmatpush.bf16.msrb.mxu3 %v4779_v19 }
 0x2b3   :  { %1416 = vrot.lane.b32.xlu1 %v1415_v20, %s6964_s2 }
 0x2b4   :  { %1045 = vmatpush.bf16.msrb.mxu1 %v4783_v0 }
 0x2b5   :  { %1593 = vmatpush.bf16.msra.mxu2 %v4802_v1 }
 0x2b6   :  { %1017 = vmatpush.bf16.msrb.mxu0 %v4767_v46  ;;  %1028 = vmatpush.bf16.msrb.mxu3 %v4778_v25 }
 0x2b8   :  { %820 = vrot.lane.b32.xlu0 %v819_v17, %s6964_s2  ;;  %1604 = vmatpush.bf16.msra.mxu1 %v4813_v4 }
 0x2b9   :  { %1594 = vmatpush.bf16.msra.mxu2 %v4801_v6 }
 0x2ba   :  { %1574 = vmatpush.bf16.msra.mxu0 %v4799_v50  ;;  %1029 = vmatpush.bf16.msrb.mxu3 %v4777_v16  ;;  %v5949_v16 = vld [vmem:[%s6915_s7] ss:$0 sm:$0xff] }
 0x2bb   :  { %829 = vrot.lane.b32.xlu1 %v828_v60, %s7008_s24  ;;  %v1371_v60 = vsel %vm7020_vm12, %v1369_v34, %v1370_v33 }
 0x2bc   :  { %1605 = vmatpush.bf16.msra.mxu1 %v4812_v8 }
 0x2bd   :  { %1595 = vmatpush.bf16.msra.mxu2 %v4800_v10 }
 0x2be   :  { %1575 = vmatpush.bf16.msra.mxu0 %v4798_v57  ;;  %1030 = vmatpush.bf16.msrb.mxu3 %v4776_v35  ;;  %v1687_v35 = vld [vmem:[#allocation3] sm:$0xc] }
 0x2c0   :  { %1606 = vmatpush.bf16.msra.mxu1 %v4811_v12 }
 0x2c2   :  { %1576 = vmatpush.bf16.msra.mxu0 %v4797_v62  ;;  %1031 = vmatpush.bf16.msrb.mxu3 %v4775_v7 }
 0x2c4   :  { %1607 = vmatpush.bf16.msra.mxu1 %v4810_v21 }
 0x2c6   :  { %1577 = vmatpush.bf16.msra.mxu0 %v4796_v2 }
 0x2c8   :  { %1608 = vmatpush.bf16.msra.mxu1 %v4809_v27 }
 0x2ca   :  { %1578 = vmatpush.bf16.msra.mxu0 %v4795_v5 }
 0x2cc   :  { %1609 = vmatpush.bf16.msra.mxu1 %v4808_v28 }
 0x2ce   :  { %1579 = vmatpush.bf16.msra.mxu0 %v4794_v9 }
 0x2d2   :  { %1580 = vmatpush.bf16.msra.mxu0 %v4793_v13 }
 0x2d6   :  { %1581 = vmatpush.bf16.msra.mxu0 %v4792_v23 }
 0x2eb   :  { %v793_v31 = vpop.permute.xlu2 %792 }
 0x2f3   :  { %v853_v39 = vpop.permute.xlu2 %852 }
 0x2fb   :  { %v1394_v38 = vpop.permute.xlu2 %1393 }
 0x303   :  { %v1368_v43 = vpop.permute.xlu2 %1367 }
 0x305   :  { %v788_v30 = vpop.permute.xlu1 %787 }
 0x306   :  { %v855_v18 = vsel %vm265_vm15, %v5681_v37, %v788_v30  ;;  %v4969_v37 = vld [vmem:[%s7002_s4] ss:$0 sm:$0xff]  ;;  %s7023_s4 = smov 64  }
 0x307   :  { %v804_v24 = vpop.permute.xlu0 %803  ;;  %v857_v20 = vsel %vm487_vm0, %v855_v18, %v793_v31 }
 0x308   :  { %v859_v15 = vsel %vm490_vm1, %v857_v20, %v804_v24 }
 0x309   :  { %1018 = vmatmul.bf16.vlgmr.msrb.gmra.mxu0 %v859_v15 }
 0x30b   :  { %v816_v61 = vpop.permute.xlu2 %815 }
 0x30d   :  { %v848_v32 = vpop.permute.xlu1 %847 }
 0x30e   :  { %v870_v36 = vsel %vm265_vm15, %v5700_v52, %v848_v32 }
 0x30f   :  { %v872_v17 = vsel %vm487_vm0, %v870_v36, %v853_v39 }
 0x310   :  { %4392 = vmatmul.msk.bf16.vlgmr.msrb.gmra.mxu1 %vm490_vm1, %v872_v17 }
 0x312   :  { %v1380_v58 = vpop.permute.xlu0 %1379 }
 0x313   :  { %v1427_v41 = vsel %vm265_vm15, %v1371_v60, %v1380_v58 }
 0x315   :  { %v1385_v22 = vpop.permute.xlu1 %1384 }
 0x316   :  { %v1429_v40 = vsel %vm487_vm0, %v1427_v41, %v1385_v22 }
 0x317   :  { %v1431_v42 = vsel %vm490_vm1, %v1429_v40, %v1394_v38 }
 0x318   :  { %1596 = vmatmul.bf16.vlgmr.msra.gmra.mxu2 %v1431_v42 }
 0x31a   :  { %v1352_v52 = vpop.permute.xlu0 %1351 }
 0x31b   :  { %v1419_v26 = vsel %vm265_vm15, %v5720_v14, %v1352_v52  ;;  %v807_v14 = vsel %vm7021_vm13, %v805_v59, %v806_v53 }
 0x31c   :  { %v863_v62 = vsel %vm265_vm15, %v807_v14, %v816_v61 }
 0x31d   :  { %v1357_v44 = vpop.permute.xlu1 %1356 }
 0x31e   :  { %v1421_v45 = vsel %vm487_vm0, %v1419_v26, %v1357_v44 }
 0x31f   :  { %v1423_v46 = vsel %vm490_vm1, %v1421_v45, %v1368_v43 }
 0x320   :  { %1582 = vmatmul.bf16.vlgmr.msra.gmra.mxu0 %v1423_v46 }
 0x322   :  { %v1412_v49 = vpop.permute.xlu0 %1411 }
 0x323   :  { %v1434_v50 = vsel %vm265_vm15, %v5747_v48, %v1412_v49 }
 0x325   :  { %v1417_v55 = vpop.permute.xlu1 %1416 }
 0x326   :  { %v1436_v57 = vsel %vm487_vm0, %v1434_v50, %v1417_v55 }
 0x327   :  { %4496 = vmatmul.msk.bf16.vlgmr.msra.gmra.mxu1 %vm490_vm1, %v1436_v57 }
 0x32a   :  { %v821_v63 = vpop.permute.xlu0 %820 }
 0x32b   :  { %v865_v0 = vsel %vm487_vm0, %v863_v62, %v821_v63 }
 0x32d   :  { %v830_v2 = vpop.permute.xlu1 %829 }
 0x32e   :  { %v867_v48 = vsel %vm490_vm1, %v865_v0, %v830_v2  ;;  %v1697_v2 = vld [vmem:[#allocation3 + $0xc] sm:$0x1] }
 0x32f   :  { %1032 = vmatmul.bf16.vlgmr.msrb.gmra.mxu3 %v867_v48 }
 0x386   :  { %v1019_v51 = vpop.f32.mrf.mxu0 }
 0x387   :  { %v1020_v15 = vadd.f32 %v5949_v16, %v1019_v51 }
 0x38d   :  { %v1047_v1 = vpop.f32.mrf.mxu1 }
 0x38e   :  { %v5939_v3 = vpop.f32.mrf.mxu0 }
 0x395   :  { %v5944_v4 = vpop.f32.mrf.mxu1 }
 0x39b   :  { %v1597_v47 = vpop.f32.mrf.mxu2 }
 0x39d   :  { %v1583_v5 = vpop.f32.mrf.mxu0 }
 0x39e   :  { %v1584_v6 = vadd.f32 %v4969_v37, %v1583_v5 }
 0x3a0   :  { %v1598_v8 = vadd.f32 %v1597_v47, %v1584_v6 }
 0x3a3   :  { %v1599_v21 = vpop.f32.mrf.mxu2 }
 0x3a4   :  { %v1611_v9 = vpop.f32.mrf.mxu1 }
 0x3a5   :  { %v1612_v10 = vadd.f32 %v1611_v9, %v1598_v8  ;;  %v1585_v11 = vpop.f32.mrf.mxu0  ;;  %v1764_v9 = vunpack.c.l.b16 %v1697_v2  ;;  %v4832_v2 = vld [vmem:[%s7010_s3 + $0x90] sm:$0xff] }
 0x3a6   :  { %v1586_v13 = vadd.f32 %v4969_v37, %v1585_v11 }
 0x3a7   :  { %v1616_v12 = vmax.f32 %v1612_v10, 0.0 }
 0x3a8   :  { %v1600_v31 = vadd.f32 %v1599_v21, %v1586_v13 }
 0x3a9   :  { %v1663_v19 = vpack.c.bf16 %v1616_v12, %v1616_v12 }
 0x3ab   :  { %v1666_v23 = vshrl.u32 %v1663_v19, 16  ;;  %v1669_v25 = vshll.u32 %v1663_v19, 16 }
 0x3ac   :  { %v1613_v27 = vpop.f32.mrf.mxu1 }
 0x3ad   :  { %v1668_v28 = vrot.slane %v1666_v23, 5  ;;  %v1671_v30 = vrot.slane %v1669_v25, 6  ;;  %v1614_v18 = vadd.f32 %v1613_v27, %v1600_v31 }
 0x3af   :  { %v1672_v24 = vor.u32 %v1671_v30, %v1668_v28  ;;  %v1617_v20 = vmax.f32 %v1614_v18, 0.0  ;;  %v1765_v18 = vpack.c.b16 %v1764_v9, %v1764_v9 }
 0x3b1   :  { %v1688_v39 = vsel %vm5420_vm6, %v1672_v24, %v1687_v35  ;;  %v1664_v7 = vpack.c.bf16 %v1617_v20, %v1617_v20  ;;  %v1673_v38 = vrot.slane %v1672_v24, 4  ;;  %vm7026_vm6 = vmmov %vm7018_vm2 }
 0x3b2   :  { %1689 = vst [vmem:[#allocation3] sm:$0xc] %v1688_v39  ;;  %v1033_v32 = vpop.f32.mrf.mxu3 }
 0x3b3   :  { %v1675_v36 = vshrl.u32 %v1664_v7, 16  ;;  %v1678_v33 = vshll.u32 %v1664_v7, 16  ;;  %v1034_v17 = vadd.f32 %v1033_v32, %v1020_v15  ;;  %v1774_v15 = vshll.u32 %v1765_v18, 16 }
 0x3b4   :  { %v1781_v32 = vrot.slane %v1765_v18, 1 }
 0x3b5   :  { %v1677_v34 = vrot.slane %v1675_v36, 5  ;;  %v1680_v60 = vrot.slane %v1678_v33, 6  ;;  %v5954_v58 = vadd.f32 %v1047_v1, %v1034_v17  ;;  %v1776_v17 = vrot.slane %v1774_v15, 1 }
 0x3b7   :  { %v1681_v41 = vor.u32 %v1680_v60, %v1677_v34 }
 0x3b9   :  { %v1682_v22 = vsel %vm5353_vm8, %v1673_v38, %v1681_v41  ;;  %v1683_v40 = vrot.slane %v1681_v41, 4  ;;  %vm7024_vm8 = vmmov %vm7016_vm7  ;;  %v4821_v38 = vld [vmem:[%s7010_s3 + $0x38] sm:$0xff] }
 0x3ba   :  { %1690 = vst.msk [vmem:[#allocation3 + $0x4] sm:$0xf] %vm7022_vm14, %v1682_v22  ;;  %vm7027_vm7 = vmmov %vm7017_vm9  ;;  %1941 = vmatpush.bf16.msra.mxu3 %v4821_v38  ;;  %v1035_v41 = vpop.f32.mrf.mxu3  ;;  %v1022_v22 = vadd.f32 %v5949_v16, %v5939_v3  ;;  %v4820_v3 = vld [vmem:[%s7010_s3 + $0x30] sm:$0xff]  ;;  %v4819_v16 = vld [vmem:[%s7010_s3 + $0x28] sm:$0xff] }
 0x3bb   :  { %v1692_v42 = vsel %vm5413_vm5, %v1683_v40, %v1691_v56  ;;  %vm7025_vm5 = vsmask.f32 6400  ;;  %vm7028_vm9 = vmmov %vm7019_vm11  ;;  %v1052_v56 = vmax.f32 %v5954_v58, 0.0 }
 0x3bc   :  { %1693 = vst [vmem:[#allocation3 + $0x8] sm:$0x7] %v1692_v42  ;;  %vm7029_vm2 = vmmov %vm7024_vm8  ;;  %v1036_v40 = vadd.f32 %v1035_v41, %v1022_v22 }
 0x3be   :  { %v6002_v42 = vadd.f32 %v5944_v4, %v1036_v40  ;;  %v4829_v4 = vld [vmem:[%s7010_s3 + $0x78] sm:$0xff]  ;;  %1942 = vmatpush.bf16.msra.mxu3 %v4820_v3 }
 0x3bf   :  { %1955 = vmatpush.bf16.msrb.mxu0 %v4829_v4 }
 0x3c1   :  { %v5961_v52 = vld [vmem:[#allocation3] sm:$0xff]  }
 0x3c2   :  { %v1709_v26 = vshll.u32 %v5961_v52, 16  ;;  %v1707_v44 = vshrl.u32 %v5961_v52, 16  ;;  %v1720_v53 = vrot.slane %v5961_v52, 1  ;;  %v4879_v61 = vunpack.c.h.b16 %v5961_v52  ;;  %1943 = vmatpush.bf16.msra.mxu3 %v4819_v16 }
 0x3c3   :  { %v1696_v43 = vld [vmem:[#allocation3 + $0x8] sm:$0xf]  ;;  %v1748_v19 = vrot.slane %v5961_v52, 3 }
 0x3c4   :  { %v1704_v45 = vunpack.c.l.b16 %v1696_v43  ;;  %v1711_v46 = vrot.slane %v1709_v26, 1  ;;  %v1725_v29 = vrot.slane %v1707_v44, 1  ;;  %v1726_v50 = vrot.slane %v1709_v26, 2 }
 0x3c5   :  { %v1739_v47 = vrot.slane %v1707_v44, 2  ;;  %v1740_v8 = vrot.slane %v1709_v26, 3  ;;  %v1753_v23 = vrot.slane %v1707_v44, 3  ;;  %v1754_v25 = vrot.slane %v1709_v26, 4 }
 0x3c6   :  { %v5965_v49 = vpack.c.b16 %v1704_v45, %v1704_v45  ;;  %v1712_v59 = vor.u32 %v1711_v46, %v1707_v44  ;;  %v1727_v48 = vor.u32 %v1726_v50, %v1725_v29  ;;  %v5974_v51 = vpack.c.b16 %v1704_v45, %v4879_v61  ;;  %v4818_v45 = vld [vmem:[%s7010_s3 + $0x20] sm:$0xff]  ;;  %v4828_v46 = vld [vmem:[%s7010_s3 + $0x70] sm:$0xff]  ;;  %v4817_v29 = vld [vmem:[%s7010_s3 + $0x18] sm:$0xff] }
 0x3c7   :  { %v1741_v28 = vor.u32 %v1740_v8, %v1739_v47  ;;  %v1755_v20 = vor.u32 %v1754_v25, %v1753_v23  ;;  %v1987_v26 = vsel %vm265_vm15, %v1052_v56, 0.0  ;;  %v1053_v43 = vmax.f32 %v6002_v42, 0.0  ;;  %1944 = vmatpush.bf16.msra.mxu3 %v4818_v45  ;;  %1956 = vmatpush.bf16.msrb.mxu0 %v4828_v46  ;;  %v4827_v50 = vld [vmem:[%s7010_s3 + $0x68] sm:$0xff]  ;;  %v4834_v61 = vld [vmem:[%s7010_s3 + $0xa0] sm:$0xff] }
 0x3c8   :  { %v1721_v55 = vrot.slane %v5965_v49, 1  ;;  %v1714_v54 = vshll.u32 %v5965_v49, 16  ;;  %v1728_v57 = vshrl.u32 %v5965_v49, 16  ;;  %v1749_v11 = vrot.slane %v5965_v49, 3 }
 0x3c9   :  { %v1769_v31 = vshll.u32 %v5974_v51, 16  ;;  %v1780_v7 = vrot.slane %v5974_v51, 1  ;;  %v1767_v36 = vshrl.u32 %v5974_v51, 16  ;;  %v1990_v44 = vsel %vm265_vm15, %v1053_v43, 0.0 }
 0x3ca   :  { %v1722_v14 = vsel %vm169_vm10, %v1720_v53, %v1721_v55  ;;  %v1716_v62 = vrot.slane %v1714_v54, 1  ;;  %v1730_v63 = vrot.slane %v1728_v57, 1  ;;  %v1731_v0 = vrot.slane %v1714_v54, 2  ;;  %v4816_v53 = vld [vmem:[%s7010_s3 + $0x10] sm:$0xff]  ;;  %v4826_v55 = vld [vmem:[%s7010_s3 + $0x60] sm:$0xff] }
 0x3cb   :  { %1723 = vrot.lane.b32.xlu0 %v1722_v14, %s7023_s4  ;;  %v1742_v5 = vrot.slane %v1728_v57, 2  ;;  %v1743_v6 = vrot.slane %v1714_v54, 3  ;;  %v1756_v12 = vrot.slane %v1728_v57, 3  ;;  %v1757_v13 = vrot.slane %v1714_v54, 4  ;;  %1945 = vmatpush.bf16.msra.mxu3 %v4817_v29  ;;  %v4835_v54 = vld [vmem:[%s7010_s3 + $0xa8] sm:$0xff]  ;;  %v4814_v14 = vld [vmem:[%s7010_s3] sm:$0xff] }
 0x3cc   :  { %v1717_v1 = vsel %vm7024_vm8, %v1712_v59, %v1716_v62  ;;  %v1732_v37 = vor.u32 %v1731_v0, %v1730_v63  ;;  %v1750_v27 = vsel %vm7026_vm6, %v1748_v19, %v1749_v11  ;;  %v1771_v35 = vrot.slane %v1769_v31, 1  ;;  %1957 = vmatpush.bf16.msrb.mxu0 %v4827_v50  ;;  %v4815_v57 = vld [vmem:[%s7010_s3 + $0x8] sm:$0xff]  ;;  %v4825_v59 = vld [vmem:[%s7010_s3 + $0x58] sm:$0xff]  ;;  %1971 = vmatpush.bf16.msrb.mxu1 %v4835_v54  ;;  %v4824_v62 = vld [vmem:[%s7010_s3 + $0x50] sm:$0xff] }
 0x3cd   :  { %1718 = vrot.lane.b32.xlu2 %v1717_v1, %s7006_s27  ;;  %v1744_v21 = vor.u32 %v1743_v6, %v1742_v5  ;;  %v1758_v30 = vor.u32 %v1757_v13, %v1756_v12  ;;  %v1782_v34 = vsel %vm169_vm10, %v1780_v7, %v1781_v32  ;;  %v4833_v63 = vld [vmem:[%s7010_s3 + $0x98] sm:$0xff]  ;;  %v4823_v0 = vld [vmem:[%s7010_s3 + $0x48] sm:$0xff]  ;;  %v1737_v12 = vrot.slane %v5965_v49, 2  ;;  %vm7030_vm10 = vmmov %vm7020_vm12 }
 0x3ce   :  { %v1733_v10 = vsel %vm7025_vm5, %v1727_v48, %v1732_v37  ;;  %v1772_v33 = vor.u32 %v1771_v35, %v1767_v36  ;;  %v4822_v48 = vld [vmem:[%s7010_s3 + $0x40] sm:$0xff]  ;;  %v4831_v1 = vld [vmem:[%s7010_s3 + $0x88] sm:$0xff]  ;;  %v1736_v13 = vrot.slane %v5961_v52, 2 }
 0x3cf   :  { %1734 = vrot.lane.b32.xlu1 %v1733_v10, %s7008_s24  ;;  %v1745_v24 = vsel %vm7027_vm7, %v1741_v28, %v1744_v21  ;;  %v1759_v39 = vsel %vm7028_vm9, %v1755_v20, %v1758_v30  ;;  %1946 = vmatpush.bf16.msra.mxu3 %v4816_v53  ;;  %v4830_v37 = vld [vmem:[%s7010_s3 + $0x80] sm:$0xff]  ;;  %s5203_s3 = smov 72  }
 0x3d0   :  { %v1777_v60 = vsel %vm7029_vm2, %v1772_v33, %v1776_v17  ;;  %1958 = vmatpush.bf16.msrb.mxu0 %v4826_v55  ;;  %1972 = vmatpush.bf16.msrb.mxu1 %v4834_v61  ;;  %v1738_v21 = vsel %vm7030_vm10, %v1736_v13, %v1737_v12 }
 0x3d3   :  { %1751 = vrot.lane.b32.xlu0 %v1750_v27, %s7023_s4  ;;  %1947 = vmatpush.bf16.msra.mxu3 %v4815_v57 }
 0x3d4   :  { %1959 = vmatpush.bf16.msrb.mxu0 %v4825_v59  ;;  %1973 = vmatpush.bf16.msrb.mxu1 %v4833_v63 }
 0x3d5   :  { %1746 = vrot.lane.b32.xlu2 %v1745_v24, %s7006_s27 }
 0x3d7   :  { %1760 = vrot.lane.b32.xlu1 %v1759_v39, %s7008_s24  ;;  %1948 = vmatpush.bf16.msra.mxu3 %v4814_v14 }
 0x3d8   :  { %1960 = vmatpush.bf16.msrb.mxu0 %v4824_v62  ;;  %1974 = vmatpush.bf16.msrb.mxu1 %v4832_v2 }
 0x3db   :  { %1783 = vrot.lane.b32.xlu0 %v1782_v34, %s7023_s4  ;;  %v4970_v34 = vld [vmem:[%s6915_s7] ss:$0 sm:$0xff] }
 0x3dc   :  { %1961 = vmatpush.bf16.msrb.mxu0 %v4823_v0  ;;  %1975 = vmatpush.bf16.msrb.mxu1 %v4831_v1 }
 0x3dd   :  { %1778 = vrot.lane.b32.xlu2 %v1777_v60, %s7006_s27 }
 0x3e0   :  { %1962 = vmatpush.bf16.msrb.mxu0 %v4822_v48  ;;  %1976 = vmatpush.bf16.msrb.mxu1 %v4830_v37 }
 0x401   :  { %1988 = vadd.xlane.f32.xlu1 %v1987_v26 }
 0x406   :  { %1991 = vadd.xlane.f32.xlu2 %v1990_v44 }
 0x427   :  { %v1719_v5 = vpop.permute.xlu2 %1718 }
 0x428   :  { %v1786_v47 = vsel %vm265_vm15, %v5961_v52, %v1719_v5  ;;  %v5198_v52 = vmov 32.0  }
 0x429   :  { %4989 = vrcp.f32 %v5198_v52  ;;  %v4971_v52 = vld [vmem:[%s6916_s8] ss:$0 sm:$0xff]  ;;  %s7048_s8 = smov 8  }
 0x42f   :  { %v1747_v8 = vpop.permute.xlu2 %1746  ;;  %v4990_v24 = vpop.eup %4989 }
 0x430   :  { %v1794_v23 = vsel %vm265_vm15, %v1738_v21, %v1747_v8  ;;  %v2000_v20 = vmul.f32 32.0, %v4990_v24  ;;  %vm2004_vm11 = vweird.f32 %v4990_v24 }
 0x432   :  { %v2001_v35 = vsub.f32 1.0, %v2000_v20 }
 0x434   :  { %v2002_v15 = vmul.f32 %v4990_v24, %v2001_v35 }
 0x436   :  { %v2003_v39 = vadd.f32 %v4990_v24, %v2002_v15 }
 0x437   :  { %v1779_v27 = vpop.permute.xlu2 %1778 }
 0x438   :  { %v1801_v30 = vsel %vm265_vm15, %v5974_v51, %v1779_v27  ;;  %v6088_v7 = vsel %vm2004_vm11, %v4990_v24, %v2003_v39  ;;  %v4972_v39 = vld [vmem:[%s6917_s9] ss:$0 sm:$0xff]  ;;  %s7049_s9 = smov 16  }
 0x43d   :  { %v1724_v6 = vpop.permute.xlu0 %1723 }
 0x43e   :  { %v1788_v9 = vsel %vm487_vm0, %v1786_v47, %v1724_v6  ;;  %v4837_v6 = vld [vmem:[%s6918_s10 + $0x8] sm:$0xff] }
 0x43f   :  { %2136 = vmatpush.bf16.msrb.mxu2 %v4837_v6 }
 0x441   :  { %v1735_v10 = vpop.permute.xlu1 %1734 }
 0x442   :  { %v1790_v11 = vsel %vm490_vm1, %v1788_v9, %v1735_v10  ;;  %v4836_v9 = vld [vmem:[%s6918_s10] sm:$0xff] }
 0x443   :  { %1949 = vmatmul.bf16.vlgmr.msra.gmra.mxu3 %v1790_v11  ;;  %2137 = vmatpush.bf16.msrb.mxu2 %v4836_v9 }
 0x445   :  { %v1752_v19 = vpop.permute.xlu0 %1751 }
 0x446   :  { %v1796_v25 = vsel %vm487_vm0, %v1794_v23, %v1752_v19 }
 0x449   :  { %v1761_v31 = vpop.permute.xlu1 %1760 }
 0x44a   :  { %v1798_v28 = vsel %vm490_vm1, %v1796_v25, %v1761_v31 }
 0x44b   :  { %1963 = vmatmul.bf16.vlgmr.msrb.gmra.mxu0 %v1798_v28 }
 0x44d   :  { %v1784_v18 = vpop.permute.xlu0 %1783 }
 0x44e   :  { %v1803_v49 = vsel %vm487_vm0, %v1801_v30, %v1784_v18 }
 0x44f   :  { %4585 = vmatmul.msk.bf16.vlgmr.msrb.gmra.mxu1 %vm490_vm1, %v1803_v49 }
 0x474   :  { %v1989_v32 = vpop.xlane.xlu1 %1988 }
 0x475   :  { %v2006_v36 = vmul.f32 %v6088_v7, %v1989_v32 }
 0x477   :  { %v6093_v51 = vsub.f32 %v1052_v56, %v2006_v36 }
 0x479   :  { %v2014_v33 = vmul.f32 %v6093_v51, %v6093_v51  ;;  %v1992_v16 = vpop.xlane.xlu2 %1991 }
 0x47a   :  { %v2007_v29 = vmul.f32 %v6088_v7, %v1992_v16 }
 0x47b   :  { %v2018_v17 = vsel %vm265_vm15, %v2014_v33, 0.0 }
 0x47c   :  { %2019 = vadd.xlane.f32.xlu1 %v2018_v17  ;;  %v2011_v55 = vsub.f32 %v1053_v43, %v2007_v29 }
 0x47e   :  { %v2015_v57 = vmul.f32 %v2011_v55, %v2011_v55 }
 0x480   :  { %v2021_v59 = vsel %vm265_vm15, %v2015_v57, 0.0 }
 0x4c6   :  { %v1950_v60 = vpop.f32.mrf.mxu3 }
 0x4c7   :  { %v1951_v38 = vadd.f32 %v4970_v34, %v1950_v60 }
 0x4c8   :  { %v1964_v41 = vpop.f32.mrf.mxu0 }
 0x4c9   :  { %v1965_v22 = vadd.f32 %v1964_v41, %v1951_v38 }
 0x4cc   :  { %v1978_v40 = vpop.f32.mrf.mxu1 }
 0x4cd   :  { %v1979_v26 = vadd.f32 %v1978_v40, %v1965_v22 }
 0x4ce   :  { %v1952_v44 = vpop.f32.mrf.mxu3 }
 0x4cf   :  { %v1983_v58 = vmax.f32 %v1979_v26, 0.0  ;;  %v1953_v56 = vadd.f32 %v4970_v34, %v1952_v44 }
 0x4d0   :  { %v1966_v3 = vpop.f32.mrf.mxu0 }
 0x4d1   :  { %v1993_v4 = vsel %vm265_vm15, %v1983_v58, 0.0  ;;  %v1967_v45 = vadd.f32 %v1966_v3, %v1953_v56 }
 0x4d2   :  { %1994 = vadd.xlane.f32.xlu0 %v1993_v4 }
 0x4d4   :  { %v1980_v46 = vpop.f32.mrf.mxu1 }
 0x4d5   :  { %v1981_v50 = vadd.f32 %v1980_v46, %v1967_v45 }
 0x4d7   :  { %v1984_v53 = vmax.f32 %v1981_v50, 0.0 }
 0x4d9   :  { %v1996_v54 = vsel %vm265_vm15, %v1984_v53, 0.0 }
 0x4da   :  { %1997 = vadd.xlane.f32.xlu2 %v1996_v54 }
 0x4e2   :  { %2022 = vadd.xlane.f32.xlu2 %v2021_v59 }
 0x4ef   :  { %v2020_v61 = vpop.xlane.xlu1 %2019 }
 0x4f0   :  { %v2030_v14 = vmul.f32 %v2020_v61, %v6088_v7 }
 0x4f2   :  { %v2034_v62 = vadd.f32 1e-05, %v2030_v14 }
 0x4f4   :  { %4991 = vrsqrt.f32 %v2034_v62  ;;  %vm2044_vm12 = vweird.f32 %v2034_v62 }
 0x4fa   :  { %v4992_v1 = vpop.eup %4991 }
 0x4fb   :  { %v2039_v47 = vmul.f32 %v4992_v1, %v2034_v62  ;;  %vm2045_vm1 = vweird.f32 %v4992_v1 }
 0x4fc   :  { %vm2046_vm13 = vmor %vm2044_vm12, %vm2045_vm1  ;;  %vm7031_vm1 = vcmask 64512  }
 0x4fd   :  { %v2040_v11 = vmul.f32 %v4992_v1, %v2039_v47  ;;  %vm7032_vm12 = vmmov %vm7031_vm1 }
 0x4ff   :  { %v2041_v21 = vmul.f32 0.5, %v2040_v11 }
 0x501   :  { %v2042_v23 = vsub.f32 1.5, %v2041_v21 }
 0x503   :  { %v2043_v31 = vmul.f32 %v4992_v1, %v2042_v23 }
 0x505   :  { %v2047_v30 = vsel %vm2046_vm13, %v4992_v1, %v2043_v31  ;;  %vm7033_vm13 = vmmov %vm7031_vm1 }
 0x506   :  { %v2078_v24 = vmul.f32 %v2047_v30, %v6093_v51 }
 0x508   :  { %v2085_v15 = vmul.f32 %v4971_v52, %v2078_v24 }
 0x50a   :  { %v6136_v17 = vadd.f32 %v4972_v39, %v2085_v15 }
 0x545   :  { %v1995_v63 = vpop.xlane.xlu0 %1994 }
 0x546   :  { %v2008_v0 = vmul.f32 %v6088_v7, %v1995_v63 }
 0x548   :  { %v6109_v2 = vsub.f32 %v1983_v58, %v2008_v0 }
 0x54a   :  { %v2016_v42 = vmul.f32 %v6109_v2, %v6109_v2 }
 0x54c   :  { %v2024_v43 = vsel %vm265_vm15, %v2016_v42, 0.0 }
 0x54d   :  { %2025 = vadd.xlane.f32.xlu0 %v2024_v43  ;;  %v1998_v48 = vpop.xlane.xlu2 %1997 }
 0x54e   :  { %v2009_v37 = vmul.f32 %v6088_v7, %v1998_v48 }
 0x550   :  { %v6115_v5 = vsub.f32 %v1984_v53, %v2009_v37 }
 0x552   :  { %v2017_v8 = vmul.f32 %v6115_v5, %v6115_v5 }
 0x554   :  { %v2027_v10 = vsel %vm265_vm15, %v2017_v8, 0.0 }
 0x555   :  { %2028 = vadd.xlane.f32.xlu1 %v2027_v10  ;;  %v2023_v12 = vpop.xlane.xlu2 %2022 }
 0x556   :  { %v2031_v13 = vmul.f32 %v2023_v12, %v6088_v7 }
 0x558   :  { %v2035_v19 = vadd.f32 1e-05, %v2031_v13 }
 0x55a   :  { %4993 = vrsqrt.f32 %v2035_v19  ;;  %vm2054_vm8 = vweird.f32 %v2035_v19 }
 0x560   :  { %v4994_v25 = vpop.eup %4993 }
 0x561   :  { %v2049_v27 = vmul.f32 %v4994_v25, %v2035_v19  ;;  %vm2055_vm14 = vweird.f32 %v4994_v25 }
 0x562   :  { %vm2056_vm5 = vmor %vm2054_vm8, %vm2055_vm14 }
 0x563   :  { %v2050_v28 = vmul.f32 %v4994_v25, %v2049_v27  ;;  %vm7034_vm14 = vmmov %vm7031_vm1 }
 0x564   :  { %vm7035_vm8 = vmmov %vm7031_vm1 }
 0x565   :  { %v2051_v18 = vmul.f32 0.5, %v2050_v28 }
 0x567   :  { %v2052_v49 = vsub.f32 1.5, %v2051_v18 }
 0x569   :  { %v2053_v20 = vmul.f32 %v4994_v25, %v2052_v49 }
 0x56b   :  { %v2057_v35 = vsel %vm2056_vm5, %v4994_v25, %v2053_v20  ;;  %vm7036_vm5 = vmmov %vm7031_vm1 }
 0x56c   :  { %v2079_v32 = vmul.f32 %v2057_v35, %v2011_v55 }
 0x56e   :  { %v2086_v36 = vmul.f32 %v4971_v52, %v2079_v32 }
 0x570   :  { %v6134_v33 = vadd.f32 %v4972_v39, %v2086_v36 }
 0x572   :  { %v2102_v34 = vpack.c.bf16 %v6134_v33, %v6136_v17 }
 0x574   :  { %4594 = vmatmul.msk.bf16.vlgmr.msrb.gmra.mxu2 %vm265_vm15, %v2102_v34 }
 0x5c0   :  { %v2026_v51 = vpop.xlane.xlu0 %2025 }
 0x5c1   :  { %v2032_v60 = vmul.f32 %v2026_v51, %v6088_v7  ;;  %v2096_v51 = vld [vmem:[%s7042_s30] sm:$0x1] }
 0x5c3   :  { %v2036_v38 = vadd.f32 1e-05, %v2032_v60  ;;  %v5205_v60 = vmov 0.0  }
 0x5c5   :  { %4995 = vrsqrt.f32 %v2036_v38  ;;  %vm2064_vm7 = vweird.f32 %v2036_v38 }
 0x5c8   :  { %v2029_v41 = vpop.xlane.xlu1 %2028 }
 0x5c9   :  { %v2033_v22 = vmul.f32 %v2029_v41, %v6088_v7 }
 0x5cb   :  { %v4996_v40 = vpop.eup %4995  ;;  %v2037_v26 = vadd.f32 1e-05, %v2033_v22 }
 0x5cc   :  { %v2059_v44 = vmul.f32 %v4996_v40, %v2036_v38  ;;  %vm2065_vm6 = vweird.f32 %v4996_v40 }
 0x5cd   :  { %4997 = vrsqrt.f32 %v2037_v26  ;;  %vm2066_vm9 = vmor %vm2064_vm7, %vm2065_vm6  ;;  %vm2074_vm10 = vweird.f32 %v2037_v26 }
 0x5ce   :  { %v2060_v58 = vmul.f32 %v4996_v40, %v2059_v44  ;;  %vm7037_vm6 = vmmov %vm7031_vm1 }
 0x5cf   :  { %vm7038_vm7 = vmmov %vm7031_vm1 }
 0x5d0   :  { %v2061_v56 = vmul.f32 0.5, %v2060_v58 }
 0x5d2   :  { %v2062_v3 = vsub.f32 1.5, %v2061_v56 }
 0x5d3   :  { %v4998_v4 = vpop.eup %4997 }
 0x5d4   :  { %v2063_v16 = vmul.f32 %v4996_v40, %v2062_v3  ;;  %v2069_v45 = vmul.f32 %v4998_v4, %v2037_v26  ;;  %vm2075_vm2 = vweird.f32 %v4998_v4 }
 0x5d5   :  { %vm2076_vm11 = vmor %vm2074_vm10, %vm2075_vm2 }
 0x5d6   :  { %v2070_v46 = vmul.f32 %v4998_v4, %v2069_v45  ;;  %v2067_v29 = vsel %vm2066_vm9, %v4996_v40, %v2063_v16  ;;  %vm7039_vm9 = vmmov %vm7031_vm1 }
 0x5d7   :  { %v2080_v55 = vmul.f32 %v2067_v29, %v6109_v2  ;;  %v4973_v2 = vld [vmem:[%s6919_s11] ss:$0 sm:$0xff]  ;;  %vm7040_vm2 = vmmov %vm7031_vm1 }
 0x5d8   :  { %v2071_v50 = vmul.f32 0.5, %v2070_v46  ;;  %vm7041_vm10 = vmmov %vm7031_vm1 }
 0x5d9   :  { %v2087_v61 = vmul.f32 %v4971_v52, %v2080_v55 }
 0x5da   :  { %v2072_v53 = vsub.f32 1.5, %v2071_v50 }
 0x5db   :  { %v6145_v62 = vadd.f32 %v4972_v39, %v2087_v61 }
 0x5dc   :  { %v2073_v54 = vmul.f32 %v4998_v4, %v2072_v53 }
 0x5de   :  { %v2077_v57 = vsel %vm2076_vm11, %v4998_v4, %v2073_v54  ;;  %vm2098_vm11 = vcmp.lt.f32.partialorder %v2096_v51, 0.5  ;;  %v2097_v51 = vld [vmem:[%s7042_s30 + $0x1] sm:$0x1] }
 0x5df   :  { %v2081_v59 = vmul.f32 %v2077_v57, %v6115_v5  ;;  %v2100_v38 = vsel %vm2098_vm11, -1e+10, %v5205_v60 }
 0x5e0   :  { %v6204_v41 = vperm.slane %v2100_v38, 0 }
 0x5e1   :  { %v2088_v14 = vmul.f32 %v4971_v52, %v2081_v59 }
 0x5e3   :  { %v6147_v63 = vadd.f32 %v4972_v39, %v2088_v14 }
 0x5e5   :  { %v2103_v0 = vpack.c.bf16 %v6147_v63, %v6145_v62 }
 0x5e7   :  { %4595 = vmatmul.msk.bf16.gmra.mxu2 %vm265_vm15, %v2103_v0 }
 0x5f7   :  { %v2139_v42 = vpop.f32.mrf.mxu2 }
 0x5f8   :  { %v2140_v43 = vadd.f32 %v4973_v2, %v2139_v42 }
 0x5fa   :  { %v2149_v1 = vpack.c.bf16 %v2140_v43, %v2140_v43 }
 0x5fc   :  { %v2158_v6 = vunpack.c.l.b16 %v2149_v1 }
 0x5ff   :  { %v2141_v48 = vpop.f32.mrf.mxu2 }
 0x600   :  { %v2142_v37 = vadd.f32 %v4973_v2, %v2141_v48 }
 0x602   :  { %v2150_v5 = vpack.c.bf16 %v2142_v37, %v2142_v37 }
 0x604   :  { %v2159_v47 = vunpack.c.l.b16 %v2150_v5 }
 0x606   :  { %v6155_v8 = vpack.c.b16 %v2159_v47, %v2158_v6 }
 0x608   :  { %2226 = vrot.lane.b32.xlu1 %v6155_v8, %s5199_s23  ;;  %2228 = vrot.lane.b32.xlu0 %v6155_v8, %s5200_s6 }
 0x609   :  { %2161 = vrot.lane.b32.xlu2 %v6155_v8, %s7008_s24 }
 0x610   :  { %2293 = vrot.lane.b32.xlu1 %v6155_v8, %s5201_s0  ;;  %2295 = vrot.lane.b32.xlu0 %v6155_v8, %s5202_s26 }
 0x611   :  { %2362 = vrot.lane.b32.xlu2 %v6155_v8, %s5203_s3 }
 0x618   :  { %2360 = vrot.lane.b32.xlu0 %v6155_v8, %s5204_s1 }
 0x663   :  { %v2162_v9 = vpop.permute.xlu2 %2161 }
 0x664   :  { %v2167_v10 = vsel %vm7031_vm1, %v2162_v9, 0 }
 0x665   :  { %2176 = vmatpush.bf16.xpose.msrb.mxu3 %v2167_v10 }
 0x66a   :  { %v2144_v11 = vpop.f32.mrf.mxu2 }
 0x66b   :  { %v2145_v12 = vadd.f32 %v4973_v2, %v2144_v11  ;;  %v2363_v27 = vpop.permute.xlu2 %2362 }
 0x66c   :  { %4596 = vmatmul.msk.bf16.vlgmr.msrb.gmra.mxu3 %vm7032_vm12, %v6155_v8  ;;  %v2368_v49 = vsel %vm7034_vm14, %v2363_v27, 0  ;;  %vm7043_vm12 = vmmov %vm7031_vm1 }
 0x66d   :  { %v2151_v19 = vpack.c.bf16 %v2145_v12, %v2145_v12  ;;  %vm7045_vm14 = vmmov %vm7031_vm1 }
 0x66f   :  { %v2462_v25 = vunpack.c.l.b16 %v2151_v19 }
 0x672   :  { %v2146_v13 = vpop.f32.mrf.mxu2 }
 0x673   :  { %v2147_v21 = vadd.f32 %v4973_v2, %v2146_v13 }
 0x675   :  { %v2152_v23 = vpack.c.bf16 %v2147_v21, %v2147_v21 }
 0x677   :  { %v2463_v31 = vunpack.c.l.b16 %v2152_v23 }
 0x679   :  { %v6174_v28 = vpack.c.b16 %v2463_v31, %v2462_v25 }
 0x67a   :  { %v2229_v30 = vpop.permute.xlu0 %2228  ;;  %v2227_v52 = vpop.permute.xlu1 %2226 }
 0x67b   :  { %v2234_v18 = vsel %vm7033_vm13, %v2229_v30, 0  ;;  %2532 = vrot.lane.b32.xlu1 %v6174_v28, %s5200_s6  ;;  %2530 = vrot.lane.b32.xlu0 %v6174_v28, %s5199_s23  ;;  %vm7044_vm13 = vmmov %vm7031_vm1 }
 0x67c   :  { %2465 = vrot.lane.b32.xlu2 %v6174_v28, %s7008_s24  ;;  %2243 = vmatpush.bf16.xpose.msra.mxu3 %v2234_v18 }
 0x682   :  { %v2296_v24 = vpop.permute.xlu0 %2295  ;;  %v2294_v35 = vpop.permute.xlu1 %2293 }
 0x683   :  { %v2301_v20 = vsel %vm7035_vm8, %v2296_v24, 0  ;;  %2666 = vrot.lane.b32.xlu1 %v6174_v28, %s5203_s3  ;;  %2597 = vrot.lane.b32.xlu0 %v6174_v28, %s5201_s0  ;;  %vm7046_vm8 = vmmov %vm7031_vm1 }
 0x684   :  { %2377 = vmatpush.bf16.xpose.msrb.mxu3 %v2368_v49  ;;  %2599 = vrot.lane.b32.xlu2 %v6174_v28, %s5202_s26 }
 0x685   :  { %4598 = vmatmul.msk.bf16.vlgmr.msra.gmra.mxu3 %vm7036_vm5, %v2227_v52  ;;  %2310 = vmatpush.bf16.xpose.msra.mxu2 %v2301_v20  ;;  %vm2099_vm5 = vcmp.lt.f32.partialorder %v2097_v51, 0.5 }
 0x68a   :  { %v2361_v15 = vpop.permute.xlu0 %2360 }
 0x68c   :  { %4600 = vmatmul.msk.bf16.vlgmr.msra.gmra.mxu2 %vm7037_vm6, %v2294_v35  ;;  %2664 = vrot.lane.b32.xlu2 %v6174_v28, %s5204_s1  ;;  %vm7050_vm6 = vmmov %vm7031_vm1 }
 0x695   :  { %4602 = vmatmul.msk.bf16.vlgmr.msrb.gmra.mxu3 %vm7038_vm7, %v2361_v15  ;;  %vm7051_vm7 = vmmov %vm7031_vm1 }
 0x6d6   :  { %v2466_v39 = vpop.permute.xlu2 %2465 }
 0x6d7   :  { %v2471_v32 = vsel %vm7039_vm9, %v2466_v39, 0  ;;  %vm7052_vm9 = vmmov %vm7031_vm1 }
 0x6d8   :  { %2480 = vmatpush.bf16.xpose.msrb.mxu2 %v2471_v32 }
 0x6de   :  { %v2600_v36 = vpop.permute.xlu2 %2599 }
 0x6df   :  { %v2605_v34 = vsel %vm7040_vm2, %v2600_v36, 0  ;;  %4604 = vmatmul.msk.bf16.vlgmr.msrb.gmra.mxu2 %vm7041_vm10, %v6174_v28  ;;  %vm7053_vm2 = vmmov %vm7031_vm1 }
 0x6e0   :  { %2614 = vmatpush.bf16.xpose.msra.mxu2 %v2605_v34 }
 0x6e6   :  { %v2665_v50 = vpop.permute.xlu2 %2664 }
 0x6ed   :  { %v2533_v22 = vpop.permute.xlu1 %2532  ;;  %v2531_v40 = vpop.permute.xlu0 %2530 }
 0x6ee   :  { %v2538_v26 = vsel %vm7031_vm1, %v2533_v22, 0 }
 0x6ef   :  { %v2178_v44 = vpop.f32.mrf.mxu3  ;;  %2547 = vmatpush.bf16.xpose.msra.mxu3 %v2538_v26  ;;  %v2101_v26 = vsel %vm2099_vm5, -1e+10, %v5205_v60 }
 0x6f0   :  { %v2179_v58 = vadd.f32 %v2178_v44, %v6204_v41 }
 0x6f2   :  { %v2183_v56 = vsel %vm253_vm4, %v2179_v58, -inf }
 0x6f3   :  { %2184 = vmax.xlane.f32.xlu1 %v2183_v56 }
 0x6f5   :  { %v2667_v3 = vpop.permute.xlu1 %2666  ;;  %v2598_v4 = vpop.permute.xlu0 %2597 }
 0x6f6   :  { %v2672_v16 = vsel %vm7043_vm12, %v2667_v3, 0  ;;  %4606 = vmatmul.msk.bf16.vlgmr.msra.gmra.mxu3 %vm7044_vm13, %v2531_v40  ;;  %4608 = vmatmul.msk.bf16.vlgmr.msra.gmra.mxu2 %vm7045_vm14, %v2598_v4  ;;  %v6263_v4 = vperm.slane %v2101_v26, 0 }
 0x6f7   :  { %v2180_v45 = vpop.f32.mrf.mxu3  ;;  %2681 = vmatpush.bf16.xpose.msrb.mxu3 %v2672_v16 }
 0x6f8   :  { %v2181_v46 = vadd.f32 %v2180_v45, %v6204_v41 }
 0x6fa   :  { %v2186_v29 = vsel %vm253_vm4, %v2181_v46, -inf }
 0x6fb   :  { %2187 = vmax.xlane.f32.xlu0 %v2186_v29 }
 0x706   :  { %4610 = vmatmul.msk.bf16.vlgmr.msrb.gmra.mxu3 %vm7046_vm8, %v2665_v50 }
 0x708   :  { %v2245_v53 = vpop.f32.mrf.mxu3 }
 0x709   :  { %v2246_v55 = vadd.f32 %v2245_v53, %v6204_v41 }
 0x70b   :  { %v2250_v54 = vsel %vm253_vm4, %v2246_v55, -inf }
 0x70c   :  { %2251 = vmax.xlane.f32.xlu2 %v2250_v54 }
 0x70f   :  { %v2312_v1 = vpop.f32.mrf.mxu2 }
 0x710   :  { %v2247_v57 = vpop.f32.mrf.mxu3  ;;  %v6237_v47 = vadd.f32 %v2312_v1, %v6204_v41 }
 0x711   :  { %v2248_v59 = vadd.f32 %v2247_v57, %v6204_v41 }
 0x712   :  { %v2317_v9 = vsel %vm253_vm4, %v6237_v47, -inf }
 0x713   :  { %v2253_v61 = vsel %vm253_vm4, %v2248_v59, -inf }
 0x714   :  { %2254 = vmax.xlane.f32.xlu1 %v2253_v61 }
 0x717   :  { %v2314_v37 = vpop.f32.mrf.mxu2 }
 0x718   :  { %v2379_v14 = vpop.f32.mrf.mxu3  ;;  %v6232_v5 = vadd.f32 %v2314_v37, %v6204_v41 }
 0x719   :  { %v2380_v0 = vadd.f32 %v2379_v14, %v6204_v41 }
 0x71a   :  { %v2320_v6 = vsel %vm253_vm4, %v6232_v5, -inf }
 0x71b   :  { %v2384_v42 = vsel %vm253_vm4, %v2380_v0, -inf }
 0x71c   :  { %2385 = vmax.xlane.f32.xlu1 %v2384_v42 }
 0x720   :  { %v2381_v2 = vpop.f32.mrf.mxu3 }
 0x721   :  { %v2382_v43 = vadd.f32 %v2381_v2, %v6204_v41 }
 0x723   :  { %v2387_v48 = vsel %vm253_vm4, %v2382_v43, -inf }
 0x724   :  { %2206 = vrot.lane.b32.xlu2 %v6155_v8, %s7023_s4  ;;  %2388 = vmax.xlane.f32.xlu0 %v2387_v48 }
 0x72c   :  { %2273 = vrot.lane.b32.xlu2 %v6155_v8, %s6966_s5 }
 0x735   :  { %2407 = vrot.lane.b32.xlu1 %v6155_v8, %s7047_s25 }
 0x738   :  { %2340 = vrot.lane.b32.xlu0 %v6155_v8, %s5207_s22 }
 0x755   :  { %2321 = vmax.xlane.f32.xlu2 %v2320_v6 }
 0x762   :  { %2318 = vmax.xlane.f32.xlu0 %v2317_v9  ;;  %v2482_v45 = vpop.f32.mrf.mxu2 }
 0x766   :  { %v2185_v10 = vpop.xlane.xlu1 %2184 }
 0x767   :  { %v2189_v11 = vsub.f32 %v2179_v58, %v2185_v10 }
 0x769   :  { %v2191_v12 = vmul.f32 1.442695, %v2189_v11 }
 0x76a   :  { %v2484_v14 = vpop.f32.mrf.mxu2 }
 0x76b   :  { %4999 = vpow2.f32 %v2191_v12 }
 0x76e   :  { %v2188_v8 = vpop.xlane.xlu0 %2187 }
 0x76f   :  { %v2190_v13 = vsub.f32 %v2181_v46, %v2188_v8  ;;  %v6268_v46 = vadd.f32 %v2482_v45, %v6263_v4 }
 0x771   :  { %v6241_v19 = vpop.eup %4999  ;;  %v2193_v21 = vmul.f32 1.442695, %v2190_v13  ;;  %v2487_v60 = vsel %vm253_vm4, %v6268_v46, -inf }
 0x772   :  { %v2195_v23 = vsel %vm253_vm4, %v6241_v19, 0.0 }
 0x773   :  { %5001 = vpow2.f32 %v2193_v21  ;;  %2196 = vadd.xlane.f32.xlu1 %v2195_v23  ;;  %v6302_v21 = vadd.f32 %v2484_v14, %v6263_v4 }
 0x779   :  { %v6245_v25 = vpop.eup %5001  ;;  %v2549_v56 = vpop.f32.mrf.mxu3 }
 0x77a   :  { %v2198_v31 = vsel %vm253_vm4, %v6245_v25, 0.0  ;;  %v2616_v2 = vpop.f32.mrf.mxu2  ;;  %v6288_v37 = vadd.f32 %v2549_v56, %v6263_v4 }
 0x77b   :  { %2199 = vadd.xlane.f32.xlu0 %v2198_v31 }
 0x77f   :  { %v2252_v27 = vpop.xlane.xlu2 %2251 }
 0x780   :  { %v2256_v30 = vsub.f32 %v2246_v55, %v2252_v27  ;;  %v2490_v27 = vsel %vm253_vm4, %v6302_v21, -inf }
 0x781   :  { %v2551_v53 = vpop.f32.mrf.mxu3 }
 0x782   :  { %v2258_v18 = vmul.f32 1.442695, %v2256_v30  ;;  %v6277_v55 = vadd.f32 %v2551_v53, %v6263_v4  ;;  %v2618_v10 = vpop.f32.mrf.mxu2 }
 0x783   :  { %v6295_v12 = vadd.f32 %v2618_v10, %v6263_v4 }
 0x784   :  { %5003 = vpow2.f32 %v2258_v18  ;;  %v2557_v57 = vsel %vm253_vm4, %v6277_v55, -inf }
 0x785   :  { %v2624_v13 = vsel %vm253_vm4, %v6295_v12, -inf }
 0x787   :  { %v2255_v49 = vpop.xlane.xlu1 %2254  ;;  %v2207_v52 = vpop.permute.xlu2 %2206 }
 0x788   :  { %v2257_v24 = vsub.f32 %v2248_v59, %v2255_v49  ;;  %2219 = vmatpush.bf16.msra.mxu0 %v2207_v52  ;;  %v6312_v49 = vadd.f32 %v2616_v2, %v6263_v4 }
 0x789   :  { %v2683_v9 = vpop.f32.mrf.mxu3 }
 0x78a   :  { %v6249_v20 = vpop.eup %5003  ;;  %v2260_v35 = vmul.f32 1.442695, %v2257_v24  ;;  %v2621_v24 = vsel %vm253_vm4, %v6312_v49, -inf }
 0x78b   :  { %v2262_v15 = vsel %vm253_vm4, %v6249_v20, 0.0 }
 0x78c   :  { %5005 = vpow2.f32 %v2260_v35  ;;  %2263 = vadd.xlane.f32.xlu1 %v2262_v15  ;;  %v6317_v15 = vadd.f32 %v2683_v9, %v6263_v4 }
 0x78f   :  { %v2386_v39 = vpop.xlane.xlu1 %2385  ;;  %v2274_v32 = vpop.permute.xlu2 %2273 }
 0x790   :  { %v2390_v36 = vsub.f32 %v2380_v0, %v2386_v39  ;;  %2286 = vmatpush.bf16.msrb.mxu0 %v2274_v32 }
 0x791   :  { %v2685_v23 = vpop.f32.mrf.mxu3 }
 0x792   :  { %v6253_v34 = vpop.eup %5005  ;;  %v2392_v38 = vmul.f32 1.442695, %v2390_v36  ;;  %v6305_v31 = vadd.f32 %v2685_v23, %v6263_v4 }
 0x793   :  { %v2265_v22 = vsel %vm253_vm4, %v6253_v34, 0.0 }
 0x794   :  { %5007 = vpow2.f32 %v2392_v38  ;;  %2266 = vadd.xlane.f32.xlu0 %v2265_v22  ;;  %v2691_v18 = vsel %vm253_vm4, %v6305_v31, -inf  ;;  %v2688_v38 = vsel %vm253_vm4, %v6317_v15, -inf }
 0x797   :  { %v2389_v40 = vpop.xlane.xlu0 %2388 }
 0x798   :  { %v2391_v44 = vsub.f32 %v2382_v43, %v2389_v40 }
 0x79a   :  { %v6261_v58 = vpop.eup %5007  ;;  %v2394_v3 = vmul.f32 1.442695, %v2391_v44 }
 0x79b   :  { %v2396_v16 = vsel %vm253_vm4, %v6261_v58, 0.0 }
 0x79c   :  { %5009 = vpow2.f32 %v2394_v3  ;;  %2397 = vadd.xlane.f32.xlu2 %v2396_v16 }
 0x7a2   :  { %v6270_v29 = vpop.eup %5009 }
 0x7a3   :  { %v2399_v50 = vsel %vm253_vm4, %v6270_v29, 0.0 }
 0x7a4   :  { %2488 = vmax.xlane.f32.xlu2 %v2487_v60  ;;  %2400 = vadd.xlane.f32.xlu1 %v2399_v50 }
 0x7aa   :  { %v2341_v54 = vpop.permute.xlu0 %2340 }
 0x7ab   :  { %2353 = vmatpush.bf16.msra.mxu1 %v2341_v54 }
 0x7ac   :  { %2558 = vmax.xlane.f32.xlu2 %v2557_v57 }
 0x7c8   :  { %v2322_v59 = vpop.xlane.xlu2 %2321 }
 0x7c9   :  { %v2324_v61 = vsub.f32 %v6232_v5, %v2322_v59  ;;  %v2554_v5 = vsel %vm253_vm4, %v6288_v37, -inf }
 0x7cb   :  { %v2327_v0 = vmul.f32 1.442695, %v2324_v61 }
 0x7cd   :  { %5011 = vpow2.f32 %v2327_v0 }
 0x7d3   :  { %v6282_v42 = vpop.eup %5011 }
 0x7d4   :  { %v2332_v43 = vsel %vm253_vm4, %v6282_v42, 0.0 }
 0x7d5   :  { %v2319_v48 = vpop.xlane.xlu0 %2318  ;;  %2333 = vadd.xlane.f32.xlu0 %v2332_v43 }
 0x7d6   :  { %v2323_v1 = vsub.f32 %v6237_v47, %v2319_v48  ;;  %v2408_v47 = vpop.permute.xlu1 %2407 }
 0x7d8   :  { %v2325_v6 = vmul.f32 1.442695, %v2323_v1 }
 0x7da   :  { %5013 = vpow2.f32 %v2325_v6 }
 0x7dd   :  { %2555 = vmax.xlane.f32.xlu0 %v2554_v5 }
 0x7e0   :  { %v6292_v11 = vpop.eup %5013 }
 0x7e1   :  { %v2329_v8 = vsel %vm253_vm4, %v6292_v11, 0.0 }
 0x7e2   :  { %2330 = vadd.xlane.f32.xlu1 %v2329_v8 }
 0x7e5   :  { %2625 = vmax.xlane.f32.xlu0 %v2624_v13 }
 0x7e6   :  { %v2197_v30 = vpop.xlane.xlu1 %2196 }
 0x7e7   :  { %5015 = vrcp.f32 %v2197_v30 }
 0x7ea   :  { %2491 = vmax.xlane.f32.xlu1 %v2490_v27 }
 0x7ed   :  { %2692 = vmax.xlane.f32.xlu0 %v2691_v18  ;;  %v5016_v35 = vpop.eup %5015 }
 0x7ee   :  { %v2200_v52 = vpop.xlane.xlu0 %2199  ;;  %v2203_v32 = vmul.f32 %v5016_v35, %v6241_v19 }
 0x7ef   :  { %5017 = vrcp.f32 %v2200_v52 }
 0x7f2   :  { %2622 = vmax.xlane.f32.xlu1 %v2621_v24 }
 0x7f5   :  { %v5018_v39 = vpop.eup %5017 }
 0x7f6   :  { %v2204_v36 = vmul.f32 %v5018_v39, %v6245_v25 }
 0x7f8   :  { %v2205_v51 = vpack.c.bf16 %v2204_v36, %v2203_v32 }
 0x7fa   :  { %2689 = vmax.xlane.f32.xlu1 %v2688_v38  ;;  %4597 = vmatmul.msk.bf16.vlgmr.msra.gmra.mxu0 %vm253_vm4, %v2205_v51 }
 0x7fb   :  { %2420 = vmatpush.bf16.msra.mxu0 %v2408_v47 }
 0x7ff   :  { %v2264_v22 = vpop.xlane.xlu1 %2263 }
 0x800   :  { %5019 = vrcp.f32 %v2264_v22 }
 0x806   :  { %v5020_v26 = vpop.eup %5019 }
 0x807   :  { %v2267_v40 = vpop.xlane.xlu0 %2266  ;;  %v2270_v56 = vmul.f32 %v5020_v26, %v6249_v20 }
 0x808   :  { %5021 = vrcp.f32 %v2267_v40 }
 0x80e   :  { %v5022_v44 = vpop.eup %5021 }
 0x80f   :  { %v2271_v19 = vmul.f32 %v5022_v44, %v6253_v34  ;;  %v2398_v3 = vpop.xlane.xlu2 %2397 }
 0x810   :  { %5023 = vrcp.f32 %v2398_v3 }
 0x811   :  { %v2272_v25 = vpack.c.bf16 %v2271_v19, %v2270_v56 }
 0x813   :  { %4599 = vmatmul.msk.bf16.vlgmr.msrb.gmra.mxu0 %vm253_vm4, %v2272_v25 }
 0x816   :  { %v5024_v53 = vpop.eup %5023 }
 0x817   :  { %v2401_v16 = vpop.xlane.xlu1 %2400  ;;  %v2489_v45 = vpop.xlane.xlu2 %2488  ;;  %v2404_v57 = vmul.f32 %v5024_v53, %v6261_v58 }
 0x818   :  { %5025 = vrcp.f32 %v2401_v16  ;;  %v2493_v60 = vsub.f32 %v6268_v46, %v2489_v45 }
 0x81a   :  { %v2495_v50 = vmul.f32 1.442695, %v2493_v60 }
 0x81c   :  { %5027 = vpow2.f32 %v2495_v50 }
 0x81e   :  { %v5026_v54 = vpop.eup %5025 }
 0x81f   :  { %v2405_v20 = vmul.f32 %v5026_v54, %v6270_v29  ;;  %v2559_v14 = vpop.xlane.xlu2 %2558 }
 0x820   :  { %v2561_v58 = vsub.f32 %v6277_v55, %v2559_v14 }
 0x821   :  { %v2406_v59 = vpack.c.bf16 %v2405_v20, %v2404_v57 }
 0x822   :  { %v6330_v34 = vpop.eup %5027  ;;  %v2564_v48 = vmul.f32 1.442695, %v2561_v58 }
 0x823   :  { %4603 = vmatmul.msk.bf16.vlgmr.msra.gmra.mxu0 %vm253_vm4, %v2406_v59  ;;  %v2499_v61 = vsel %vm253_vm4, %v6330_v34, 0.0 }
 0x824   :  { %2500 = vadd.xlane.f32.xlu0 %v2499_v61 }
 0x838   :  { %2577 = vrot.lane.b32.xlu0 %v6174_v28, %s6966_s5 }
 0x848   :  { %v2334_v46 = vpop.xlane.xlu0 %2333 }
 0x849   :  { %5029 = vrcp.f32 %v2334_v46 }
 0x84f   :  { %v5030_v6 = vpop.eup %5029 }
 0x850   :  { %v2556_v0 = vpop.xlane.xlu0 %2555  ;;  %v2338_v8 = vmul.f32 %v5030_v6, %v6282_v42 }
 0x851   :  { %v2560_v2 = vsub.f32 %v6288_v37, %v2556_v0 }
 0x853   :  { %v2562_v29 = vmul.f32 1.442695, %v2560_v2 }
 0x855   :  { %5031 = vpow2.f32 %v2562_v29  ;;  %v2331_v43 = vpop.xlane.xlu1 %2330 }
 0x856   :  { %5033 = vrcp.f32 %v2331_v43 }
 0x857   :  { %5035 = vpow2.f32 %v2564_v48 }
 0x858   :  { %v2626_v1 = vpop.xlane.xlu0 %2625 }
 0x859   :  { %v2628_v19 = vsub.f32 %v6295_v12, %v2626_v1 }
 0x85b   :  { %v6339_v9 = vpop.eup %5031  ;;  %v2631_v3 = vmul.f32 1.442695, %v2628_v19 }
 0x85c   :  { %v5034_v5 = vpop.eup %5033  ;;  %v2566_v10 = vsel %vm253_vm4, %v6339_v9, 0.0 }
 0x85d   :  { %v2337_v37 = vmul.f32 %v5034_v5, %v6292_v11  ;;  %v2492_v55 = vpop.xlane.xlu1 %2491  ;;  %2567 = vadd.xlane.f32.xlu2 %v2566_v10  ;;  %v5036_v30 = vpop.eup %5035 }
 0x85e   :  { %v2494_v47 = vsub.f32 %v6302_v21, %v2492_v55  ;;  %v2569_v24 = vsel %vm253_vm4, %v5036_v30, 0.0 }
 0x85f   :  { %v2339_v13 = vpack.c.bf16 %v2338_v8, %v2337_v37 }
 0x860   :  { %v2497_v23 = vmul.f32 1.442695, %v2494_v47  ;;  %v2693_v27 = vpop.xlane.xlu0 %2692 }
 0x861   :  { %v2695_v18 = vsub.f32 %v6305_v31, %v2693_v27  ;;  %4601 = vmatmul.msk.bf16.vlgmr.msra.gmra.mxu1 %vm253_vm4, %v2339_v13  ;;  %v4839_v13 = vld [vmem:[%s6920_s12 + $0x8] sm:$0xff] }
 0x862   :  { %5037 = vpow2.f32 %v2497_v23  ;;  %2795 = vmatpush.bf16.msrb.mxu2 %v4839_v13 }
 0x863   :  { %v2698_v52 = vmul.f32 1.442695, %v2695_v18 }
 0x865   :  { %5039 = vpow2.f32 %v2698_v52  ;;  %v2623_v42 = vpop.xlane.xlu1 %2622  ;;  %2570 = vadd.xlane.f32.xlu2 %v2569_v24 }
 0x866   :  { %v2627_v11 = vsub.f32 %v6312_v49, %v2623_v42 }
 0x868   :  { %v5038_v35 = vpop.eup %5037  ;;  %v2629_v39 = vmul.f32 1.442695, %v2627_v11 }
 0x869   :  { %v2502_v21 = vsel %vm253_vm4, %v5038_v35, 0.0 }
 0x86a   :  { %5041 = vpow2.f32 %v2629_v39  ;;  %2503 = vadd.xlane.f32.xlu1 %v2502_v21 }
 0x86b   :  { %v6351_v32 = vpop.eup %5039 }
 0x86c   :  { %v2703_v31 = vsel %vm253_vm4, %v6351_v32, 0.0 }
 0x86d   :  { %v2690_v36 = vpop.xlane.xlu1 %2689  ;;  %2704 = vadd.xlane.f32.xlu0 %v2703_v31 }
 0x86e   :  { %v2694_v51 = vsub.f32 %v6317_v15, %v2690_v36 }
 0x870   :  { %v6356_v38 = vpop.eup %5041  ;;  %v2696_v22 = vmul.f32 1.442695, %v2694_v51 }
 0x871   :  { %v2633_v49 = vsel %vm253_vm4, %v6356_v38, 0.0 }
 0x872   :  { %5043 = vpow2.f32 %v2696_v22  ;;  %2634 = vadd.xlane.f32.xlu1 %v2633_v49 }
 0x873   :  { %5045 = vpow2.f32 %v2631_v3 }
 0x877   :  { %v6363_v44 = vpop.f32.mrf.mxu0 }
 0x878   :  { %v5044_v40 = vpop.eup %5043 }
 0x879   :  { %v2700_v26 = vsel %vm253_vm4, %v5044_v40, 0.0  ;;  %v5046_v45 = vpop.eup %5045 }
 0x87a   :  { %2701 = vadd.xlane.f32.xlu1 %v2700_v26  ;;  %v2636_v50 = vsel %vm253_vm4, %v5046_v45, 0.0 }
 0x87d   :  { %2510 = vrot.lane.b32.xlu2 %v6174_v28, %s7023_s4 }
 0x87f   :  { %v6365_v56 = vpop.f32.mrf.mxu0 }
 0x890   :  { %v2288_v15 = vpop.f32.mrf.mxu0 }
 0x893   :  { %2644 = vrot.lane.b32.xlu1 %v6174_v28, %s5207_s22 }
 0x897   :  { %v2501_v60 = vpop.xlane.xlu0 %2500 }
 0x898   :  { %v2290_v25 = vpop.f32.mrf.mxu0 }
 0x899   :  { %v4905_v20 = vpack.i.bf16 %v2290_v25, %v2288_v15 }
 0x89b   :  { %2711 = vrot.lane.b32.xlu1 %v6174_v28, %s7047_s25 }
 0x8a0   :  { %v2422_v16 = vpop.f32.mrf.mxu0 }
 0x8a6   :  { %2637 = vadd.xlane.f32.xlu2 %v2636_v50 }
 0x8a8   :  { %v2424_v53 = vpop.f32.mrf.mxu0 }
 0x8a9   :  { %v4915_v54 = vpack.i.bf16 %v2424_v53, %v2422_v16 }
 0x8aa   :  { %v2578_v57 = vpop.permute.xlu0 %2577 }
 0x8ab   :  { %4916 = vrot.lane.b32.xlu0 %v4915_v54, %s6993_s29  ;;  %2590 = vmatpush.bf16.msrb.mxu0 %v2578_v57 }
 0x8be   :  { %4906 = vrot.lane.b32.xlu2 %v4905_v20, %s7048_s8 }
 0x8d0   :  { %v2568_v12 = vpop.xlane.xlu2 %2567 }
 0x8d1   :  { %5047 = vrcp.f32 %v2568_v12 }
 0x8d7   :  { %v5048_v28 = vpop.eup %5047 }
 0x8d8   :  { %v2571_v59 = vpop.xlane.xlu2 %2570  ;;  %v2574_v0 = vmul.f32 %v5048_v28, %v6339_v9 }
 0x8d9   :  { %5049 = vrcp.f32 %v2571_v59 }
 0x8da   :  { %5051 = vrcp.f32 %v2501_v60 }
 0x8dd   :  { %v2504_v61 = vpop.xlane.xlu1 %2503 }
 0x8de   :  { %5053 = vrcp.f32 %v2504_v61  ;;  %v2355_v46 = vpop.f32.mrf.mxu1 }
 0x8df   :  { %v5050_v14 = vpop.eup %5049 }
 0x8e0   :  { %v2575_v2 = vmul.f32 %v5050_v14, %v5036_v30  ;;  %v2511_v58 = vpop.permute.xlu2 %2510  ;;  %v5052_v29 = vpop.eup %5051  ;;  %v4974_v14 = vld [vmem:[%s6921_s13] ss:$0 sm:$0xff] }
 0x8e1   :  { %2523 = vmatpush.bf16.msrb.mxu1 %v2511_v58  ;;  %v2507_v1 = vmul.f32 %v5052_v29, %v6330_v34  ;;  %v2705_v55 = vpop.xlane.xlu0 %2704 }
 0x8e2   :  { %v2576_v43 = vpack.c.bf16 %v2575_v2, %v2574_v0 }
 0x8e4   :  { %v5054_v48 = vpop.eup %5053  ;;  %4607 = vmatmul.msk.bf16.vlgmr.msrb.gmra.mxu0 %vm253_vm4, %v2576_v43 }
 0x8e5   :  { %v2508_v6 = vmul.f32 %v5054_v48, %v5038_v35  ;;  %v2635_v37 = vpop.xlane.xlu1 %2634 }
 0x8e6   :  { %v2357_v5 = vpop.f32.mrf.mxu1 }
 0x8e7   :  { %v2509_v10 = vpack.c.bf16 %v2508_v6, %v2507_v1  ;;  %v4910_v8 = vpack.i.bf16 %v2357_v5, %v2355_v46 }
 0x8e9   :  { %4911 = vrot.lane.b32.xlu1 %v4910_v8, %s7049_s9  ;;  %4605 = vmatmul.msk.bf16.vlgmr.msrb.gmra.mxu1 %vm253_vm4, %v2509_v10 }
 0x8ed   :  { %v2702_v9 = vpop.xlane.xlu1 %2701 }
 0x8ee   :  { %5055 = vrcp.f32 %v2702_v9 }
 0x8ef   :  { %5057 = vrcp.f32 %v2705_v55 }
 0x8f0   :  { %5059 = vrcp.f32 %v2635_v37 }
 0x8f4   :  { %v5056_v34 = vpop.eup %5055 }
 0x8f5   :  { %v5058_v23 = vpop.eup %5057  ;;  %v2708_v27 = vmul.f32 %v5056_v34, %v5044_v40 }
 0x8f6   :  { %v2709_v30 = vmul.f32 %v5058_v23, %v6351_v32  ;;  %v5060_v42 = vpop.eup %5059  ;;  %v4838_v32 = vld [vmem:[%s6920_s12] sm:$0xff] }
 0x8f7   :  { %v2641_v35 = vmul.f32 %v5060_v42, %v6356_v38  ;;  %2796 = vmatpush.bf16.msrb.mxu2 %v4838_v32 }
 0x8f8   :  { %v2710_v52 = vpack.c.bf16 %v2709_v30, %v2708_v27 }
 0x905   :  { %v2645_v47 = vpop.permute.xlu1 %2644 }
 0x906   :  { %2657 = vmatpush.bf16.msra.mxu1 %v2645_v47 }
 0x90d   :  { %v2712_v18 = vpop.permute.xlu1 %2711 }
 0x90e   :  { %2724 = vmatpush.bf16.msra.mxu0 %v2712_v18 }
 0x911   :  { %4611 = vmatmul.msk.bf16.vlgmr.msra.gmra.mxu0 %vm253_vm4, %v2710_v52 }
 0x919   :  { %v2638_v24 = vpop.xlane.xlu2 %2637 }
 0x91a   :  { %5061 = vrcp.f32 %v2638_v24 }
 0x91d   :  { %v4917_v22 = vpop.permute.xlu0 %4916 }
 0x91e   :  { %v4919_v15 = vunpack.i.h.bf16 %v4917_v22  ;;  %v4918_v19 = vunpack.i.l.bf16 %v4917_v22 }
 0x920   :  { %v5062_v11 = vpop.eup %5061 }
 0x921   :  { %v2642_v39 = vmul.f32 %v5062_v11, %v5046_v45  ;;  %v4907_v31 = vpop.permute.xlu2 %4906 }
 0x922   :  { %v4909_v36 = vunpack.i.h.bf16 %v4907_v31  ;;  %v4908_v51 = vunpack.i.l.bf16 %v4907_v31 }
 0x923   :  { %v2643_v21 = vpack.c.bf16 %v2642_v39, %v2641_v35 }
 0x924   :  { %v2452_v38 = vsel %vm7050_vm6, %v6365_v56, %v4909_v36  ;;  %v2451_v3 = vsel %vm7051_vm7, %v6363_v44, %v4908_v51 }
 0x925   :  { %4609 = vmatmul.msk.bf16.vlgmr.msra.gmra.mxu1 %vm253_vm4, %v2643_v21 }
 0x95b   :  { %v4912_v49 = vpop.permute.xlu1 %4911 }
 0x95c   :  { %v4914_v40 = vunpack.i.h.bf16 %v4912_v49  ;;  %v4913_v26 = vunpack.i.l.bf16 %v4912_v49 }
 0x95e   :  { %v2453_v25 = vsel %vm253_vm4, %v2451_v3, %v4913_v26  ;;  %v2454_v16 = vsel %vm253_vm4, %v2452_v38, %v4914_v40 }
 0x95f   :  { %v2455_v45 = vsel %vm259_vm3, %v2453_v25, %v4918_v19  ;;  %v2456_v60 = vsel %vm259_vm3, %v2454_v16, %v4919_v15 }
 0x960   :  { %v2761_v50 = vpack.c.bf16 %v2456_v60, %v2455_v45 }
 0x961   :  { %v2592_v53 = vpop.f32.mrf.mxu0 }
 0x962   :  { %4620 = vmatmul.msk.bf16.vlgmr.msrb.gmra.mxu2 %vm265_vm15, %v2761_v50 }
 0x966   :  { %v2525_v20 = vpop.f32.mrf.mxu1 }
 0x969   :  { %v2594_v54 = vpop.f32.mrf.mxu0 }
 0x96a   :  { %v4920_v57 = vpack.i.bf16 %v2594_v54, %v2592_v53 }
 0x96c   :  { %4921 = vrot.lane.b32.xlu1 %v4920_v57, %s7048_s8 }
 0x96e   :  { %v2527_v59 = vpop.f32.mrf.mxu1 }
 0x98e   :  { %v2726_v56 = vpop.f32.mrf.mxu0 }
 0x996   :  { %v2728_v12 = vpop.f32.mrf.mxu0 }
 0x997   :  { %v4930_v44 = vpack.i.bf16 %v2728_v12, %v2726_v56  ;;  %v4840_v56 = vld [vmem:[%s6924_s16] sm:$0xff] }
 0x999   :  { %4931 = vrot.lane.b32.xlu2 %v4930_v44, %s6993_s29 }
 0x9a2   :  { %v2659_v28 = vpop.f32.mrf.mxu1 }
 0x9aa   :  { %v2661_v61 = vpop.f32.mrf.mxu1 }
 0x9ab   :  { %v4925_v46 = vpack.i.bf16 %v2661_v61, %v2659_v28 }
 0x9ad   :  { %4926 = vrot.lane.b32.xlu1 %v4925_v46, %s7049_s9 }
 0x9de   :  { %v4922_v5 = vpop.permute.xlu1 %4921 }
 0x9df   :  { %v4924_v10 = vunpack.i.h.bf16 %v4922_v5  ;;  %v4923_v8 = vunpack.i.l.bf16 %v4922_v5 }
 0x9e1   :  { %v2755_v13 = vsel %vm7052_vm9, %v2525_v20, %v4923_v8 }
 0x9e5   :  { %v2798_v0 = vpop.f32.mrf.mxu2 }
 0x9e6   :  { %v2799_v2 = vadd.f32 %v4974_v14, %v2798_v0 }
 0x9e8   :  { %v2808_v58 = vadd.f32 %v2799_v2, %v6136_v17  ;;  %v2756_v17 = vsel %vm7053_vm2, %v2527_v59, %v4924_v10 }
 0x9ea   :  { %v2814_v29 = vsel %vm265_vm15, %v2808_v58, 0.0 }
 0x9eb   :  { %2815 = vadd.xlane.f32.xlu0 %v2814_v29 }
 0x9ed   :  { %v2800_v43 = vpop.f32.mrf.mxu2 }
 0x9ee   :  { %v2801_v48 = vadd.f32 %v4974_v14, %v2800_v43 }
 0x9f0   :  { %v2809_v1 = vadd.f32 %v2801_v48, %v6134_v33 }
 0x9f2   :  { %v2817_v6 = vsel %vm265_vm15, %v2809_v1, 0.0 }
 0x9f3   :  { %2818 = vadd.xlane.f32.xlu1 %v2817_v6  ;;  %v4932_v37 = vpop.permute.xlu2 %4931 }
 0x9f4   :  { %v4934_v34 = vunpack.i.h.bf16 %v4932_v37  ;;  %v4933_v23 = vunpack.i.l.bf16 %v4932_v37  ;;  %v4975_v37 = vld [vmem:[%s6922_s14] ss:$0 sm:$0xff] }
 0xa1f   :  { %v4927_v9 = vpop.permute.xlu1 %4926 }
 0xa20   :  { %v4929_v55 = vunpack.i.h.bf16 %v4927_v9  ;;  %v4928_v47 = vunpack.i.l.bf16 %v4927_v9 }
 0xa22   :  { %v2758_v27 = vsel %vm253_vm4, %v2756_v17, %v4929_v55  ;;  %v2757_v33 = vsel %vm253_vm4, %v2755_v13, %v4928_v47  ;;  %v4976_v13 = vld [vmem:[%s6923_s15] ss:$0 sm:$0xff] }
 0xa23   :  { %v2759_v30 = vsel %vm259_vm3, %v2757_v33, %v4933_v23  ;;  %v2760_v18 = vsel %vm259_vm3, %v2758_v27, %v4934_v34 }
 0xa24   :  { %v2762_v52 = vpack.c.bf16 %v2760_v18, %v2759_v30 }
 0xa26   :  { %4621 = vmatmul.msk.bf16.gmra.mxu2 %vm265_vm15, %v2762_v52 }
 0xa5e   :  { %v2816_v24 = vpop.xlane.xlu0 %2815 }
 0xa5f   :  { %v2826_v42 = vmul.f32 %v2816_v24, %v6088_v7 }
 0xa61   :  { %v2830_v11 = vsub.f32 %v2808_v58, %v2826_v42 }
 0xa63   :  { %v2834_v35 = vmul.f32 %v2830_v11, %v2830_v11 }
 0xa65   :  { %v2838_v39 = vsel %vm265_vm15, %v2834_v35, 0.0 }
 0xa66   :  { %2839 = vadd.xlane.f32.xlu1 %v2838_v39  ;;  %v2819_v21 = vpop.xlane.xlu1 %2818 }
 0xa67   :  { %v2827_v31 = vmul.f32 %v2819_v21, %v6088_v7 }
 0xa69   :  { %v2831_v22 = vsub.f32 %v2809_v1, %v2827_v31 }
 0xa6b   :  { %v2835_v15 = vmul.f32 %v2831_v22, %v2831_v22 }
 0xa6d   :  { %v2841_v38 = vsel %vm265_vm15, %v2835_v15, 0.0 }
 0xaa9   :  { %v2803_v32 = vpop.f32.mrf.mxu2 }
 0xaaa   :  { %v2804_v36 = vadd.f32 %v4974_v14, %v2803_v32  ;;  %v4845_v32 = vld [vmem:[%s6926_s18 + $0x18] sm:$0xff] }
 0xaab   :  { %3015 = vmatpush.bf16.msra.mxu3 %v4845_v32 }
 0xaac   :  { %v2810_v51 = vadd.f32 %v2804_v36, %v6145_v62  ;;  %v4844_v36 = vld [vmem:[%s6926_s18 + $0x10] sm:$0xff] }
 0xaae   :  { %v2820_v49 = vsel %vm265_vm15, %v2810_v51, 0.0 }
 0xaaf   :  { %2821 = vadd.xlane.f32.xlu2 %v2820_v49  ;;  %3016 = vmatpush.bf16.msra.mxu3 %v4844_v36 }
 0xab1   :  { %v2805_v40 = vpop.f32.mrf.mxu2 }
 0xab2   :  { %v2806_v26 = vadd.f32 %v4974_v14, %v2805_v40 }
 0xab4   :  { %v2811_v19 = vadd.f32 %v2806_v26, %v6147_v63  ;;  %v4841_v63 = vld [vmem:[%s6924_s16 + $0x8] sm:$0xff] }
 0xab5   :  { %2950 = vmatpush.bf16.msrb.mxu1 %v4841_v63 }
 0xab6   :  { %v2823_v3 = vsel %vm265_vm15, %v2811_v19, 0.0 }
 0xab7   :  { %2842 = vadd.xlane.f32.xlu2 %v2841_v38  ;;  %2824 = vadd.xlane.f32.xlu0 %v2823_v3 }
 0xab9   :  { %2951 = vmatpush.bf16.msrb.mxu1 %v4840_v56 }
 0xad9   :  { %v2840_v25 = vpop.xlane.xlu1 %2839 }
 0xada   :  { %v2850_v16 = vmul.f32 %v2840_v25, %v6088_v7  ;;  %v4842_v25 = vld [vmem:[%s6926_s18] sm:$0xff] }
 0xadc   :  { %v2854_v45 = vadd.f32 1e-05, %v2850_v16 }
 0xade   :  { %5063 = vrsqrt.f32 %v2854_v45  ;;  %vm2864_vm11 = vweird.f32 %v2854_v45 }
 0xae4   :  { %v5064_v60 = vpop.eup %5063 }
 0xae5   :  { %v2859_v54 = vmul.f32 %v5064_v60, %v2854_v45  ;;  %vm2865_vm10 = vweird.f32 %v5064_v60 }
 0xae6   :  { %vm2866_vm1 = vmor %vm2864_vm11, %vm2865_vm10 }
 0xae7   :  { %v2860_v12 = vmul.f32 %v5064_v60, %v2859_v54 }
 0xae9   :  { %v2861_v0 = vmul.f32 0.5, %v2860_v12 }
 0xaeb   :  { %v2862_v29 = vsub.f32 1.5, %v2861_v0 }
 0xaed   :  { %v2863_v48 = vmul.f32 %v5064_v60, %v2862_v29 }
 0xaef   :  { %v2867_v5 = vsel %vm2866_vm1, %v5064_v60, %v2863_v48 }
 0xaf0   :  { %v2898_v9 = vmul.f32 %v2867_v5, %v2830_v11 }
 0xaf2   :  { %v2905_v17 = vmul.f32 %v4975_v37, %v2898_v9 }
 0xaf4   :  { %v6450_v27 = vadd.f32 %v4976_v13, %v2905_v17 }
 0xb22   :  { %v2822_v62 = vpop.xlane.xlu2 %2821 }
 0xb23   :  { %v2828_v50 = vmul.f32 %v2822_v62, %v6088_v7 }
 0xb25   :  { %v6426_v53 = vsub.f32 %v2810_v51, %v2828_v50 }
 0xb27   :  { %v2836_v57 = vmul.f32 %v6426_v53, %v6426_v53 }
 0xb29   :  { %v2844_v20 = vsel %vm265_vm15, %v2836_v57, 0.0 }
 0xb2a   :  { %v2843_v44 = vpop.xlane.xlu2 %2842  ;;  %2845 = vadd.xlane.f32.xlu0 %v2844_v20  ;;  %v2825_v59 = vpop.xlane.xlu0 %2824 }
 0xb2b   :  { %v2851_v28 = vmul.f32 %v2843_v44, %v6088_v7  ;;  %v2829_v61 = vmul.f32 %v2825_v59, %v6088_v7  ;;  %v4977_v44 = vld [vmem:[%s6925_s17] ss:$0 sm:$0xff] }
 0xb2d   :  { %v2855_v46 = vadd.f32 1e-05, %v2851_v28  ;;  %v6439_v14 = vsub.f32 %v2811_v19, %v2829_v61  ;;  %v4843_v19 = vld [vmem:[%s6926_s18 + $0x8] sm:$0xff] }
 0xb2e   :  { %3017 = vmatpush.bf16.msra.mxu3 %v4843_v19 }
 0xb2f   :  { %5065 = vrsqrt.f32 %v2855_v46  ;;  %v2837_v2 = vmul.f32 %v6439_v14, %v6439_v14  ;;  %vm2874_vm13 = vweird.f32 %v2855_v46 }
 0xb31   :  { %v2847_v58 = vsel %vm265_vm15, %v2837_v2, 0.0 }
 0xb32   :  { %2848 = vadd.xlane.f32.xlu1 %v2847_v58  ;;  %3018 = vmatpush.bf16.msra.mxu3 %v4842_v25  ;;  %v4846_v25 = vld [vmem:[%s6918_s10 + $0x10] sm:$0xff] }
 0xb35   :  { %v5066_v43 = vpop.eup %5065 }
 0xb36   :  { %v2869_v1 = vmul.f32 %v5066_v43, %v2855_v46  ;;  %vm2875_vm12 = vweird.f32 %v5066_v43 }
 0xb37   :  { %vm2876_vm14 = vmor %vm2874_vm13, %vm2875_vm12 }
 0xb38   :  { %v2870_v6 = vmul.f32 %v5066_v43, %v2869_v1 }
 0xb3a   :  { %v2871_v10 = vmul.f32 0.5, %v2870_v6  ;;  %v4978_v6 = vld [vmem:[%s6927_s19] ss:$0 sm:$0xff] }
 0xb3c   :  { %v2872_v8 = vsub.f32 1.5, %v2871_v10 }
 0xb3e   :  { %v2873_v55 = vmul.f32 %v5066_v43, %v2872_v8 }
 0xb40   :  { %v2877_v47 = vsel %vm2876_vm14, %v5066_v43, %v2873_v55 }
 0xb41   :  { %v2899_v34 = vmul.f32 %v2877_v47, %v2831_v22 }
 0xb43   :  { %v2906_v23 = vmul.f32 %v4975_v37, %v2899_v34 }
 0xb45   :  { %v6452_v33 = vadd.f32 %v4976_v13, %v2906_v23 }
 0xb47   :  { %v2916_v30 = vpack.c.bf16 %v6452_v33, %v6450_v27 }
 0xb49   :  { %4630 = vmatmul.msk.bf16.vlgmr.msrb.gmra.mxu1 %vm265_vm15, %v2916_v30 }
 0xb9d   :  { %v2846_v18 = vpop.xlane.xlu0 %2845 }
 0xb9e   :  { %v2852_v52 = vmul.f32 %v2846_v18, %v6088_v7 }
 0xba0   :  { %v2856_v24 = vadd.f32 1e-05, %v2852_v52 }
 0xba2   :  { %5067 = vrsqrt.f32 %v2856_v24  ;;  %vm2884_vm5 = vweird.f32 %v2856_v24 }
 0xba5   :  { %v2849_v42 = vpop.xlane.xlu1 %2848 }
 0xba6   :  { %v2853_v11 = vmul.f32 %v2849_v42, %v6088_v7 }
 0xba8   :  { %v5068_v35 = vpop.eup %5067  ;;  %v2857_v39 = vadd.f32 1e-05, %v2853_v11 }
 0xba9   :  { %v2879_v21 = vmul.f32 %v5068_v35, %v2856_v24  ;;  %vm2885_vm8 = vweird.f32 %v5068_v35 }
 0xbaa   :  { %5069 = vrsqrt.f32 %v2857_v39  ;;  %vm2886_vm6 = vmor %vm2884_vm5, %vm2885_vm8  ;;  %vm2894_vm9 = vweird.f32 %v2857_v39 }
 0xbab   :  { %v2880_v31 = vmul.f32 %v5068_v35, %v2879_v21 }
 0xbad   :  { %v2881_v51 = vmul.f32 0.5, %v2880_v31 }
 0xbaf   :  { %v2882_v22 = vsub.f32 1.5, %v2881_v51 }
 0xbb0   :  { %v5070_v49 = vpop.eup %5069 }
 0xbb1   :  { %v2883_v40 = vmul.f32 %v5068_v35, %v2882_v22  ;;  %v2889_v26 = vmul.f32 %v5070_v49, %v2857_v39  ;;  %vm2895_vm7 = vweird.f32 %v5070_v49 }
 0xbb2   :  { %vm2896_vm2 = vmor %vm2894_vm9, %vm2895_vm7 }
 0xbb3   :  { %v2890_v15 = vmul.f32 %v5070_v49, %v2889_v26  ;;  %v2887_v38 = vsel %vm2886_vm6, %v5068_v35, %v2883_v40 }
 0xbb4   :  { %v2900_v45 = vmul.f32 %v2887_v38, %v6426_v53  ;;  %v4847_v38 = vld [vmem:[%s6918_s10 + $0x18] sm:$0xff] }
 0xbb5   :  { %v2891_v3 = vmul.f32 0.5, %v2890_v15  ;;  %3174 = vmatpush.bf16.msrb.mxu0 %v4847_v38 }
 0xbb6   :  { %v2907_v63 = vmul.f32 %v4975_v37, %v2900_v45 }
 0xbb7   :  { %v2892_v16 = vsub.f32 1.5, %v2891_v3 }
 0xbb8   :  { %v2914_v57 = vadd.f32 %v4976_v13, %v2907_v63 }
 0xbb9   :  { %v2893_v62 = vmul.f32 %v5070_v49, %v2892_v16  ;;  %3175 = vmatpush.bf16.msrb.mxu0 %v4846_v25 }
 0xbbb   :  { %v2897_v60 = vsel %vm2896_vm2, %v5070_v49, %v2893_v62 }
 0xbbc   :  { %v2901_v50 = vmul.f32 %v2897_v60, %v6439_v14 }
 0xbbe   :  { %v2908_v54 = vmul.f32 %v4975_v37, %v2901_v50 }
 0xbc0   :  { %v2915_v56 = vadd.f32 %v4976_v13, %v2908_v54 }
 0xbc2   :  { %v2917_v20 = vpack.c.bf16 %v2915_v56, %v2914_v57 }
 0xbc4   :  { %4631 = vmatmul.msk.bf16.gmra.mxu1 %vm265_vm15, %v2917_v20 }
 0xbc6   :  { %v2953_v12 = vpop.f32.mrf.mxu1 }
 0xbc7   :  { %v2954_v53 = vadd.f32 %v4977_v44, %v2953_v12 }
 0xbc9   :  { %v2963_v61 = vmax.f32 %v2954_v53, 0.0 }
 0xbce   :  { %v2955_v59 = vpop.f32.mrf.mxu1 }
 0xbcf   :  { %v2956_v28 = vadd.f32 %v4977_v44, %v2955_v59 }
 0xbd1   :  { %v2964_v46 = vmax.f32 %v2956_v28, 0.0 }
 0xbd3   :  { %v2967_v0 = vpack.c.bf16 %v2964_v46, %v2963_v61 }
 0xbd5   :  { %4648 = vmatmul.msk.bf16.vlgmr.msra.gmra.mxu3 %vm487_vm0, %v2967_v0 }
 0xc41   :  { %v2958_v14 = vpop.f32.mrf.mxu1 }
 0xc42   :  { %v2959_v2 = vadd.f32 %v4977_v44, %v2958_v14 }
 0xc44   :  { %v2965_v43 = vmax.f32 %v2959_v2, 0.0 }
 0xc49   :  { %v2960_v58 = vpop.f32.mrf.mxu1 }
 0xc4a   :  { %v2961_v29 = vadd.f32 %v4977_v44, %v2960_v58 }
 0xc4c   :  { %v2966_v48 = vmax.f32 %v2961_v29, 0.0  ;;  %v4979_v29 = vld [vmem:[%s6928_s20] ss:$0 sm:$0xff] }
 0xc4e   :  { %v2968_v1 = vpack.c.bf16 %v2966_v48, %v2965_v43 }
 0xc50   :  { %4649 = vmatmul.msk.bf16.gmra.mxu3 %vm487_vm0, %v2968_v1 }
 0xc58   :  { %v3020_v5 = vpop.f32.mrf.mxu3 }
 0xc59   :  { %v3021_v10 = vadd.f32 %v4978_v6, %v3020_v5 }
 0xc5b   :  { %v3030_v8 = vadd.f32 %v3021_v10, %v6450_v27 }
 0xc5d   :  { %v3036_v37 = vsel %vm265_vm15, %v3030_v8, 0.0 }
 0xc5e   :  { %3037 = vadd.xlane.f32.xlu2 %v3036_v37 }
 0xc60   :  { %v3022_v9 = vpop.f32.mrf.mxu3 }
 0xc61   :  { %v3023_v55 = vadd.f32 %v4978_v6, %v3022_v9 }
 0xc63   :  { %v3031_v47 = vadd.f32 %v3023_v55, %v6452_v33 }
 0xc65   :  { %v3039_v13 = vsel %vm265_vm15, %v3031_v47, 0.0 }
 0xc66   :  { %3040 = vadd.xlane.f32.xlu0 %v3039_v13 }
 0xcd1   :  { %v3038_v17 = vpop.xlane.xlu2 %3037 }
 0xcd2   :  { %v3048_v34 = vmul.f32 %v3038_v17, %v6088_v7 }
 0xcd3   :  { %v3025_v23 = vpop.f32.mrf.mxu3 }
 0xcd4   :  { %v3052_v30 = vsub.f32 %v3030_v8, %v3048_v34  ;;  %v3026_v18 = vadd.f32 %v4978_v6, %v3025_v23 }
 0xcd6   :  { %v3056_v52 = vmul.f32 %v3052_v30, %v3052_v30  ;;  %v3032_v24 = vadd.f32 %v3026_v18, %v2914_v57 }
 0xcd8   :  { %v3060_v27 = vsel %vm265_vm15, %v3056_v52, 0.0  ;;  %v3042_v42 = vsel %vm265_vm15, %v3032_v24, 0.0 }
 0xcd9   :  { %3061 = vadd.xlane.f32.xlu0 %v3060_v27  ;;  %3043 = vadd.xlane.f32.xlu1 %v3042_v42  ;;  %v3041_v11 = vpop.xlane.xlu0 %3040 }
 0xcda   :  { %v3049_v33 = vmul.f32 %v3041_v11, %v6088_v7 }
 0xcdb   :  { %v3027_v35 = vpop.f32.mrf.mxu3 }
 0xcdc   :  { %v3053_v39 = vsub.f32 %v3031_v47, %v3049_v33  ;;  %v3028_v21 = vadd.f32 %v4978_v6, %v3027_v35  ;;  %v4980_v6 = vld [vmem:[%s6929_s21] ss:$0 sm:$0xff] }
 0xcde   :  { %v3033_v32 = vadd.f32 %v3028_v21, %v2915_v56  ;;  %v3057_v31 = vmul.f32 %v3053_v39, %v3053_v39 }
 0xce0   :  { %v3045_v36 = vsel %vm265_vm15, %v3033_v32, 0.0  ;;  %v3063_v51 = vsel %vm265_vm15, %v3057_v31, 0.0 }
 0xce1   :  { %3046 = vadd.xlane.f32.xlu2 %v3045_v36  ;;  %3064 = vadd.xlane.f32.xlu1 %v3063_v51 }
 0xd4c   :  { %v3044_v22 = vpop.xlane.xlu1 %3043  ;;  %v3062_v49 = vpop.xlane.xlu0 %3061 }
 0xd4d   :  { %v3050_v40 = vmul.f32 %v3044_v22, %v6088_v7  ;;  %v3072_v26 = vmul.f32 %v3062_v49, %v6088_v7 }
 0xd4f   :  { %v6494_v15 = vsub.f32 %v3032_v24, %v3050_v40  ;;  %v3076_v19 = vadd.f32 1e-05, %v3072_v26 }
 0xd51   :  { %5071 = vrsqrt.f32 %v3076_v19  ;;  %v3058_v3 = vmul.f32 %v6494_v15, %v6494_v15  ;;  %vm3086_vm11 = vweird.f32 %v3076_v19 }
 0xd53   :  { %v3066_v16 = vsel %vm265_vm15, %v3058_v3, 0.0 }
 0xd54   :  { %v3047_v45 = vpop.xlane.xlu2 %3046  ;;  %3067 = vadd.xlane.f32.xlu2 %v3066_v16  ;;  %v3065_v62 = vpop.xlane.xlu1 %3064 }
 0xd55   :  { %v3051_v60 = vmul.f32 %v3047_v45, %v6088_v7  ;;  %v3073_v50 = vmul.f32 %v3065_v62, %v6088_v7 }
 0xd57   :  { %v5072_v63 = vpop.eup %5071  ;;  %v6507_v54 = vsub.f32 %v3033_v32, %v3051_v60  ;;  %v3077_v57 = vadd.f32 1e-05, %v3073_v50 }
 0xd58   :  { %v3081_v56 = vmul.f32 %v5072_v63, %v3076_v19  ;;  %vm3087_vm10 = vweird.f32 %v5072_v63 }
 0xd59   :  { %5073 = vrsqrt.f32 %v3077_v57  ;;  %v3059_v20 = vmul.f32 %v6507_v54, %v6507_v54  ;;  %vm3088_vm1 = vmor %vm3086_vm11, %vm3087_vm10  ;;  %vm3096_vm13 = vweird.f32 %v3077_v57  ;;  %vm7054_vm10 = vcmask 64512  }
 0xd5a   :  { %v3082_v12 = vmul.f32 %v5072_v63, %v3081_v56  ;;  %vm7055_vm11 = vmmov %vm7054_vm10 }
 0xd5b   :  { %v3069_v44 = vsel %vm265_vm15, %v3059_v20, 0.0 }
 0xd5c   :  { %v3083_v53 = vmul.f32 0.5, %v3082_v12  ;;  %3070 = vadd.xlane.f32.xlu0 %v3069_v44 }
 0xd5e   :  { %v3084_v59 = vsub.f32 1.5, %v3083_v53 }
 0xd5f   :  { %v5074_v28 = vpop.eup %5073 }
 0xd60   :  { %v3085_v61 = vmul.f32 %v5072_v63, %v3084_v59  ;;  %v3091_v46 = vmul.f32 %v5074_v28, %v3077_v57  ;;  %vm3097_vm12 = vweird.f32 %v5074_v28 }
 0xd61   :  { %vm3098_vm14 = vmor %vm3096_vm13, %vm3097_vm12 }
 0xd62   :  { %v3092_v0 = vmul.f32 %v5074_v28, %v3091_v46  ;;  %v3089_v14 = vsel %vm3088_vm1, %v5072_v63, %v3085_v61  ;;  %vm7056_vm1 = vmmov %vm7054_vm10 }
 0xd63   :  { %v3120_v43 = vmul.f32 %v3089_v14, %v3052_v30  ;;  %vm7057_vm12 = vmmov %vm7056_vm1 }
 0xd64   :  { %v3093_v2 = vmul.f32 0.5, %v3092_v0  ;;  %vm7058_vm13 = vmmov %vm7056_vm1 }
 0xd65   :  { %v3127_v5 = vmul.f32 %v4979_v29, %v3120_v43 }
 0xd66   :  { %v3094_v58 = vsub.f32 1.5, %v3093_v2 }
 0xd67   :  { %v6518_v37 = vadd.f32 %v4980_v6, %v3127_v5 }
 0xd68   :  { %v3095_v48 = vmul.f32 %v5074_v28, %v3094_v58 }
 0xd6a   :  { %v3099_v1 = vsel %vm3098_vm14, %v5074_v28, %v3095_v48  ;;  %vm7059_vm14 = vmmov %vm7056_vm1 }
 0xd6b   :  { %v3121_v10 = vmul.f32 %v3099_v1, %v3053_v39 }
 0xd6d   :  { %v3128_v8 = vmul.f32 %v4979_v29, %v3121_v10 }
 0xd6f   :  { %v6520_v9 = vadd.f32 %v4980_v6, %v3128_v8 }
 0xd71   :  { %v3138_v55 = vpack.c.bf16 %v6520_v9, %v6518_v37 }
 0xd73   :  { %4663 = vmatmul.msk.bf16.vlgmr.msrb.gmra.mxu0 %vm265_vm15, %v3138_v55 }
 0xdc7   :  { %v3068_v47 = vpop.xlane.xlu2 %3067 }
 0xdc8   :  { %v3074_v13 = vmul.f32 %v3068_v47, %v6088_v7 }
 0xdca   :  { %v3078_v17 = vadd.f32 1e-05, %v3074_v13 }
 0xdcc   :  { %5075 = vrsqrt.f32 %v3078_v17  ;;  %vm3106_vm5 = vweird.f32 %v3078_v17 }
 0xdcf   :  { %v3071_v34 = vpop.xlane.xlu0 %3070 }
 0xdd0   :  { %v3075_v23 = vmul.f32 %v3071_v34, %v6088_v7 }
 0xdd2   :  { %v5076_v30 = vpop.eup %5075  ;;  %v3079_v18 = vadd.f32 1e-05, %v3075_v23 }
 0xdd3   :  { %v3101_v52 = vmul.f32 %v5076_v30, %v3078_v17  ;;  %vm3107_vm8 = vweird.f32 %v5076_v30 }
 0xdd4   :  { %5077 = vrsqrt.f32 %v3079_v18  ;;  %vm3108_vm6 = vmor %vm3106_vm5, %vm3107_vm8  ;;  %vm3116_vm9 = vweird.f32 %v3079_v18 }
 0xdd5   :  { %v3102_v24 = vmul.f32 %v5076_v30, %v3101_v52  ;;  %vm7060_vm8 = vmmov %vm7056_vm1 }
 0xdd6   :  { %vm7061_vm5 = vmmov %vm7056_vm1 }
 0xdd7   :  { %v3103_v27 = vmul.f32 0.5, %v3102_v24 }
 0xdd9   :  { %v3104_v42 = vsub.f32 1.5, %v3103_v27 }
 0xdda   :  { %v5078_v11 = vpop.eup %5077 }
 0xddb   :  { %v3105_v33 = vmul.f32 %v5076_v30, %v3104_v42  ;;  %v3111_v35 = vmul.f32 %v5078_v11, %v3079_v18  ;;  %vm3117_vm7 = vweird.f32 %v5078_v11 }
 0xddc   :  { %vm3118_vm2 = vmor %vm3116_vm9, %vm3117_vm7 }
 0xddd   :  { %v3112_v39 = vmul.f32 %v5078_v11, %v3111_v35  ;;  %v3109_v21 = vsel %vm3108_vm6, %v5076_v30, %v3105_v33  ;;  %vm7062_vm6 = vmmov %vm7056_vm1 }
 0xdde   :  { %v3122_v36 = vmul.f32 %v3109_v21, %v6494_v15  ;;  %v4981_v15 = vld [vmem:[%s6919_s11 + $0x1] ss:$0 sm:$0xff]  ;;  %vm7063_vm7 = vmmov %vm7056_vm1  ;;  %s7069_s11 = smov 56  }
 0xddf   :  { %v3113_v32 = vmul.f32 0.5, %v3112_v39  ;;  %vm7064_vm9 = vmmov %vm7056_vm1 }
 0xde0   :  { %v3129_v40 = vmul.f32 %v4979_v29, %v3122_v36 }
 0xde1   :  { %v3114_v31 = vsub.f32 1.5, %v3113_v32 }
 0xde2   :  { %v6529_v19 = vadd.f32 %v4980_v6, %v3129_v40 }
 0xde3   :  { %v3115_v51 = vmul.f32 %v5078_v11, %v3114_v31 }
 0xde5   :  { %v3119_v22 = vsel %vm3118_vm2, %v5078_v11, %v3115_v51  ;;  %vm7065_vm2 = vmmov %vm7056_vm1 }
 0xde6   :  { %v3123_v49 = vmul.f32 %v3119_v22, %v6507_v54 }
 0xde8   :  { %v3130_v26 = vmul.f32 %v4979_v29, %v3123_v49 }
 0xdea   :  { %v6531_v38 = vadd.f32 %v4980_v6, %v3130_v26 }
 0xdec   :  { %v3139_v3 = vpack.c.bf16 %v6531_v38, %v6529_v19 }
 0xdee   :  { %4664 = vmatmul.msk.bf16.gmra.mxu0 %vm265_vm15, %v3139_v3 }
 0xdf0   :  { %v3177_v25 = vpop.f32.mrf.mxu0 }
 0xdf1   :  { %v3178_v16 = vadd.f32 %v4981_v15, %v3177_v25 }
 0xdf3   :  { %v3187_v62 = vpack.c.bf16 %v3178_v16, %v3178_v16 }
 0xdf5   :  { %v3193_v63 = vunpack.c.l.b16 %v3187_v62 }
 0xdf8   :  { %v3179_v45 = vpop.f32.mrf.mxu0 }
 0xdf9   :  { %v3180_v60 = vadd.f32 %v4981_v15, %v3179_v45 }
 0xdfb   :  { %v3188_v50 = vpack.c.bf16 %v3180_v60, %v3180_v60 }
 0xdfd   :  { %v3194_v54 = vunpack.c.l.b16 %v3188_v50 }
 0xdff   :  { %v6539_v57 = vpack.c.b16 %v3194_v54, %v3193_v63 }
 0xe01   :  { %3261 = vrot.lane.b32.xlu0 %v6539_v57, %s5199_s23  ;;  %3263 = vrot.lane.b32.xlu2 %v6539_v57, %s5200_s6 }
 0xe02   :  { %3196 = vrot.lane.b32.xlu1 %v6539_v57, %s7008_s24 }
 0xe09   :  { %3328 = vrot.lane.b32.xlu0 %v6539_v57, %s5201_s0  ;;  %3397 = vrot.lane.b32.xlu2 %v6539_v57, %s5203_s3 }
 0xe0a   :  { %3330 = vrot.lane.b32.xlu1 %v6539_v57, %s5202_s26 }
 0xe12   :  { %3395 = vrot.lane.b32.xlu1 %v6539_v57, %s5204_s1 }
 0xe5b   :  { %v3264_v56 = vpop.permute.xlu2 %3263 }
 0xe5c   :  { %v3269_v20 = vsel %vm7054_vm10, %v3264_v56, 0  ;;  %vm7066_vm10 = vmmov %vm7056_vm1 }
 0xe5d   :  { %3278 = vmatpush.bf16.xpose.msrb.mxu3 %v3269_v20 }
 0xe63   :  { %v3398_v12 = vpop.permute.xlu2 %3397 }
 0xe64   :  { %v3403_v44 = vsel %vm7055_vm11, %v3398_v12, 0  ;;  %vm7067_vm11 = vmmov %vm7056_vm1 }
 0xe65   :  { %3412 = vmatpush.bf16.xpose.msra.mxu3 %v3403_v44 }
 0xe6b   :  { %v3182_v53 = vpop.f32.mrf.mxu0 }
 0xe6c   :  { %v3183_v59 = vadd.f32 %v4981_v15, %v3182_v53 }
 0xe6e   :  { %v3189_v46 = vpack.c.bf16 %v3183_v59, %v3183_v59 }
 0xe70   :  { %v3494_v29 = vunpack.c.l.b16 %v3189_v46 }
 0xe73   :  { %v3184_v28 = vpop.f32.mrf.mxu0  ;;  %v3262_v61 = vpop.permute.xlu0 %3261 }
 0xe74   :  { %v3197_v0 = vpop.permute.xlu1 %3196  ;;  %v3185_v14 = vadd.f32 %v4981_v15, %v3184_v28  ;;  %4667 = vmatmul.msk.bf16.vlgmr.msrb.gmra.mxu3 %vm7056_vm1, %v3262_v61 }
 0xe75   :  { %v3202_v2 = vsel %vm7057_vm12, %v3197_v0, 0  ;;  %vm7068_vm12 = vmmov %vm7056_vm1 }
 0xe76   :  { %v3190_v58 = vpack.c.bf16 %v3185_v14, %v3185_v14  ;;  %3211 = vmatpush.bf16.xpose.msra.mxu2 %v3202_v2 }
 0xe78   :  { %v3495_v43 = vunpack.c.l.b16 %v3190_v58 }
 0xe7a   :  { %v6559_v48 = vpack.c.b16 %v3495_v43, %v3494_v29 }
 0xe7b   :  { %v3329_v10 = vpop.permute.xlu0 %3328 }
 0xe7c   :  { %v3331_v1 = vpop.permute.xlu1 %3330  ;;  %3562 = vrot.lane.b32.xlu1 %v6559_v48, %s5199_s23  ;;  %3564 = vrot.lane.b32.xlu0 %v6559_v48, %s5200_s6  ;;  %s7074_s23 = sld [smem:[#allocation14_spill]] }
 0xe7d   :  { %v3336_v6 = vsel %vm7058_vm13, %v3331_v1, 0  ;;  %4665 = vmatmul.msk.bf16.vlgmr.msra.gmra.mxu2 %vm7059_vm14, %v6539_v57  ;;  %3497 = vrot.lane.b32.xlu2 %v6559_v48, %s7008_s24  ;;  %vm7070_vm13 = vmmov %vm7056_vm1 }
 0xe7e   :  { %3345 = vmatpush.bf16.xpose.msrb.mxu2 %v3336_v6  ;;  %vm7071_vm14 = vmmov %vm7056_vm1 }
 0xe82   :  { %s4190_s6 = sshll.u32 %s7074_s23, 4  ;;  %s4191_s6 = int_to_ptr.hbm [resolvable:$true] %s4190_s6 }
 0xe84   :  { %v3396_v5 = vpop.permute.xlu1 %3395  ;;  %3629 = vrot.lane.b32.xlu1 %v6559_v48, %s5201_s0  ;;  %3698 = vrot.lane.b32.xlu0 %v6559_v48, %s5203_s3 }
 0xe85   :  { %3631 = vrot.lane.b32.xlu2 %v6559_v48, %s5202_s26  ;;  %4671 = vmatmul.msk.bf16.vlgmr.msra.gmra.mxu3 %vm7060_vm8, %v3396_v5  ;;  %vm7072_vm8 = vmmov %vm7056_vm1 }
 0xe8d   :  { %3696 = vrot.lane.b32.xlu2 %v6559_v48, %s5204_s1  ;;  %4669 = vmatmul.msk.bf16.vlgmr.msrb.gmra.mxu2 %vm7061_vm5, %v3329_v10  ;;  %vm7073_vm5 = vmmov %vm7056_vm1 }
 0xed7   :  { %v3498_v8 = vpop.permute.xlu2 %3497 }
 0xed8   :  { %v3503_v55 = vsel %vm7062_vm6, %v3498_v8, 0 }
 0xed9   :  { %3512 = vmatpush.bf16.xpose.msra.mxu2 %v3503_v55 }
 0xedf   :  { %v3632_v47 = vpop.permute.xlu2 %3631 }
 0xee0   :  { %v3637_v13 = vsel %vm7063_vm7, %v3632_v47, 0  ;;  %4673 = vmatmul.msk.bf16.vlgmr.msra.gmra.mxu2 %vm7064_vm9, %v6559_v48 }
 0xee1   :  { %3646 = vmatpush.bf16.xpose.msrb.mxu2 %v3637_v13 }
 0xee7   :  { %v3697_v21 = vpop.permute.xlu2 %3696 }
 0xeee   :  { %v3563_v17 = vpop.permute.xlu1 %3562  ;;  %v3565_v34 = vpop.permute.xlu0 %3564 }
 0xeef   :  { %v3570_v23 = vsel %vm7065_vm2, %v3565_v34, 0 }
 0xef0   :  { %3579 = vmatpush.bf16.xpose.msrb.mxu3 %v3570_v23 }
 0xef6   :  { %v3630_v30 = vpop.permute.xlu1 %3629  ;;  %v3699_v18 = vpop.permute.xlu0 %3698 }
 0xef7   :  { %v3704_v52 = vsel %vm7066_vm10, %v3699_v18, 0  ;;  %v3280_v24 = vpop.f32.mrf.mxu3  ;;  %4675 = vmatmul.msk.bf16.vlgmr.msrb.gmra.mxu3 %vm7067_vm11, %v3563_v17  ;;  %4677 = vmatmul.msk.bf16.vlgmr.msrb.gmra.mxu2 %vm7056_vm1, %v3630_v30 }
 0xef8   :  { %v3281_v27 = vadd.f32 %v3280_v24, %v6204_v41  ;;  %3713 = vmatpush.bf16.xpose.msra.mxu3 %v3704_v52 }
 0xefa   :  { %v3285_v42 = vsel %vm253_vm4, %v3281_v27, -inf }
 0xefb   :  { %3286 = vmax.xlane.f32.xlu2 %v3285_v42 }
 0xeff   :  { %v3282_v33 = vpop.f32.mrf.mxu3 }
 0xf00   :  { %v3213_v11 = vpop.f32.mrf.mxu2  ;;  %v3283_v32 = vadd.f32 %v3282_v33, %v6204_v41 }
 0xf01   :  { %v3214_v35 = vadd.f32 %v3213_v11, %v6204_v41 }
 0xf02   :  { %v3288_v49 = vsel %vm253_vm4, %v3283_v32, -inf }
 0xf03   :  { %v3218_v39 = vsel %vm253_vm4, %v3214_v35, -inf }
 0xf04   :  { %3219 = vmax.xlane.f32.xlu0 %v3218_v39 }
 0xf07   :  { %4679 = vmatmul.msk.bf16.vlgmr.msra.gmra.mxu3 %vm7068_vm12, %v3697_v21 }
 0xf08   :  { %v3215_v31 = vpop.f32.mrf.mxu2  ;;  %v3414_v51 = vpop.f32.mrf.mxu3 }
 0xf09   :  { %v3216_v36 = vadd.f32 %v3215_v31, %v6204_v41  ;;  %v6616_v50 = vadd.f32 %v3414_v51, %v6204_v41 }
 0xf0b   :  { %v3221_v22 = vsel %vm253_vm4, %v3216_v36, -inf  ;;  %v3419_v63 = vsel %vm253_vm4, %v6616_v50, -inf }
 0xf0c   :  { %3222 = vmax.xlane.f32.xlu1 %v3221_v22  ;;  %3289 = vmax.xlane.f32.xlu0 %v3288_v49 }
 0xf10   :  { %v3347_v40 = vpop.f32.mrf.mxu2  ;;  %v3416_v25 = vpop.f32.mrf.mxu3 }
 0xf11   :  { %v3348_v26 = vadd.f32 %v3347_v40, %v6204_v41  ;;  %v6602_v15 = vadd.f32 %v3416_v25, %v6204_v41 }
 0xf13   :  { %3241 = vrot.lane.b32.xlu2 %v6539_v57, %s7023_s4  ;;  %v3352_v3 = vsel %vm253_vm4, %v3348_v26, -inf  ;;  %v3422_v16 = vsel %vm253_vm4, %v6602_v15, -inf }
 0xf14   :  { %3353 = vmax.xlane.f32.xlu1 %v3352_v3 }
 0xf18   :  { %v3349_v45 = vpop.f32.mrf.mxu2 }
 0xf19   :  { %v6611_v62 = vadd.f32 %v3349_v45, %v6204_v41 }
 0xf1b   :  { %3375 = vrot.lane.b32.xlu2 %v6539_v57, %s5207_s22  ;;  %v3355_v60 = vsel %vm253_vm4, %v6611_v62, -inf }
 0xf1c   :  { %3423 = vmax.xlane.f32.xlu1 %v3422_v16 }
 0xf20   :  { %3308 = vrot.lane.b32.xlu0 %v6539_v57, %s7069_s11 }
 0xf44   :  { %3356 = vmax.xlane.f32.xlu2 %v3355_v60 }
 0xf4a   :  { %3420 = vmax.xlane.f32.xlu0 %v3419_v63 }
 0xf63   :  { %v3514_v17 = vpop.f32.mrf.mxu2 }
 0xf64   :  { %v6637_v23 = vadd.f32 %v3514_v17, %v6263_v4 }
 0xf66   :  { %v3519_v24 = vsel %vm253_vm4, %v6637_v23, -inf }
 0xf6e   :  { %v3287_v54 = vpop.xlane.xlu2 %3286 }
 0xf6f   :  { %v3291_v56 = vsub.f32 %v3281_v27, %v3287_v54 }
 0xf71   :  { %v3293_v20 = vmul.f32 1.442695, %v3291_v56 }
 0xf73   :  { %5079 = vpow2.f32 %v3293_v20 }
 0xf76   :  { %v3242_v12 = vpop.permute.xlu2 %3241 }
 0xf77   :  { %v3220_v44 = vpop.xlane.xlu0 %3219  ;;  %3254 = vmatpush.bf16.msra.mxu1 %v3242_v12 }
 0xf78   :  { %v3224_v53 = vsub.f32 %v3214_v35, %v3220_v44 }
 0xf79   :  { %v6620_v59 = vpop.eup %5079 }
 0xf7a   :  { %v3226_v28 = vmul.f32 1.442695, %v3224_v53  ;;  %v3297_v61 = vsel %vm253_vm4, %v6620_v59, 0.0  ;;  %v3581_v5 = vpop.f32.mrf.mxu3 }
 0xf7b   :  { %3298 = vadd.xlane.f32.xlu0 %v3297_v61  ;;  %v6676_v63 = vadd.f32 %v3581_v5, %v6263_v4 }
 0xf7c   :  { %5081 = vpow2.f32 %v3226_v28 }
 0xf7d   :  { %v3586_v20 = vsel %vm253_vm4, %v6676_v63, -inf }
 0xf7e   :  { %v3376_v41 = vpop.permute.xlu2 %3375 }
 0xf7f   :  { %v3223_v46 = vpop.xlane.xlu1 %3222  ;;  %v3290_v0 = vpop.xlane.xlu0 %3289  ;;  %3388 = vmatpush.bf16.msrb.mxu1 %v3376_v41 }
 0xf80   :  { %v3225_v14 = vsub.f32 %v3216_v36, %v3223_v46  ;;  %v3292_v2 = vsub.f32 %v3283_v32, %v3290_v0 }
 0xf82   :  { %v6624_v58 = vpop.eup %5081  ;;  %v3228_v29 = vmul.f32 1.442695, %v3225_v14  ;;  %v3295_v43 = vmul.f32 1.442695, %v3292_v2  ;;  %v3583_v18 = vpop.f32.mrf.mxu3 }
 0xf83   :  { %v3230_v1 = vsel %vm253_vm4, %v6624_v58, 0.0  ;;  %v6646_v42 = vadd.f32 %v3583_v18, %v6263_v4 }
 0xf84   :  { %5083 = vpow2.f32 %v3228_v29  ;;  %3231 = vadd.xlane.f32.xlu1 %v3230_v1 }
 0xf85   :  { %5085 = vpow2.f32 %v3295_v43  ;;  %v3589_v11 = vsel %vm253_vm4, %v6646_v42, -inf }
 0xf87   :  { %v3354_v6 = vpop.xlane.xlu1 %3353 }
 0xf88   :  { %v3358_v10 = vsub.f32 %v3348_v26, %v3354_v6 }
 0xf8a   :  { %v6628_v8 = vpop.eup %5083  ;;  %v3360_v55 = vmul.f32 1.442695, %v3358_v10  ;;  %v3715_v33 = vpop.f32.mrf.mxu3 }
 0xf8b   :  { %v6630_v47 = vpop.eup %5085  ;;  %v3233_v13 = vsel %vm253_vm4, %v6628_v8, 0.0  ;;  %v6651_v35 = vadd.f32 %v3715_v33, %v6263_v4 }
 0xf8c   :  { %5087 = vpow2.f32 %v3360_v55  ;;  %3234 = vadd.xlane.f32.xlu2 %v3233_v13  ;;  %v3300_v34 = vsel %vm253_vm4, %v6630_v47, 0.0 }
 0xf8d   :  { %3301 = vadd.xlane.f32.xlu1 %v3300_v34  ;;  %v3720_v39 = vsel %vm253_vm4, %v6651_v35, -inf }
 0xf8f   :  { %v3424_v21 = vpop.xlane.xlu1 %3423 }
 0xf90   :  { %v3426_v36 = vsub.f32 %v6602_v15, %v3424_v21 }
 0xf92   :  { %v6639_v30 = vpop.eup %5087  ;;  %v3309_v52 = vpop.permute.xlu0 %3308  ;;  %v3429_v22 = vmul.f32 1.442695, %v3426_v36 }
 0xf93   :  { %3321 = vmatpush.bf16.msra.mxu0 %v3309_v52  ;;  %v3364_v27 = vsel %vm253_vm4, %v6639_v30, 0.0  ;;  %v3717_v53 = vpop.f32.mrf.mxu3 }
 0xf94   :  { %3520 = vmax.xlane.f32.xlu2 %v3519_v24  ;;  %v6688_v28 = vadd.f32 %v3717_v53, %v6263_v4 }
 0xf95   :  { %3365 = vadd.xlane.f32.xlu1 %v3364_v27 }
 0xf96   :  { %v3723_v61 = vsel %vm253_vm4, %v6688_v28, -inf }
 0xf9c   :  { %3590 = vmax.xlane.f32.xlu2 %v3589_v11 }
 0xfa4   :  { %3721 = vmax.xlane.f32.xlu2 %v3720_v39 }
 0xfb7   :  { %v3357_v32 = vpop.xlane.xlu2 %3356 }
 0xfb8   :  { %v3359_v31 = vsub.f32 %v6611_v62, %v3357_v32  ;;  %v3516_v62 = vpop.f32.mrf.mxu2 }
 0xfba   :  { %v3362_v51 = vmul.f32 1.442695, %v3359_v31 }
 0xfbc   :  { %5089 = vpow2.f32 %v3362_v51  ;;  %3542 = vrot.lane.b32.xlu2 %v6559_v48, %s7023_s4 }
 0xfbd   :  { %v3421_v49 = vpop.xlane.xlu0 %3420  ;;  %5091 = vpow2.f32 %v3429_v22 }
 0xfbe   :  { %v3425_v40 = vsub.f32 %v6616_v50, %v3421_v49  ;;  %v6673_v50 = vadd.f32 %v3516_v62, %v6263_v4 }
 0xfc0   :  { %v3427_v26 = vmul.f32 1.442695, %v3425_v40  ;;  %v3522_v54 = vsel %vm253_vm4, %v6673_v50, -inf  ;;  %v3648_v56 = vpop.f32.mrf.mxu2 }
 0xfc1   :  { %v6683_v12 = vadd.f32 %v3648_v56, %v6263_v4 }
 0xfc2   :  { %v6660_v3 = vpop.eup %5089  ;;  %5093 = vpow2.f32 %v3427_v26 }
 0xfc3   :  { %v3367_v25 = vsel %vm253_vm4, %v6660_v3, 0.0  ;;  %v6664_v16 = vpop.eup %5091  ;;  %v3653_v44 = vsel %vm253_vm4, %v6683_v12, -inf }
 0xfc4   :  { %3368 = vadd.xlane.f32.xlu1 %v3367_v25  ;;  %v3434_v60 = vsel %vm253_vm4, %v6664_v16, 0.0 }
 0xfc8   :  { %v6666_v15 = vpop.eup %5093  ;;  %v3650_v52 = vpop.f32.mrf.mxu2 }
 0xfc9   :  { %v3431_v45 = vsel %vm253_vm4, %v6666_v15, 0.0 }
 0xfca   :  { %3432 = vadd.xlane.f32.xlu0 %v3431_v45 }
 0xfcc   :  { %3435 = vadd.xlane.f32.xlu1 %v3434_v60 }
 0xfd2   :  { %3523 = vmax.xlane.f32.xlu0 %v3522_v54 }
 0xfd4   :  { %3587 = vmax.xlane.f32.xlu1 %v3586_v20 }
 0xfda   :  { %3654 = vmax.xlane.f32.xlu0 %v3653_v44 }
 0xfe2   :  { %3724 = vmax.xlane.f32.xlu0 %v3723_v61 }
 0xfed   :  { %3442 = vrot.lane.b32.xlu1 %v6539_v57, %s7047_s25 }
 0xfee   :  { %v3299_v46 = vpop.xlane.xlu0 %3298 }
 0xff7   :  { %v3232_v41 = vpop.xlane.xlu1 %3231 }
 0xff8   :  { %5095 = vrcp.f32 %v3232_v41 }
 0xff9   :  { %5097 = vrcp.f32 %v3299_v46 }
 0xffe   :  { %v5096_v2 = vpop.eup %5095 }
 0xfff   :  { %v3235_v0 = vpop.xlane.xlu2 %3234  ;;  %v5098_v29 = vpop.eup %5097  ;;  %v3238_v6 = vmul.f32 %v5096_v2, %v6624_v58 }
0x1000   :  { %5099 = vrcp.f32 %v3235_v0  ;;  %v3302_v14 = vpop.xlane.xlu1 %3301  ;;  %v3305_v55 = vmul.f32 %v5098_v29, %v6620_v59 }
0x1001   :  { %5101 = vrcp.f32 %v3302_v14 }
0x1006   :  { %v5100_v43 = vpop.eup %5099 }
0x1007   :  { %v5102_v1 = vpop.eup %5101  ;;  %v3239_v5 = vmul.f32 %v5100_v43, %v6628_v8  ;;  %v3521_v10 = vpop.xlane.xlu2 %3520  ;;  %v6704_v8 = vadd.f32 %v3650_v52, %v6263_v4 }
0x1008   :  { %v3306_v57 = vmul.f32 %v5102_v1, %v6630_v47  ;;  %v3525_v13 = vsub.f32 %v6637_v23, %v3521_v10  ;;  %v3366_v11 = vpop.xlane.xlu1 %3365 }
0x1009   :  { %v3240_v17 = vpack.c.bf16 %v3239_v5, %v3238_v6  ;;  %v3656_v47 = vsel %vm253_vm4, %v6704_v8, -inf }
0x100a   :  { %v3307_v34 = vpack.c.bf16 %v3306_v57, %v3305_v55  ;;  %v3527_v18 = vmul.f32 1.442695, %v3525_v13 }
0x100b   :  { %4666 = vmatmul.msk.bf16.vlgmr.msra.gmra.mxu1 %vm253_vm4, %v3240_v17 }
0x100c   :  { %5103 = vpow2.f32 %v3527_v18  ;;  %4668 = vmatmul.msk.bf16.vlgmr.msra.gmra.mxu0 %vm253_vm4, %v3307_v34 }
0x100d   :  { %5105 = vrcp.f32 %v3366_v11 }
0x100f   :  { %v3591_v24 = vpop.xlane.xlu2 %3590 }
0x1010   :  { %v3593_v45 = vsub.f32 %v6646_v42, %v3591_v24 }
0x1012   :  { %v6701_v58 = vpop.eup %5103  ;;  %v3596_v60 = vmul.f32 1.442695, %v3593_v45 }
0x1013   :  { %v3531_v59 = vsel %vm253_vm4, %v6701_v58, 0.0  ;;  %v5106_v39 = vpop.eup %5105 }
0x1014   :  { %3532 = vadd.xlane.f32.xlu2 %v3531_v59  ;;  %v3372_v4 = vmul.f32 %v5106_v39, %v6639_v30 }
0x1017   :  { %v3722_v23 = vpop.xlane.xlu2 %3721  ;;  %3657 = vmax.xlane.f32.xlu1 %v3656_v47 }
0x1018   :  { %v3726_v29 = vsub.f32 %v6651_v35, %v3722_v23 }
0x101f   :  { %v3543_v27 = vpop.permute.xlu2 %3542 }
0x1020   :  { %3555 = vmatpush.bf16.msra.mxu1 %v3543_v27 }
0x1037   :  { %v3369_v33 = vpop.xlane.xlu1 %3368 }
0x1038   :  { %5107 = vrcp.f32 %v3369_v33 }
0x103d   :  { %v3433_v21 = vpop.xlane.xlu0 %3432 }
0x103e   :  { %v5108_v32 = vpop.eup %5107 }
0x103f   :  { %v3373_v31 = vmul.f32 %v5108_v32, %v6660_v3  ;;  %v3436_v36 = vpop.xlane.xlu1 %3435 }
0x1041   :  { %v3374_v51 = vpack.c.bf16 %v3373_v31, %v3372_v4 }
0x1043   :  { %4670 = vmatmul.msk.bf16.vlgmr.msrb.gmra.mxu1 %vm253_vm4, %v3374_v51 }
0x1045   :  { %v3524_v22 = vpop.xlane.xlu0 %3523 }
0x1046   :  { %v3526_v49 = vsub.f32 %v6673_v50, %v3524_v22 }
0x1047   :  { %v3588_v40 = vpop.xlane.xlu1 %3587 }
0x1048   :  { %v3529_v26 = vmul.f32 1.442695, %v3526_v49  ;;  %v3592_v25 = vsub.f32 %v6676_v63, %v3588_v40 }
0x104a   :  { %5109 = vpow2.f32 %v3529_v26  ;;  %v3594_v62 = vmul.f32 1.442695, %v3592_v25 }
0x104c   :  { %5111 = vpow2.f32 %v3594_v62 }
0x104d   :  { %v3655_v30 = vpop.xlane.xlu0 %3654  ;;  %5113 = vpow2.f32 %v3596_v60 }
0x104e   :  { %v3659_v3 = vsub.f32 %v6683_v12, %v3655_v30 }
0x1050   :  { %v6717_v54 = vpop.eup %5109  ;;  %v3661_v56 = vmul.f32 1.442695, %v3659_v3 }
0x1051   :  { %v3534_v50 = vsel %vm253_vm4, %v6717_v54, 0.0 }
0x1052   :  { %v6721_v20 = vpop.eup %5111  ;;  %5115 = vpow2.f32 %v3661_v56  ;;  %3535 = vadd.xlane.f32.xlu1 %v3534_v50 }
0x1053   :  { %v3598_v42 = vsel %vm253_vm4, %v6721_v20, 0.0  ;;  %5117 = vrcp.f32 %v3436_v36  ;;  %v6725_v63 = vpop.eup %5113 }
0x1054   :  { %3599 = vadd.xlane.f32.xlu0 %v3598_v42  ;;  %5119 = vrcp.f32 %v3433_v21  ;;  %v3601_v61 = vsel %vm253_vm4, %v6725_v63, 0.0 }
0x1055   :  { %v3725_v43 = vpop.xlane.xlu0 %3724 }
0x1058   :  { %v6727_v12 = vpop.eup %5115 }
0x1059   :  { %v3665_v44 = vsel %vm253_vm4, %v6727_v12, 0.0  ;;  %v5118_v53 = vpop.eup %5117 }
0x105a   :  { %3666 = vadd.xlane.f32.xlu2 %v3665_v44  ;;  %v5120_v41 = vpop.eup %5119  ;;  %v3440_v46 = vmul.f32 %v5118_v53, %v6664_v16  ;;  %v3728_v16 = vmul.f32 1.442695, %v3726_v29 }
0x105b   :  { %v3439_v0 = vmul.f32 %v5120_v41, %v6666_v15  ;;  %v3727_v15 = vsub.f32 %v6688_v28, %v3725_v43 }
0x105c   :  { %3602 = vadd.xlane.f32.xlu0 %v3601_v61 }
0x105d   :  { %v3441_v2 = vpack.c.bf16 %v3440_v46, %v3439_v0  ;;  %v3730_v10 = vmul.f32 1.442695, %v3727_v15 }
0x105f   :  { %v3443_v14 = vpop.permute.xlu1 %3442 }
0x1060   :  { %3455 = vmatpush.bf16.msrb.mxu0 %v3443_v14  ;;  %v4849_v14 = vld [vmem:[%s6920_s12 + $0x18] sm:$0xff] }
0x1061   :  { %3829 = vmatpush.bf16.msra.mxu2 %v4849_v14 }
0x1063   :  { %4672 = vmatmul.msk.bf16.vlgmr.msrb.gmra.mxu0 %vm253_vm4, %v3441_v2  ;;  %v4848_v2 = vld [vmem:[%s6920_s12 + $0x10] sm:$0xff]  ;;  %s5208_s12 = smov [#allocation4]  }
0x1064   :  { %s4188_s0 = sshll.u32 %s5208_s12, 4  ;;  %s4189_s0 = int_to_ptr.vmem [resolvable:$true] %s4188_s0 }
0x1065   :  { %3830 = vmatpush.bf16.msra.mxu2 %v4848_v2 }
0x1070   :  { %3609 = vrot.lane.b32.xlu0 %v6559_v48, %s7069_s11 }
0x1072   :  { %3743 = vrot.lane.b32.xlu2 %v6559_v48, %s7047_s25 }
0x1087   :  { %v3533_v47 = vpop.xlane.xlu2 %3532 }
0x1088   :  { %v6749_v28 = vpop.f32.mrf.mxu1 }
0x1089   :  { %v3323_v18 = vpop.f32.mrf.mxu0 }
0x108a   :  { %v3658_v1 = vpop.xlane.xlu1 %3657 }
0x108b   :  { %v3660_v6 = vsub.f32 %v6704_v8, %v3658_v1 }
0x108d   :  { %v3663_v5 = vmul.f32 1.442695, %v3660_v6 }
0x108f   :  { %5121 = vpow2.f32 %v3663_v5 }
0x1090   :  { %5123 = vpow2.f32 %v3728_v16  ;;  %v6751_v52 = vpop.f32.mrf.mxu1 }
0x1091   :  { %5125 = vpow2.f32 %v3730_v10  ;;  %v3325_v24 = vpop.f32.mrf.mxu0 }
0x1092   :  { %v4935_v8 = vpack.i.bf16 %v3325_v24, %v3323_v18  ;;  %5127 = vrcp.f32 %v3533_v47 }
0x1095   :  { %v6743_v55 = vpop.eup %5121 }
0x1096   :  { %v5124_v57 = vpop.eup %5123  ;;  %v3668_v13 = vsel %vm253_vm4, %v6743_v55, 0.0 }
0x1097   :  { %3669 = vadd.xlane.f32.xlu1 %v3668_v13  ;;  %v3732_v35 = vsel %vm253_vm4, %v5124_v57, 0.0  ;;  %v5126_v17 = vpop.eup %5125 }
0x1098   :  { %v3735_v34 = vsel %vm253_vm4, %v5126_v17, 0.0  ;;  %v5128_v33 = vpop.eup %5127 }
0x1099   :  { %v3539_v32 = vmul.f32 %v5128_v33, %v6701_v58 }
0x109a   :  { %3733 = vadd.xlane.f32.xlu0 %v3732_v35 }
0x109f   :  { %3736 = vadd.xlane.f32.xlu1 %v3735_v34 }
0x10b8   :  { %3676 = vrot.lane.b32.xlu1 %v6559_v48, %s5207_s22 }
0x10c0   :  { %v3390_v59 = vpop.f32.mrf.mxu1  ;;  %4936 = vrot.lane.b32.xlu1 %v4935_v8, %s7048_s8 }
0x10c5   :  { %v3536_v23 = vpop.xlane.xlu1 %3535 }
0x10c6   :  { %5129 = vrcp.f32 %v3536_v23 }
0x10c7   :  { %v3600_v39 = vpop.xlane.xlu0 %3599 }
0x10c8   :  { %v3392_v27 = vpop.f32.mrf.mxu1 }
0x10c9   :  { %v4940_v11 = vpack.i.bf16 %v3392_v27, %v3390_v59 }
0x10cb   :  { %4941 = vrot.lane.b32.xlu0 %v4940_v11, %s7049_s9 }
0x10cc   :  { %v5130_v21 = vpop.eup %5129 }
0x10cd   :  { %v3540_v48 = vmul.f32 %v5130_v21, %v6717_v54  ;;  %v3667_v36 = vpop.xlane.xlu2 %3666  ;;  %v4982_v21 = vld [vmem:[%s6921_s13 + $0x1] ss:$0 sm:$0xff]  ;;  %s5209_s13 = smov 128  }
0x10cf   :  { %v3541_v4 = vpack.c.bf16 %v3540_v48, %v3539_v32  ;;  %v3603_v31 = vpop.xlane.xlu0 %3602 }
0x10d0   :  { %5131 = vrcp.f32 %v3603_v31 }
0x10d1   :  { %4674 = vmatmul.msk.bf16.vlgmr.msra.gmra.mxu1 %vm253_vm4, %v3541_v4  ;;  %5133 = vrcp.f32 %v3600_v39 }
0x10d5   :  { %v3744_v45 = vpop.permute.xlu2 %3743 }
0x10d6   :  { %v5132_v51 = vpop.eup %5131 }
0x10d7   :  { %v5134_v22 = vpop.eup %5133  ;;  %v3607_v49 = vmul.f32 %v5132_v51, %v6725_v63 }
0x10d8   :  { %v3606_v26 = vmul.f32 %v5134_v22, %v6721_v20 }
0x10da   :  { %v3608_v58 = vpack.c.bf16 %v3607_v49, %v3606_v26 }
0x10e0   :  { %v3457_v40 = vpop.f32.mrf.mxu0 }
0x10e2   :  { %v3610_v25 = vpop.permute.xlu0 %3609 }
0x10e3   :  { %3622 = vmatpush.bf16.msra.mxu0 %v3610_v25 }
0x10e6   :  { %4676 = vmatmul.msk.bf16.vlgmr.msra.gmra.mxu0 %vm253_vm4, %v3608_v58 }
0x10e7   :  { %3756 = vmatpush.bf16.msrb.mxu0 %v3744_v45 }
0x10e8   :  { %v3459_v62 = vpop.f32.mrf.mxu0 }
0x10e9   :  { %v4945_v60 = vpack.i.bf16 %v3459_v62, %v3457_v40 }
0x10eb   :  { %4946 = vrot.lane.b32.xlu1 %v4945_v60, %s6993_s29 }
0x110a   :  { %v3670_v30 = vpop.xlane.xlu1 %3669 }
0x110d   :  { %v3734_v3 = vpop.xlane.xlu0 %3733 }
0x110e   :  { %5135 = vrcp.f32 %v3734_v3 }
0x1112   :  { %v3737_v54 = vpop.xlane.xlu1 %3736 }
0x1113   :  { %5137 = vrcp.f32 %v3737_v54 }
0x1114   :  { %v5136_v56 = vpop.eup %5135  ;;  %5139 = vrcp.f32 %v3670_v30 }
0x1115   :  { %v3740_v42 = vmul.f32 %v5136_v56, %v5124_v57  ;;  %5141 = vrcp.f32 %v3667_v36 }
0x1119   :  { %v5138_v50 = vpop.eup %5137 }
0x111a   :  { %v3741_v20 = vmul.f32 %v5138_v50, %v5126_v17  ;;  %v5140_v44 = vpop.eup %5139 }
0x111b   :  { %v5142_v53 = vpop.eup %5141  ;;  %v3674_v61 = vmul.f32 %v5140_v44, %v6743_v55 }
0x111c   :  { %v3742_v63 = vpack.c.bf16 %v3741_v20, %v3740_v42  ;;  %v3673_v41 = vmul.f32 %v5142_v53, %v6727_v12 }
0x111e   :  { %4680 = vmatmul.msk.bf16.vlgmr.msrb.gmra.mxu0 %vm253_vm4, %v3742_v63  ;;  %v3675_v0 = vpack.c.bf16 %v3674_v61, %v3673_v41 }
0x112a   :  { %v3677_v46 = vpop.permute.xlu1 %3676 }
0x112b   :  { %3689 = vmatpush.bf16.msrb.mxu1 %v3677_v46 }
0x112e   :  { %4678 = vmatmul.msk.bf16.vlgmr.msrb.gmra.mxu1 %vm253_vm4, %v3675_v0 }
0x1132   :  { %v4937_v29 = vpop.permute.xlu1 %4936 }
0x1133   :  { %v4939_v1 = vunpack.i.h.bf16 %v4937_v29  ;;  %v4938_v6 = vunpack.i.l.bf16 %v4937_v29 }
0x1135   :  { %v3487_v5 = vsel %vm7070_vm13, %v6751_v52, %v4939_v1  ;;  %v3486_v10 = vsel %vm7071_vm14, %v6749_v28, %v4938_v6 }
0x113d   :  { %v4942_v43 = vpop.permute.xlu0 %4941 }
0x113e   :  { %v4944_v12 = vunpack.i.h.bf16 %v4942_v43  ;;  %v4943_v16 = vunpack.i.l.bf16 %v4942_v43 }
0x1140   :  { %v3489_v13 = vsel %vm253_vm4, %v3487_v5, %v4944_v12  ;;  %v3488_v35 = vsel %vm253_vm4, %v3486_v10, %v4943_v16 }
0x114e   :  { %v3557_v52 = vpop.f32.mrf.mxu1 }
0x1156   :  { %v3559_v47 = vpop.f32.mrf.mxu1 }
0x115d   :  { %v4947_v15 = vpop.permute.xlu1 %4946 }
0x115e   :  { %v4949_v55 = vunpack.i.h.bf16 %v4947_v15  ;;  %v4948_v57 = vunpack.i.l.bf16 %v4947_v15 }
0x1160   :  { %v3490_v17 = vsel %vm259_vm3, %v3488_v35, %v4948_v57  ;;  %v3491_v34 = vsel %vm259_vm3, %v3489_v13, %v4949_v55 }
0x1161   :  { %v3793_v18 = vpack.c.bf16 %v3491_v34, %v3490_v17 }
0x1163   :  { %v3624_v24 = vpop.f32.mrf.mxu0  ;;  %4694 = vmatmul.msk.bf16.vlgmr.msra.gmra.mxu2 %vm265_vm15, %v3793_v18 }
0x116b   :  { %v3626_v8 = vpop.f32.mrf.mxu0 }
0x116c   :  { %v4950_v59 = vpack.i.bf16 %v3626_v8, %v3624_v24  ;;  %v4851_v24 = vld [vmem:[%s6924_s16 + $0x18] sm:$0xff] }
0x116d   :  { %3988 = vmatpush.bf16.msra.mxu1 %v4851_v24 }
0x116e   :  { %4951 = vrot.lane.b32.xlu1 %v4950_v59, %s7048_s8  ;;  %v4850_v59 = vld [vmem:[%s6924_s16 + $0x10] sm:$0xff] }
0x1171   :  { %3989 = vmatpush.bf16.msra.mxu1 %v4850_v59  ;;  %v4985_v59 = vld [vmem:[%s6925_s17 + $0x1] ss:$0 sm:$0xff] }
0x119b   :  { %v3758_v28 = vpop.f32.mrf.mxu0 }
0x11a3   :  { %v3760_v23 = vpop.f32.mrf.mxu0 }
0x11a4   :  { %v4960_v27 = vpack.i.bf16 %v3760_v23, %v3758_v28 }
0x11a6   :  { %4961 = vrot.lane.b32.xlu2 %v4960_v27, %s6993_s29 }
0x11ab   :  { %v3691_v11 = vpop.f32.mrf.mxu1 }
0x11b3   :  { %v3693_v33 = vpop.f32.mrf.mxu1 }
0x11b4   :  { %v4955_v39 = vpack.i.bf16 %v3693_v33, %v3691_v11 }
0x11b6   :  { %4956 = vrot.lane.b32.xlu0 %v4955_v39, %s7049_s9 }
0x11e0   :  { %v4952_v40 = vpop.permute.xlu1 %4951 }
0x11e1   :  { %v4954_v26 = vunpack.i.h.bf16 %v4952_v40  ;;  %v4953_v25 = vunpack.i.l.bf16 %v4952_v40 }
0x11e3   :  { %v3788_v30 = vsel %vm7072_vm8, %v3559_v47, %v4954_v26  ;;  %v4983_v26 = vld [vmem:[%s6922_s14 + $0x1] ss:$0 sm:$0xff] }
0x11e6   :  { %v3832_v32 = vpop.f32.mrf.mxu2 }
0x11e7   :  { %v3833_v48 = vadd.f32 %v4982_v21, %v3832_v32 }
0x11e9   :  { %v3842_v4 = vadd.f32 %v3833_v48, %v6518_v37  ;;  %v3787_v37 = vsel %vm7073_vm5, %v3557_v52, %v4953_v25 }
0x11eb   :  { %v3850_v31 = vsel %vm265_vm15, %v3842_v4, 0.0 }
0x11ec   :  { %3851 = vadd.xlane.f32.xlu1 %v3850_v31 }
0x11ee   :  { %v3834_v36 = vpop.f32.mrf.mxu2 }
0x11ef   :  { %v3835_v51 = vadd.f32 %v4982_v21, %v3834_v36 }
0x11f1   :  { %v3843_v22 = vadd.f32 %v3835_v51, %v6520_v9 }
0x11f3   :  { %v3853_v49 = vsel %vm265_vm15, %v3843_v22, 0.0 }
0x11f4   :  { %3854 = vadd.xlane.f32.xlu0 %v3853_v49 }
0x1200   :  { %v4962_v45 = vpop.permute.xlu2 %4961 }
0x1201   :  { %v4964_v3 = vunpack.i.h.bf16 %v4962_v45  ;;  %v4963_v54 = vunpack.i.l.bf16 %v4962_v45 }
0x1228   :  { %v4957_v58 = vpop.permute.xlu0 %4956 }
0x1229   :  { %v4959_v62 = vunpack.i.h.bf16 %v4957_v58  ;;  %v4958_v60 = vunpack.i.l.bf16 %v4957_v58 }
0x122b   :  { %v3790_v56 = vsel %vm253_vm4, %v3788_v30, %v4959_v62  ;;  %v3789_v9 = vsel %vm253_vm4, %v3787_v37, %v4958_v60  ;;  %v4984_v62 = vld [vmem:[%s6923_s15 + $0x1] ss:$0 sm:$0xff] }
0x122c   :  { %v3791_v50 = vsel %vm259_vm3, %v3789_v9, %v4963_v54  ;;  %v3792_v42 = vsel %vm259_vm3, %v3790_v56, %v4964_v3 }
0x122d   :  { %v3794_v20 = vpack.c.bf16 %v3792_v42, %v3791_v50 }
0x122f   :  { %4695 = vmatmul.msk.bf16.gmra.mxu2 %vm265_vm15, %v3794_v20 }
0x125f   :  { %v3852_v46 = vpop.xlane.xlu1 %3851 }
0x1260   :  { %v3862_v14 = vmul.f32 %v3852_v46, %v6088_v7 }
0x1262   :  { %v3866_v43 = vsub.f32 %v3842_v4, %v3862_v14 }
0x1264   :  { %v3870_v16 = vmul.f32 %v3866_v43, %v3866_v43 }
0x1266   :  { %v3874_v10 = vsel %vm265_vm15, %v3870_v16, 0.0 }
0x1267   :  { %v3855_v63 = vpop.xlane.xlu0 %3854 }
0x1268   :  { %v3863_v44 = vmul.f32 %v3855_v63, %v6088_v7 }
0x126a   :  { %v3867_v53 = vsub.f32 %v3843_v22, %v3863_v44 }
0x126c   :  { %v3871_v61 = vmul.f32 %v3867_v53, %v3867_v53 }
0x126e   :  { %v3877_v41 = vsel %vm265_vm15, %v3871_v61, 0.0 }
0x126f   :  { %3878 = vadd.xlane.f32.xlu0 %v3877_v41  ;;  %v4855_v41 = vld [vmem:[%s6926_s18 + $0x38] sm:$0xff] }
0x1270   :  { %4055 = vmatpush.bf16.msrb.mxu3 %v4855_v41 }
0x12b2   :  { %v3837_v0 = vpop.f32.mrf.mxu2 }
0x12b3   :  { %v3838_v2 = vadd.f32 %v4982_v21, %v3837_v0  ;;  %v4854_v0 = vld [vmem:[%s6926_s18 + $0x30] sm:$0xff] }
0x12b4   :  { %4056 = vmatpush.bf16.msrb.mxu3 %v4854_v0 }
0x12b5   :  { %v3844_v29 = vadd.f32 %v3838_v2, %v6529_v19 }
0x12b7   :  { %v3856_v1 = vsel %vm265_vm15, %v3844_v29, 0.0 }
0x12b8   :  { %3857 = vadd.xlane.f32.xlu2 %v3856_v1 }
0x12ba   :  { %v3839_v6 = vpop.f32.mrf.mxu2 }
0x12bb   :  { %v3840_v12 = vadd.f32 %v4982_v21, %v3839_v6 }
0x12bd   :  { %v3845_v15 = vadd.f32 %v3840_v12, %v6531_v38  ;;  %v4853_v12 = vld [vmem:[%s6926_s18 + $0x28] sm:$0xff] }
0x12be   :  { %4057 = vmatpush.bf16.msrb.mxu3 %v4853_v12 }
0x12bf   :  { %v3859_v5 = vsel %vm265_vm15, %v3845_v15, 0.0 }
0x12c0   :  { %3860 = vadd.xlane.f32.xlu1 %v3859_v5  ;;  %3875 = vadd.xlane.f32.xlu2 %v3874_v10  ;;  %v4852_v5 = vld [vmem:[%s6926_s18 + $0x20] sm:$0xff] }
0x12c2   :  { %4058 = vmatpush.bf16.msrb.mxu3 %v4852_v5 }
0x12e2   :  { %v3879_v55 = vpop.xlane.xlu0 %3878 }
0x12e3   :  { %v3887_v57 = vmul.f32 %v3879_v55, %v6088_v7 }
0x12e5   :  { %v3891_v13 = vadd.f32 1e-05, %v3887_v57 }
0x12e7   :  { %5143 = vrsqrt.f32 %v3891_v13  ;;  %vm3910_vm3 = vweird.f32 %v3891_v13 }
0x12ed   :  { %v5144_v35 = vpop.eup %5143 }
0x12ee   :  { %v3905_v18 = vmul.f32 %v5144_v35, %v3891_v13  ;;  %vm3911_vm4 = vweird.f32 %v5144_v35 }
0x12ef   :  { %vm3912_vm6 = vmor %vm3910_vm3, %vm3911_vm4 }
0x12f0   :  { %v3906_v52 = vmul.f32 %v5144_v35, %v3905_v18 }
0x12f2   :  { %v3907_v39 = vmul.f32 0.5, %v3906_v52 }
0x12f4   :  { %v3908_v48 = vsub.f32 1.5, %v3907_v39 }
0x12f6   :  { %v3909_v31 = vmul.f32 %v5144_v35, %v3908_v48 }
0x12f8   :  { %v3913_v22 = vsel %vm3912_vm6, %v5144_v35, %v3909_v31  ;;  %v4986_v31 = vld [vmem:[%s6927_s19 + $0x1] ss:$0 sm:$0xff] }
0x12f9   :  { %v3935_v25 = vmul.f32 %v3913_v22, %v3867_v53 }
0x12fb   :  { %v3942_v60 = vmul.f32 %v4983_v26, %v3935_v25 }
0x12fd   :  { %v6834_v3 = vadd.f32 %v4984_v62, %v3942_v60 }
0x132b   :  { %v3858_v19 = vpop.xlane.xlu2 %3857 }
0x132c   :  { %v3864_v17 = vmul.f32 %v3858_v19, %v6088_v7 }
0x132e   :  { %v6810_v34 = vsub.f32 %v3844_v29, %v3864_v17 }
0x1330   :  { %v3872_v38 = vmul.f32 %v6810_v34, %v6810_v34 }
0x1332   :  { %v3880_v8 = vsel %vm265_vm15, %v3872_v38, 0.0 }
0x1333   :  { %3881 = vadd.xlane.f32.xlu1 %v3880_v8  ;;  %v3876_v28 = vpop.xlane.xlu2 %3875  ;;  %v3861_v47 = vpop.xlane.xlu1 %3860 }
0x1334   :  { %v3886_v23 = vmul.f32 %v3876_v28, %v6088_v7  ;;  %v3865_v27 = vmul.f32 %v3861_v47, %v6088_v7 }
0x1336   :  { %v3890_v11 = vadd.f32 1e-05, %v3886_v23  ;;  %v6823_v33 = vsub.f32 %v3845_v15, %v3865_v27 }
0x1338   :  { %5145 = vrsqrt.f32 %v3890_v11  ;;  %v3873_v21 = vmul.f32 %v6823_v33, %v6823_v33  ;;  %vm3900_vm9 = vweird.f32 %v3890_v11 }
0x133a   :  { %v3883_v32 = vsel %vm265_vm15, %v3873_v21, 0.0 }
0x133b   :  { %3884 = vadd.xlane.f32.xlu2 %v3883_v32 }
0x133e   :  { %v5146_v4 = vpop.eup %5145 }
0x133f   :  { %v3895_v36 = vmul.f32 %v5146_v4, %v3890_v11  ;;  %vm3901_vm7 = vweird.f32 %v5146_v4 }
0x1340   :  { %vm3902_vm2 = vmor %vm3900_vm9, %vm3901_vm7 }
0x1341   :  { %v3896_v51 = vmul.f32 %v5146_v4, %v3895_v36 }
0x1343   :  { %v3897_v49 = vmul.f32 0.5, %v3896_v51 }
0x1345   :  { %v3898_v40 = vsub.f32 1.5, %v3897_v49 }
0x1347   :  { %v3899_v45 = vmul.f32 %v5146_v4, %v3898_v40 }
0x1349   :  { %v3903_v58 = vsel %vm3902_vm2, %v5146_v4, %v3899_v45 }
0x134a   :  { %v3934_v30 = vmul.f32 %v3903_v58, %v3866_v43 }
0x134c   :  { %v3941_v37 = vmul.f32 %v4983_v26, %v3934_v30 }
0x134e   :  { %v6836_v54 = vadd.f32 %v4984_v62, %v3941_v37 }
0x1350   :  { %v3952_v56 = vpack.c.bf16 %v6834_v3, %v6836_v54 }
0x1352   :  { %4711 = vmatmul.msk.bf16.vlgmr.msra.gmra.mxu1 %vm265_vm15, %v3952_v56 }
0x13a6   :  { %v3882_v9 = vpop.xlane.xlu1 %3881 }
0x13a7   :  { %v3888_v50 = vmul.f32 %v3882_v9, %v6088_v7 }
0x13a9   :  { %v3892_v42 = vadd.f32 1e-05, %v3888_v50 }
0x13ab   :  { %5147 = vrsqrt.f32 %v3892_v42  ;;  %vm3920_vm11 = vweird.f32 %v3892_v42 }
0x13ae   :  { %v3885_v20 = vpop.xlane.xlu2 %3884 }
0x13af   :  { %v3889_v63 = vmul.f32 %v3885_v20, %v6088_v7 }
0x13b1   :  { %v5148_v44 = vpop.eup %5147  ;;  %v3893_v53 = vadd.f32 1e-05, %v3889_v63 }
0x13b2   :  { %v3915_v61 = vmul.f32 %v5148_v44, %v3892_v42  ;;  %vm3921_vm10 = vweird.f32 %v5148_v44 }
0x13b3   :  { %5149 = vrsqrt.f32 %v3893_v53  ;;  %vm3922_vm1 = vmor %vm3920_vm11, %vm3921_vm10  ;;  %vm3930_vm13 = vweird.f32 %v3893_v53 }
0x13b4   :  { %v3916_v46 = vmul.f32 %v5148_v44, %v3915_v61 }
0x13b6   :  { %v3917_v14 = vmul.f32 0.5, %v3916_v46 }
0x13b8   :  { %v3918_v2 = vsub.f32 1.5, %v3917_v14 }
0x13b9   :  { %v5150_v29 = vpop.eup %5149 }
0x13ba   :  { %v3919_v43 = vmul.f32 %v5148_v44, %v3918_v2  ;;  %v3925_v1 = vmul.f32 %v5150_v29, %v3893_v53  ;;  %vm3931_vm12 = vweird.f32 %v5150_v29 }
0x13bb   :  { %vm3932_vm14 = vmor %vm3930_vm13, %vm3931_vm12 }
0x13bc   :  { %v3926_v6 = vmul.f32 %v5150_v29, %v3925_v1  ;;  %v3923_v16 = vsel %vm3922_vm1, %v5148_v44, %v3919_v43 }
0x13bd   :  { %v3936_v55 = vmul.f32 %v3923_v16, %v6810_v34 }
0x13be   :  { %v3927_v15 = vmul.f32 0.5, %v3926_v6 }
0x13bf   :  { %v3943_v35 = vmul.f32 %v4983_v26, %v3936_v55 }
0x13c0   :  { %v3928_v10 = vsub.f32 1.5, %v3927_v15 }
0x13c1   :  { %v3950_v18 = vadd.f32 %v4984_v62, %v3943_v35 }
0x13c2   :  { %v3929_v57 = vmul.f32 %v5150_v29, %v3928_v10 }
0x13c4   :  { %v3933_v13 = vsel %vm3932_vm14, %v5150_v29, %v3929_v57 }
0x13c5   :  { %v3937_v19 = vmul.f32 %v3933_v13, %v6823_v33 }
0x13c7   :  { %v3944_v17 = vmul.f32 %v4983_v26, %v3937_v19 }
0x13c9   :  { %v3951_v38 = vadd.f32 %v4984_v62, %v3944_v17 }
0x13cb   :  { %v3953_v24 = vpack.c.bf16 %v3951_v38, %v3950_v18 }
0x13cd   :  { %4712 = vmatmul.msk.bf16.gmra.mxu1 %vm265_vm15, %v3953_v24 }
0x13cf   :  { %v3991_v8 = vpop.f32.mrf.mxu1 }
0x13d0   :  { %v3992_v34 = vadd.f32 %v4985_v59, %v3991_v8 }
0x13d2   :  { %v4001_v47 = vmax.f32 %v3992_v34, 0.0 }
0x13d7   :  { %v3993_v52 = vpop.f32.mrf.mxu1 }
0x13d8   :  { %v3994_v28 = vadd.f32 %v4985_v59, %v3993_v52  ;;  %v4987_v52 = vld [vmem:[%s6928_s20 + $0x1] ss:$0 sm:$0xff] }
0x13da   :  { %v4002_v23 = vmax.f32 %v3994_v28, 0.0 }
0x13dc   :  { %v4005_v27 = vpack.c.bf16 %v4002_v23, %v4001_v47  ;;  %v4988_v23 = vld [vmem:[%s6929_s21 + $0x1] ss:$0 sm:$0xff] }
0x13de   :  { %4738 = vmatmul.msk.bf16.vlgmr.msrb.gmra.mxu3 %vm487_vm0, %v4005_v27 }
0x144a   :  { %v3996_v11 = vpop.f32.mrf.mxu1 }
0x144b   :  { %v3997_v33 = vadd.f32 %v4985_v59, %v3996_v11 }
0x144d   :  { %v4003_v32 = vmax.f32 %v3997_v33, 0.0 }
0x1452   :  { %v3998_v39 = vpop.f32.mrf.mxu1 }
0x1453   :  { %v3999_v21 = vadd.f32 %v4985_v59, %v3998_v39 }
0x1455   :  { %v4004_v48 = vmax.f32 %v3999_v21, 0.0 }
0x1457   :  { %v4006_v4 = vpack.c.bf16 %v4004_v48, %v4003_v32 }
0x1459   :  { %4739 = vmatmul.msk.bf16.gmra.mxu3 %vm487_vm0, %v4006_v4 }
0x1461   :  { %v4060_v36 = vpop.f32.mrf.mxu3 }
0x1462   :  { %v4061_v51 = vadd.f32 %v4986_v31, %v4060_v36 }
0x1464   :  { %v4070_v22 = vadd.f32 %v4061_v51, %v6836_v54 }
0x1466   :  { %v4078_v49 = vsel %vm265_vm15, %v4070_v22, 0.0 }
0x1467   :  { %4079 = vadd.xlane.f32.xlu0 %v4078_v49 }
0x1469   :  { %v4062_v40 = vpop.f32.mrf.mxu3 }
0x146a   :  { %v4063_v26 = vadd.f32 %v4986_v31, %v4062_v40 }
0x146c   :  { %v4071_v25 = vadd.f32 %v4063_v26, %v6834_v3 }
0x146e   :  { %v4081_v45 = vsel %vm265_vm15, %v4071_v25, 0.0 }
0x146f   :  { %4082 = vadd.xlane.f32.xlu1 %v4081_v45 }
0x14da   :  { %v4080_v58 = vpop.xlane.xlu0 %4079 }
0x14db   :  { %v4090_v62 = vmul.f32 %v4080_v58, %v6088_v7 }
0x14dc   :  { %v4065_v60 = vpop.f32.mrf.mxu3 }
0x14dd   :  { %v4094_v30 = vsub.f32 %v4070_v22, %v4090_v62  ;;  %v4066_v37 = vadd.f32 %v4986_v31, %v4065_v60 }
0x14df   :  { %v4072_v56 = vadd.f32 %v4066_v37, %v3950_v18  ;;  %v4098_v9 = vmul.f32 %v4094_v30, %v4094_v30 }
0x14e1   :  { %v4102_v54 = vsel %vm265_vm15, %v4098_v9, 0.0  ;;  %v4084_v50 = vsel %vm265_vm15, %v4072_v56, 0.0 }
0x14e2   :  { %4103 = vadd.xlane.f32.xlu1 %v4102_v54  ;;  %4085 = vadd.xlane.f32.xlu2 %v4084_v50  ;;  %v4083_v42 = vpop.xlane.xlu1 %4082 }
0x14e3   :  { %v4091_v3 = vmul.f32 %v4083_v42, %v6088_v7 }
0x14e4   :  { %v4067_v20 = vpop.f32.mrf.mxu3 }
0x14e5   :  { %v4095_v63 = vsub.f32 %v4071_v25, %v4091_v3  ;;  %v4068_v44 = vadd.f32 %v4986_v31, %v4067_v20 }
0x14e7   :  { %v4073_v53 = vadd.f32 %v4068_v44, %v3951_v38  ;;  %v4099_v61 = vmul.f32 %v4095_v63, %v4095_v63 }
0x14e9   :  { %v4087_v41 = vsel %vm265_vm15, %v4073_v53, 0.0  ;;  %v4105_v46 = vsel %vm265_vm15, %v4099_v61, 0.0 }
0x14ea   :  { %4088 = vadd.xlane.f32.xlu0 %v4087_v41  ;;  %4106 = vadd.xlane.f32.xlu2 %v4105_v46 }
0x1555   :  { %v4086_v0 = vpop.xlane.xlu2 %4085  ;;  %v4104_v14 = vpop.xlane.xlu1 %4103 }
0x1556   :  { %v4092_v2 = vmul.f32 %v4086_v0, %v6088_v7  ;;  %v4114_v29 = vmul.f32 %v4104_v14, %v6088_v7 }
0x1558   :  { %v6878_v43 = vsub.f32 %v4072_v56, %v4092_v2  ;;  %v4118_v1 = vadd.f32 1e-05, %v4114_v29 }
0x155a   :  { %5151 = vrsqrt.f32 %v4118_v1  ;;  %v4100_v6 = vmul.f32 %v6878_v43, %v6878_v43  ;;  %vm4128_vm8 = vweird.f32 %v4118_v1 }
0x155c   :  { %v4108_v12 = vsel %vm265_vm15, %v4100_v6, 0.0 }
0x155d   :  { %v4089_v16 = vpop.xlane.xlu0 %4088  ;;  %4109 = vadd.xlane.f32.xlu0 %v4108_v12  ;;  %v4107_v15 = vpop.xlane.xlu2 %4106 }
0x155e   :  { %v4093_v5 = vmul.f32 %v4089_v16, %v6088_v7  ;;  %v4115_v10 = vmul.f32 %v4107_v15, %v6088_v7 }
0x1560   :  { %v5152_v55 = vpop.eup %5151  ;;  %v6885_v57 = vsub.f32 %v4073_v53, %v4093_v5  ;;  %v4119_v13 = vadd.f32 1e-05, %v4115_v10 }
0x1561   :  { %v4123_v19 = vmul.f32 %v5152_v55, %v4118_v1  ;;  %vm4129_vm0 = vweird.f32 %v5152_v55 }
0x1562   :  { %5153 = vrsqrt.f32 %v4119_v13  ;;  %v4101_v35 = vmul.f32 %v6885_v57, %v6885_v57  ;;  %vm4130_vm5 = vmor %vm4128_vm8, %vm4129_vm0  ;;  %vm4138_vm3 = vweird.f32 %v4119_v13 }
0x1563   :  { %v4124_v17 = vmul.f32 %v5152_v55, %v4123_v19 }
0x1564   :  { %v4111_v18 = vsel %vm265_vm15, %v4101_v35, 0.0 }
0x1565   :  { %v4125_v38 = vmul.f32 0.5, %v4124_v17  ;;  %4112 = vadd.xlane.f32.xlu1 %v4111_v18 }
0x1567   :  { %v4126_v24 = vsub.f32 1.5, %v4125_v38 }
0x1568   :  { %v5154_v8 = vpop.eup %5153 }
0x1569   :  { %v4127_v59 = vmul.f32 %v5152_v55, %v4126_v24  ;;  %v4133_v34 = vmul.f32 %v5154_v8, %v4119_v13  ;;  %vm4139_vm4 = vweird.f32 %v5154_v8 }
0x156a   :  { %vm4140_vm6 = vmor %vm4138_vm3, %vm4139_vm4 }
0x156b   :  { %v4131_v28 = vsel %vm4130_vm5, %v5152_v55, %v4127_v59  ;;  %v4134_v47 = vmul.f32 %v5154_v8, %v4133_v34 }
0x156c   :  { %v4162_v27 = vmul.f32 %v4131_v28, %v4094_v30 }
0x156d   :  { %v4135_v11 = vmul.f32 0.5, %v4134_v47 }
0x156e   :  { %v4169_v33 = vmul.f32 %v4987_v52, %v4162_v27 }
0x156f   :  { %v4136_v39 = vsub.f32 1.5, %v4135_v11 }
0x1570   :  { %v4176_v21 = vadd.f32 %v4988_v23, %v4169_v33 }
0x1571   :  { %v4137_v32 = vmul.f32 %v5154_v8, %v4136_v39 }
0x1572   :  { %4180 = vst.msk [vmem:[#allocation4] sm:$0xff] %vm265_vm15, %v4176_v21 }
0x1573   :  { %v4141_v48 = vsel %vm4140_vm6, %v5154_v8, %v4137_v32 }
0x1574   :  { %v4163_v4 = vmul.f32 %v4141_v48, %v4095_v63 }
0x1576   :  { %v4170_v31 = vmul.f32 %v4987_v52, %v4163_v4 }
0x1578   :  { %v4177_v36 = vadd.f32 %v4988_v23, %v4170_v31 }
0x157a   :  { %4181 = vst.msk [vmem:[#allocation4 + $0x8] sm:$0xff] %vm265_vm15, %v4177_v36 }
0x15d0   :  { %v4110_v51 = vpop.xlane.xlu0 %4109 }
0x15d1   :  { %v4116_v22 = vmul.f32 %v4110_v51, %v6088_v7 }
0x15d3   :  { %v4120_v49 = vadd.f32 1e-05, %v4116_v22 }
0x15d5   :  { %5155 = vrsqrt.f32 %v4120_v49  ;;  %vm4148_vm9 = vweird.f32 %v4120_v49 }
0x15d8   :  { %v4113_v40 = vpop.xlane.xlu1 %4112 }
0x15d9   :  { %v4117_v26 = vmul.f32 %v4113_v40, %v6088_v7 }
0x15db   :  { %v5156_v25 = vpop.eup %5155  ;;  %v4121_v45 = vadd.f32 1e-05, %v4117_v26 }
0x15dc   :  { %v4143_v58 = vmul.f32 %v5156_v25, %v4120_v49  ;;  %vm4149_vm7 = vweird.f32 %v5156_v25 }
0x15dd   :  { %5157 = vrsqrt.f32 %v4121_v45  ;;  %vm4150_vm2 = vmor %vm4148_vm9, %vm4149_vm7  ;;  %vm4158_vm11 = vweird.f32 %v4121_v45 }
0x15de   :  { %v4144_v62 = vmul.f32 %v5156_v25, %v4143_v58 }
0x15e0   :  { %v4145_v60 = vmul.f32 0.5, %v4144_v62 }
0x15e2   :  { %v4146_v30 = vsub.f32 1.5, %v4145_v60 }
0x15e3   :  { %v5158_v37 = vpop.eup %5157 }
0x15e4   :  { %v4147_v56 = vmul.f32 %v5156_v25, %v4146_v30  ;;  %v4153_v9 = vmul.f32 %v5158_v37, %v4121_v45  ;;  %vm4159_vm10 = vweird.f32 %v5158_v37 }
0x15e5   :  { %vm4160_vm1 = vmor %vm4158_vm11, %vm4159_vm10 }
0x15e6   :  { %v4151_v54 = vsel %vm4150_vm2, %v5156_v25, %v4147_v56  ;;  %v4154_v50 = vmul.f32 %v5158_v37, %v4153_v9 }
0x15e7   :  { %v4164_v42 = vmul.f32 %v4151_v54, %v6878_v43 }
0x15e8   :  { %v4155_v3 = vmul.f32 0.5, %v4154_v50 }
0x15e9   :  { %v4171_v20 = vmul.f32 %v4987_v52, %v4164_v42 }
0x15ea   :  { %v4156_v7 = vsub.f32 1.5, %v4155_v3 }
0x15eb   :  { %v4178_v63 = vadd.f32 %v4988_v23, %v4171_v20 }
0x15ec   :  { %v4157_v44 = vmul.f32 %v5158_v37, %v4156_v7 }
0x15ed   :  { %4182 = vst.msk [vmem:[#allocation4 + $0x10] sm:$0xff] %vm265_vm15, %v4178_v63 }
0x15ee   :  { %v4161_v53 = vsel %vm4160_vm1, %v5158_v37, %v4157_v44 }
0x15ef   :  { %v4165_v61 = vmul.f32 %v4161_v53, %v6885_v57 }
0x15f1   :  { %v4172_v41 = vmul.f32 %v4987_v52, %v4165_v61 }
0x15f3   :  { %v4179_v46 = vadd.f32 %v4988_v23, %v4172_v41 }
0x15f5   :  { %4183 = vst.msk [vmem:[#allocation4 + $0x18] sm:$0xff] %vm265_vm15, %v4179_v46 }
0x15f6   :  { %4196 = dma.vmem_to_hbm [thread:$0]  %s4189_s0, 512, %s4191_s6, [#allocation5], %s5209_s13, %s5209_s13, %s7048_s8  }
0x15f7   :  { %5183 = dma.done.wait [#allocation5], 512  }
0x15f8   :  { %5184 = vsyncadd [#allocation5], 4294966784 }
0x15f9   :  { %4201 = vsyncpa [#allocation5], 1 }

</bundles_post_ra>
